<compile_context>
chip_gen: v7x
topology: tpu7x:2x2x1
jax: 0.10.0
libtpu: 0.0.40
codegen_flags: <defaults>
</compile_context>

<pallas_src>
import jax
import jax.numpy as jnp
from jax import lax
from jax.experimental import pallas as pl
from jax.experimental.pallas import tpu as pltpu


# ----------------------------------------------------------------------------
# Geometry helpers (faithful Python ports of GeneralConv methods)
# ----------------------------------------------------------------------------
def get_kernel_size(ks, seq_len, rev=1):
    if seq_len % 2 != 0:
        if ks % 2 != 0:
            ks += 1 * rev
    elif ks % 2 == 0:
        ks += 1 * rev
    return int(ks)


def conv_len_out(lin, pad, ks, s):
    def compute(lin, pad, ks, s):
        v = lin + 2 * pad - (ks - 1) - 1
        if v % s != 0:
            v = v + v % s
            lout = v / s + 1
            pad = v + 1 + (ks - 1) - lin
            if pad % 2 != 0:
                pad += pad % 2
            return lout, pad, True
        return v / s + 1, pad, False

    lout, pad, mod = compute(lin, pad, ks, s)
    while mod:
        lout, pad, mod = compute(lin, pad, ks, s)
    return int(lout), int(pad)


def pool_len_out(lin, pad, ks, s):
    def compute(lin, pad, ks, s):
        v = lin + 2 * pad - ks
        if v % s != 0:
            v = v + v % s
            lout = v / s + 1
            pad = v + ks - lin
            if pad % 2 != 0:
                pad += pad % 2
            return lout, pad, True
        return v / s + 1, pad, False

    lout, pad, mod = compute(lin, pad, ks, s)
    while mod:
        lout, pad, mod = compute(lin, pad, ks, s)
    return int(lout), int(pad)


def pool_from_len_out_to_pad(lin, lout, ks, s):
    v = (lout - 1) * s + ks - lin
    assert v >= 0, "Cannot have a negative padding"
    if v % 2 != 0:
        v += v % 2
        v = int(v / 2)
        lout, v = pool_len_out(lin, v, ks, s)
    else:
        v = v / 2
    return int(v), int(lout)


# ----------------------------------------------------------------------------
# The single fused Pallas kernel (one batch element per grid step)
# ----------------------------------------------------------------------------
def _imc_fused_kernel(x_ref, w1_ref, b1_ref, bns_ref, bnb_ref, pool1_ref,
                      w2_ref, b2_ref, pool2_ref,
                      w1h_ref, b1h_ref, w2h_ref, b2h_ref,
                      o_ref, h1_scr, t_scr):
    """Conv1 -> ReLU -> AvgPool -> BN -> Conv2 -> ReLU -> AvgPool
       -> Tanh -> Linear -> Linear -> Softmax, all VMEM resident."""
    K1 = w1_ref.shape[0]
    K2 = w2_ref.shape[0]
    P1, LC1 = pool1_ref.shape
    P2, LC2 = pool2_ref.shape
    f32 = jnp.float32

    # ---- Conv1d(Cin->64, K1): in-kernel im2col as K1 shifted loads + matmuls.
    y1 = jnp.dot(x_ref[0:LC1, :], w1_ref[0], preferred_element_type=f32)
    for k in range(1, K1):
        y1 = y1 + jnp.dot(x_ref[k:k + LC1, :], w1_ref[k],
                          preferred_element_type=f32)
    y1 = jnp.maximum(y1 + b1_ref[...], 0.0)                       # bias + ReLU

    # ---- AvgPool1d(2) as one MXU matmul, then folded BatchNorm1d(64) affine.
    h1 = jnp.dot(pool1_ref[...], y1, preferred_element_type=f32)  # (P1, 64)
    h1_scr[...] = h1 * bns_ref[...] + bnb_ref[...]

    # ---- Conv1d(64->64, K2) -> ReLU -> AvgPool1d(2)
    y2 = jnp.dot(h1_scr[0:LC2, :], w2_ref[0], preferred_element_type=f32)
    for k in range(1, K2):
        y2 = y2 + jnp.dot(h1_scr[k:k + LC2, :], w2_ref[k],
                          preferred_element_type=f32)
    y2 = jnp.maximum(y2 + b2_ref[...], 0.0)
    h2 = jnp.dot(pool2_ref[...], y2, preferred_element_type=f32)  # (P2, 64)

    # ---- Head: Tanh -> Linear(P2*64, 64) -> Linear(64, OUT) -> Softmax(dim=1)
    t_scr[...] = jnp.tanh(h2)
    acc = b1h_ref[...]                                            # (1, 64)
    for l in range(P2):                                           # avoids a
        acc = acc + jnp.dot(t_scr[l:l + 1, :], w1h_ref[l],        # (P2,64)->(1,P2*64)
                            preferred_element_type=f32)           # relayout
    logits = jnp.dot(acc, w2h_ref[...], preferred_element_type=f32) + b2h_ref[...]
    m = jnp.max(logits, axis=-1, keepdims=True)
    e = jnp.exp(logits - m)
    o_ref[...] = e / jnp.sum(e, axis=-1, keepdims=True)


def imc_gender_conv_forward(params, x_ncl):
    """x_ncl: (N, C, L) like PyTorch. Eval-mode semantics, physNodes=0."""
    N, Cin, L = x_ncl.shape
    C1, Cin_w, K1 = params["w1"].shape
    C2, _, K2 = params["w2"].shape
    HID = params["lw1"].shape[1]
    OUT = params["lw2"].shape[1]
    assert Cin == Cin_w

    # stride 1 / zero padding geometry (asserted in init_params).
    LC1 = L - K1 + 1
    assert LC1 % 2 == 0
    P1 = LC1 // 2
    LC2 = P1 - K2 + 1
    assert LC2 % 2 == 0
    P2 = LC2 // 2
    assert params["lw1"].shape[0] == P2 * C2        # physNodes == 0

    f32 = jnp.float32
    x_nlc = jnp.transpose(x_ncl, (0, 2, 1)).astype(f32)            # (N, L, Cin)

    # One-time weight layout plumbing (fused by XLA under jit).
    w1k = jnp.transpose(params["w1"], (2, 1, 0)).astype(f32)       # (K1, Cin, C1)
    w2k = jnp.transpose(params["w2"], (2, 1, 0)).astype(f32)       # (K2, C1, C2)
    b1 = params["b1"].reshape(1, C1).astype(f32)
    b2 = params["b2"].reshape(1, C2).astype(f32)
    s = params["bn_gamma"] / jnp.sqrt(params["bn_var"] + 1e-5)     # folded BN
    bn_scale = s.reshape(1, C1).astype(f32)
    bn_shift = (params["bn_beta"] - params["bn_mean"] * s).reshape(1, C1).astype(f32)
    # 0.5-valued pooling matrices: AvgPool1d(2, 2) as an MXU matmul.
    pool1 = 0.5 * jnp.repeat(jnp.eye(P1, dtype=f32), 2, axis=1)    # (P1, LC1)
    pool2 = 0.5 * jnp.repeat(jnp.eye(P2, dtype=f32), 2, axis=1)    # (P2, LC2)
    # lw1 rows follow torch's channel-major flatten (index = c*P2 + l);
    # repack to (P2, C2, HID) so the kernel accumulates over time positions.
    w1h = jnp.transpose(params["lw1"].reshape(C2, P2, HID), (1, 0, 2)).astype(f32)
    b1h = params["lb1"].reshape(1, HID).astype(f32)
    w2h = params["lw2"].astype(f32)                                # (HID, OUT)
    b2h = params["lb2"].reshape(1, OUT).astype(f32)

    def rep_spec(a):  # full-array block, fetched once (constant index map)
        zeros = (0,) * a.ndim
        return pl.BlockSpec(a.shape, lambda n, _z=zeros: _z)

    weights = (w1k, b1, bn_scale, bn_shift, pool1, w2k, b2, pool2,
               w1h, b1h, w2h, b2h)

    out = pl.pallas_call(
        _imc_fused_kernel,
        out_shape=jax.ShapeDtypeStruct((N, 1, OUT), f32),
        grid=(N,),
        in_specs=[pl.BlockSpec((None, L, Cin), lambda n: (n, 0, 0))]
                 + [rep_spec(a) for a in weights],
        out_specs=pl.BlockSpec((None, 1, OUT), lambda n: (n, 0, 0)),
        scratch_shapes=[pltpu.VMEM((P1, C1), f32),   # post-BN activation
                        pltpu.VMEM((P2, C2), f32)],  # tanh'd head features
        compiler_params=pltpu.CompilerParams(
            dimension_semantics=("parallel",)),       # both TCs on v7x as N grows
    )(x_nlc, *weights)
    return out.reshape(N, OUT)


# ----------------------------------------------------------------------------
# Parameter init (mirrors ImcGenderConv.__init__ geometry; eval-mode BN stats)
# ----------------------------------------------------------------------------
def init_params(key, input_channels=6, seq_len=125, output_size=2,
                kernel_sizes=(5, 5), strides=(1, 1), conv_paddings=(0, 0),
                physNodes=0):
    del strides                      # module hard-codes strides = [1, 1]
    poolKernel = 2
    chans = 64                       # both convs hard-code 64 channels
                                     # (cOut = 256 in __init__ is never used)

    ks0 = get_kernel_size(kernel_sizes[0], seq_len)
    lout, cpad0 = conv_len_out(seq_len, conv_paddings[0], ks0, 1)
    lout2 = int(lout // 2 + lout % 2)
    pool_pad0, lout = pool_from_len_out_to_pad(lout, lout2, poolKernel, poolKernel)

    ks1 = get_kernel_size(kernel_sizes[1], lout)
    lout2, cpad1 = conv_len_out(lout, conv_paddings[1], ks1, 1)
    pool_pad1, lout2 = pool_from_len_out_to_pad(
        lout2, int(lout2 // 2 + lout2 % 2), poolKernel, poolKernel)

    # Default configuration yields zero conv/pool padding everywhere.
    # TODO(synk): nonzero conv/pool padding paths are not wired into the kernel.
    assert cpad0 == 0 and cpad1 == 0 and pool_pad0 == 0 and pool_pad1 == 0
    # TODO(synk): physNodes > 0 (torch.cat((x, phy), 1) before Tanh) not wired.
    assert physNodes == 0

    feat = int(lout2 * 1 * chans) + physNodes

    ks = jax.random.split(key, 12)
    p = {}
    p["w1"] = 0.1 * jax.random.normal(ks[0], (chans, input_channels, ks0), jnp.float32)
    p["b1"] = 0.1 * jax.random.normal(ks[1], (chans,), jnp.float32)
    p["w2"] = 0.1 * jax.random.normal(ks[2], (chans, chans, ks1), jnp.float32)
    p["b2"] = 0.1 * jax.random.normal(ks[3], (chans,), jnp.float32)
    # TODO(synk): source says nn.BatchNorm1d(e) with `e` undefined; 64 is the
    # only consistent channel count. Eval mode, randomized running stats.
    p["bn_gamma"] = 1.0 + 0.1 * jax.random.normal(ks[4], (chans,), jnp.float32)
    p["bn_beta"] = 0.1 * jax.random.normal(ks[5], (chans,), jnp.float32)
    p["bn_mean"] = 0.1 * jax.random.normal(ks[6], (chans,), jnp.float32)
    p["bn_var"] = jax.random.uniform(ks[7], (chans,), jnp.float32, 0.5, 1.5)
    # Linears stored as (in, out); lw1 rows in torch channel-major flatten order.
    p["lw1"] = 0.1 * jax.random.normal(ks[8], (feat, 64), jnp.float32)
    p["lb1"] = 0.1 * jax.random.normal(ks[9], (64,), jnp.float32)
    p["lw2"] = 0.1 * jax.random.normal(ks[10], (64, output_size), jnp.float32)
    p["lb2"] = 0.1 * jax.random.normal(ks[11], (output_size,), jnp.float32)
    return p


# ----------------------------------------------------------------------------
# Pure-JAX reference (correctness check only)
# ----------------------------------------------------------------------------
def reference_forward(params, x_ncl):
    hi = lax.Precision.HIGHEST

    def conv1d(x, w, b):
        y = lax.conv_general_dilated(x, w, (1,), "VALID",
                                     dimension_numbers=("NCH", "OIH", "NCH"),
                                     precision=hi)
        return y + b[None, :, None]

    def block(x, w, b):
        y = jnp.maximum(conv1d(x, w, b), 0.0)
        n, c, lc = y.shape
        return y.reshape(n, c, lc // 2, 2).mean(-1)

    x = block(x_ncl, params["w1"], params["b1"])
    x = ((x - params["bn_mean"][None, :, None])
         / jnp.sqrt(params["bn_var"][None, :, None] + 1e-5)
         * params["bn_gamma"][None, :, None] + params["bn_beta"][None, :, None])
    x = block(x, params["w2"], params["b2"])
    x = x.reshape(x.shape[0], -1)            # torch .view: channel-major flatten
    x = jnp.tanh(x)                          # Dropout(0.5) never used in forward
    x = jnp.dot(x, params["lw1"], precision=hi) + params["lb1"]
    x = jnp.dot(x, params["lw2"], precision=hi) + params["lb2"]
    return jax.nn.softmax(x, axis=1)


# ----------------------------------------------------------------------------
if __name__ == "__main__":
    key = jax.random.PRNGKey(0)
    kp, kx = jax.random.split(key)
    params = init_params(kp)    # defaults: Cin=6, L=125, output_size=2, physNodes=0

    N, Cin, L = 2, 6, 125
    x = jax.random.normal(kx, (N, Cin, L), jnp.float32)

    fwd = jax.jit(imc_gender_conv_forward)
    out = jax.block_until_ready(fwd(params, x))

    ref = jax.block_until_ready(reference_forward(params, x))
    assert out.shape == (N, 2), out.shape
    assert jnp.allclose(jnp.sum(out, axis=1), 1.0, atol=1e-5)
    assert jnp.allclose(out, ref, atol=5e-5, rtol=5e-5), (out, ref)
    print("KERNEL_OK")
</pallas_src>

<mosaic_0001>
module attributes {stable_mosaic.version = 11 : i64} {
  func.func @_imc_fused_kernel(%arg0: i32, %arg1: memref<1x125x6xf32, #tpu.memory_space<vmem>>, %arg2: memref<6x6x64xf32, #tpu.memory_space<vmem>>, %arg3: memref<1x64xf32, #tpu.memory_space<vmem>>, %arg4: memref<1x64xf32, #tpu.memory_space<vmem>>, %arg5: memref<1x64xf32, #tpu.memory_space<vmem>>, %arg6: memref<60x120xf32, #tpu.memory_space<vmem>>, %arg7: memref<5x64x64xf32, #tpu.memory_space<vmem>>, %arg8: memref<1x64xf32, #tpu.memory_space<vmem>>, %arg9: memref<28x56xf32, #tpu.memory_space<vmem>>, %arg10: memref<28x64x64xf32, #tpu.memory_space<vmem>>, %arg11: memref<1x64xf32, #tpu.memory_space<vmem>>, %arg12: memref<64x2xf32, #tpu.memory_space<vmem>>, %arg13: memref<1x2xf32, #tpu.memory_space<vmem>>, %arg14: memref<1x1x2xf32, #tpu.memory_space<vmem>>, %arg15: memref<60x64xf32, #tpu.memory_space<vmem>>, %arg16: memref<28x64xf32, #tpu.memory_space<vmem>>) attributes {dimension_semantics = [#tpu.dimension_semantics<parallel>], iteration_bounds = array<i64: 2>, scalar_prefetch = 0 : i64, scratch_operands = 2 : i64, tpu.core_type = #tpu.core_type<tc>, window_params = [{transform_indices = @transform_0, window_bounds = array<i64: 1, 125, 6>}, {pipeline_mode = #tpu.pipeline_mode<synchronous>, transform_indices = @transform_1, window_bounds = array<i64: 6, 6, 64>}, {pipeline_mode = #tpu.pipeline_mode<synchronous>, transform_indices = @transform_2, window_bounds = array<i64: 1, 64>}, {pipeline_mode = #tpu.pipeline_mode<synchronous>, transform_indices = @transform_3, window_bounds = array<i64: 1, 64>}, {pipeline_mode = #tpu.pipeline_mode<synchronous>, transform_indices = @transform_4, window_bounds = array<i64: 1, 64>}, {pipeline_mode = #tpu.pipeline_mode<synchronous>, transform_indices = @transform_5, window_bounds = array<i64: 60, 120>}, {pipeline_mode = #tpu.pipeline_mode<synchronous>, transform_indices = @transform_6, window_bounds = array<i64: 5, 64, 64>}, {pipeline_mode = #tpu.pipeline_mode<synchronous>, transform_indices = @transform_7, window_bounds = array<i64: 1, 64>}, {pipeline_mode = #tpu.pipeline_mode<synchronous>, transform_indices = @transform_8, window_bounds = array<i64: 28, 56>}, {pipeline_mode = #tpu.pipeline_mode<synchronous>, transform_indices = @transform_9, window_bounds = array<i64: 28, 64, 64>}, {pipeline_mode = #tpu.pipeline_mode<synchronous>, transform_indices = @transform_10, window_bounds = array<i64: 1, 64>}, {pipeline_mode = #tpu.pipeline_mode<synchronous>, transform_indices = @transform_11, window_bounds = array<i64: 64, 2>}, {pipeline_mode = #tpu.pipeline_mode<synchronous>, transform_indices = @transform_12, window_bounds = array<i64: 1, 2>}, {transform_indices = @transform_13, window_bounds = array<i64: 1, 1, 2>}]} {
    %c0 = arith.constant 0 : index
    %c0_0 = arith.constant 0 : index
    %c0_1 = arith.constant 0 : index
    %0 = vector.load %arg1[%c0, %c0_0, %c0_1] : memref<1x125x6xf32, #tpu.memory_space<vmem>>, vector<1x120x6xf32>
    %1 = vector.shape_cast %0 : vector<1x120x6xf32> to vector<120x6xf32>
    %c0_2 = arith.constant 0 : index
    %c0_3 = arith.constant 0 : index
    %c0_4 = arith.constant 0 : index
    %2 = vector.load %arg2[%c0_2, %c0_3, %c0_4] : memref<6x6x64xf32, #tpu.memory_space<vmem>>, vector<1x6x64xf32>
    %3 = vector.shape_cast %2 : vector<1x6x64xf32> to vector<6x64xf32>
    %cst = arith.constant dense<0.000000e+00> : vector<120x64xf32>
    %4 = tpu.matmul %1, %3, %cst {dimension_numbers = #tpu.dot_dimension_numbers<[1], [0], [0], [1], [0, 0, 1, 1], [], []>} : vector<120x6xf32>, vector<6x64xf32>, vector<120x64xf32> -> vector<120x64xf32>
    %c0_5 = arith.constant 0 : index
    %c1 = arith.constant 1 : index
    %c0_6 = arith.constant 0 : index
    %5 = vector.load %arg1[%c0_5, %c1, %c0_6] : memref<1x125x6xf32, #tpu.memory_space<vmem>>, vector<1x120x6xf32>
    %6 = vector.shape_cast %5 : vector<1x120x6xf32> to vector<120x6xf32>
    %c1_7 = arith.constant 1 : index
    %c0_8 = arith.constant 0 : index
    %c0_9 = arith.constant 0 : index
    %7 = vector.load %arg2[%c1_7, %c0_8, %c0_9] : memref<6x6x64xf32, #tpu.memory_space<vmem>>, vector<1x6x64xf32>
    %8 = vector.shape_cast %7 : vector<1x6x64xf32> to vector<6x64xf32>
    %cst_10 = arith.constant dense<0.000000e+00> : vector<120x64xf32>
    %9 = tpu.matmul %6, %8, %cst_10 {dimension_numbers = #tpu.dot_dimension_numbers<[1], [0], [0], [1], [0, 0, 1, 1], [], []>} : vector<120x6xf32>, vector<6x64xf32>, vector<120x64xf32> -> vector<120x64xf32>
    %10 = arith.addf %4, %9 : vector<120x64xf32>
    %c0_11 = arith.constant 0 : index
    %c2 = arith.constant 2 : index
    %c0_12 = arith.constant 0 : index
    %11 = vector.load %arg1[%c0_11, %c2, %c0_12] : memref<1x125x6xf32, #tpu.memory_space<vmem>>, vector<1x120x6xf32>
    %12 = vector.shape_cast %11 : vector<1x120x6xf32> to vector<120x6xf32>
    %c2_13 = arith.constant 2 : index
    %c0_14 = arith.constant 0 : index
    %c0_15 = arith.constant 0 : index
    %13 = vector.load %arg2[%c2_13, %c0_14, %c0_15] : memref<6x6x64xf32, #tpu.memory_space<vmem>>, vector<1x6x64xf32>
    %14 = vector.shape_cast %13 : vector<1x6x64xf32> to vector<6x64xf32>
    %cst_16 = arith.constant dense<0.000000e+00> : vector<120x64xf32>
    %15 = tpu.matmul %12, %14, %cst_16 {dimension_numbers = #tpu.dot_dimension_numbers<[1], [0], [0], [1], [0, 0, 1, 1], [], []>} : vector<120x6xf32>, vector<6x64xf32>, vector<120x64xf32> -> vector<120x64xf32>
    %16 = arith.addf %10, %15 : vector<120x64xf32>
    %c0_17 = arith.constant 0 : index
    %c3 = arith.constant 3 : index
    %c0_18 = arith.constant 0 : index
    %17 = vector.load %arg1[%c0_17, %c3, %c0_18] : memref<1x125x6xf32, #tpu.memory_space<vmem>>, vector<1x120x6xf32>
    %18 = vector.shape_cast %17 : vector<1x120x6xf32> to vector<120x6xf32>
    %c3_19 = arith.constant 3 : index
    %c0_20 = arith.constant 0 : index
    %c0_21 = arith.constant 0 : index
    %19 = vector.load %arg2[%c3_19, %c0_20, %c0_21] : memref<6x6x64xf32, #tpu.memory_space<vmem>>, vector<1x6x64xf32>
    %20 = vector.shape_cast %19 : vector<1x6x64xf32> to vector<6x64xf32>
    %cst_22 = arith.constant dense<0.000000e+00> : vector<120x64xf32>
    %21 = tpu.matmul %18, %20, %cst_22 {dimension_numbers = #tpu.dot_dimension_numbers<[1], [0], [0], [1], [0, 0, 1, 1], [], []>} : vector<120x6xf32>, vector<6x64xf32>, vector<120x64xf32> -> vector<120x64xf32>
    %22 = arith.addf %16, %21 : vector<120x64xf32>
    %c0_23 = arith.constant 0 : index
    %c4 = arith.constant 4 : index
    %c0_24 = arith.constant 0 : index
    %23 = vector.load %arg1[%c0_23, %c4, %c0_24] : memref<1x125x6xf32, #tpu.memory_space<vmem>>, vector<1x120x6xf32>
    %24 = vector.shape_cast %23 : vector<1x120x6xf32> to vector<120x6xf32>
    %c4_25 = arith.constant 4 : index
    %c0_26 = arith.constant 0 : index
    %c0_27 = arith.constant 0 : index
    %25 = vector.load %arg2[%c4_25, %c0_26, %c0_27] : memref<6x6x64xf32, #tpu.memory_space<vmem>>, vector<1x6x64xf32>
    %26 = vector.shape_cast %25 : vector<1x6x64xf32> to vector<6x64xf32>
    %cst_28 = arith.constant dense<0.000000e+00> : vector<120x64xf32>
    %27 = tpu.matmul %24, %26, %cst_28 {dimension_numbers = #tpu.dot_dimension_numbers<[1], [0], [0], [1], [0, 0, 1, 1], [], []>} : vector<120x6xf32>, vector<6x64xf32>, vector<120x64xf32> -> vector<120x64xf32>
    %28 = arith.addf %22, %27 : vector<120x64xf32>
    %c0_29 = arith.constant 0 : index
    %c5 = arith.constant 5 : index
    %c0_30 = arith.constant 0 : index
    %29 = vector.load %arg1[%c0_29, %c5, %c0_30] : memref<1x125x6xf32, #tpu.memory_space<vmem>>, vector<1x120x6xf32>
    %30 = vector.shape_cast %29 : vector<1x120x6xf32> to vector<120x6xf32>
    %c5_31 = arith.constant 5 : index
    %c0_32 = arith.constant 0 : index
    %c0_33 = arith.constant 0 : index
    %31 = vector.load %arg2[%c5_31, %c0_32, %c0_33] : memref<6x6x64xf32, #tpu.memory_space<vmem>>, vector<1x6x64xf32>
    %32 = vector.shape_cast %31 : vector<1x6x64xf32> to vector<6x64xf32>
    %cst_34 = arith.constant dense<0.000000e+00> : vector<120x64xf32>
    %33 = tpu.matmul %30, %32, %cst_34 {dimension_numbers = #tpu.dot_dimension_numbers<[1], [0], [0], [1], [0, 0, 1, 1], [], []>} : vector<120x6xf32>, vector<6x64xf32>, vector<120x64xf32> -> vector<120x64xf32>
    %34 = arith.addf %28, %33 : vector<120x64xf32>
    %c0_35 = arith.constant 0 : index
    %c0_36 = arith.constant 0 : index
    %35 = vector.load %arg3[%c0_35, %c0_36] : memref<1x64xf32, #tpu.memory_space<vmem>>, vector<1x64xf32>
    %36 = vector.broadcast %35 : vector<1x64xf32> to vector<120x64xf32>
    %37 = arith.addf %34, %36 : vector<120x64xf32>
    %cst_37 = arith.constant 0.000000e+00 : f32
    %38 = vector.broadcast %cst_37 : f32 to vector<120x64xf32>
    %39 = arith.maximumf %37, %38 : vector<120x64xf32>
    %c0_38 = arith.constant 0 : index
    %c0_39 = arith.constant 0 : index
    %40 = vector.load %arg6[%c0_38, %c0_39] : memref<60x120xf32, #tpu.memory_space<vmem>>, vector<60x120xf32>
    %cst_40 = arith.constant dense<0.000000e+00> : vector<60x64xf32>
    %41 = tpu.matmul %40, %39, %cst_40 {dimension_numbers = #tpu.dot_dimension_numbers<[1], [0], [0], [1], [0, 0, 1, 1], [], []>} : vector<60x120xf32>, vector<120x64xf32>, vector<60x64xf32> -> vector<60x64xf32>
    %c0_41 = arith.constant 0 : index
    %c0_42 = arith.constant 0 : index
    %42 = vector.load %arg4[%c0_41, %c0_42] : memref<1x64xf32, #tpu.memory_space<vmem>>, vector<1x64xf32>
    %43 = vector.broadcast %42 : vector<1x64xf32> to vector<60x64xf32>
    %44 = arith.mulf %41, %43 : vector<60x64xf32>
    %c0_43 = arith.constant 0 : index
    %c0_44 = arith.constant 0 : index
    %45 = vector.load %arg5[%c0_43, %c0_44] : memref<1x64xf32, #tpu.memory_space<vmem>>, vector<1x64xf32>
    %46 = vector.broadcast %45 : vector<1x64xf32> to vector<60x64xf32>
    %47 = arith.addf %44, %46 : vector<60x64xf32>
    %c0_45 = arith.constant 0 : index
    %c0_46 = arith.constant 0 : index
    %48 = vector.load %arg15[%c0_45, %c0_46] : memref<60x64xf32, #tpu.memory_space<vmem>>, vector<60x64xf32>
    tpu.vector_store %arg15[%c0_45, %c0_46], %47 {strides = array<i32>} : memref<60x64xf32, #tpu.memory_space<vmem>>, vector<60x64xf32>,
    %c0_47 = arith.constant 0 : index
    %c0_48 = arith.constant 0 : index
    %49 = vector.load %arg15[%c0_47, %c0_48] : memref<60x64xf32, #tpu.memory_space<vmem>>, vector<56x64xf32>
    %c0_49 = arith.constant 0 : index
    %c0_50 = arith.constant 0 : index
    %c0_51 = arith.constant 0 : index
    %50 = vector.load %arg7[%c0_49, %c0_50, %c0_51] : memref<5x64x64xf32, #tpu.memory_space<vmem>>, vector<1x64x64xf32>
    %51 = vector.shape_cast %50 : vector<1x64x64xf32> to vector<64x64xf32>
    %cst_52 = arith.constant dense<0.000000e+00> : vector<56x64xf32>
    %52 = tpu.matmul %49, %51, %cst_52 {dimension_numbers = #tpu.dot_dimension_numbers<[1], [0], [0], [1], [0, 0, 1, 1], [], []>} : vector<56x64xf32>, vector<64x64xf32>, vector<56x64xf32> -> vector<56x64xf32>
    %c1_53 = arith.constant 1 : index
    %c0_54 = arith.constant 0 : index
    %53 = vector.load %arg15[%c1_53, %c0_54] : memref<60x64xf32, #tpu.memory_space<vmem>>, vector<56x64xf32>
    %c1_55 = arith.constant 1 : index
    %c0_56 = arith.constant 0 : index
    %c0_57 = arith.constant 0 : index
    %54 = vector.load %arg7[%c1_55, %c0_56, %c0_57] : memref<5x64x64xf32, #tpu.memory_space<vmem>>, vector<1x64x64xf32>
    %55 = vector.shape_cast %54 : vector<1x64x64xf32> to vector<64x64xf32>
    %cst_58 = arith.constant dense<0.000000e+00> : vector<56x64xf32>
    %56 = tpu.matmul %53, %55, %cst_58 {dimension_numbers = #tpu.dot_dimension_numbers<[1], [0], [0], [1], [0, 0, 1, 1], [], []>} : vector<56x64xf32>, vector<64x64xf32>, vector<56x64xf32> -> vector<56x64xf32>
    %57 = arith.addf %52, %56 : vector<56x64xf32>
    %c2_59 = arith.constant 2 : index
    %c0_60 = arith.constant 0 : index
    %58 = vector.load %arg15[%c2_59, %c0_60] : memref<60x64xf32, #tpu.memory_space<vmem>>, vector<56x64xf32>
    %c2_61 = arith.constant 2 : index
    %c0_62 = arith.constant 0 : index
    %c0_63 = arith.constant 0 : index
    %59 = vector.load %arg7[%c2_61, %c0_62, %c0_63] : memref<5x64x64xf32, #tpu.memory_space<vmem>>, vector<1x64x64xf32>
    %60 = vector.shape_cast %59 : vector<1x64x64xf32> to vector<64x64xf32>
    %cst_64 = arith.constant dense<0.000000e+00> : vector<56x64xf32>
    %61 = tpu.matmul %58, %60, %cst_64 {dimension_numbers = #tpu.dot_dimension_numbers<[1], [0], [0], [1], [0, 0, 1, 1], [], []>} : vector<56x64xf32>, vector<64x64xf32>, vector<56x64xf32> -> vector<56x64xf32>
    %62 = arith.addf %57, %61 : vector<56x64xf32>
    %c3_65 = arith.constant 3 : index
    %c0_66 = arith.constant 0 : index
    %63 = vector.load %arg15[%c3_65, %c0_66] : memref<60x64xf32, #tpu.memory_space<vmem>>, vector<56x64xf32>
    %c3_67 = arith.constant 3 : index
    %c0_68 = arith.constant 0 : index
    %c0_69 = arith.constant 0 : index
    %64 = vector.load %arg7[%c3_67, %c0_68, %c0_69] : memref<5x64x64xf32, #tpu.memory_space<vmem>>, vector<1x64x64xf32>
    %65 = vector.shape_cast %64 : vector<1x64x64xf32> to vector<64x64xf32>
    %cst_70 = arith.constant dense<0.000000e+00> : vector<56x64xf32>
    %66 = tpu.matmul %63, %65, %cst_70 {dimension_numbers = #tpu.dot_dimension_numbers<[1], [0], [0], [1], [0, 0, 1, 1], [], []>} : vector<56x64xf32>, vector<64x64xf32>, vector<56x64xf32> -> vector<56x64xf32>
    %67 = arith.addf %62, %66 : vector<56x64xf32>
    %c4_71 = arith.constant 4 : index
    %c0_72 = arith.constant 0 : index
    %68 = vector.load %arg15[%c4_71, %c0_72] : memref<60x64xf32, #tpu.memory_space<vmem>>, vector<56x64xf32>
    %c4_73 = arith.constant 4 : index
    %c0_74 = arith.constant 0 : index
    %c0_75 = arith.constant 0 : index
    %69 = vector.load %arg7[%c4_73, %c0_74, %c0_75] : memref<5x64x64xf32, #tpu.memory_space<vmem>>, vector<1x64x64xf32>
    %70 = vector.shape_cast %69 : vector<1x64x64xf32> to vector<64x64xf32>
    %cst_76 = arith.constant dense<0.000000e+00> : vector<56x64xf32>
    %71 = tpu.matmul %68, %70, %cst_76 {dimension_numbers = #tpu.dot_dimension_numbers<[1], [0], [0], [1], [0, 0, 1, 1], [], []>} : vector<56x64xf32>, vector<64x64xf32>, vector<56x64xf32> -> vector<56x64xf32>
    %72 = arith.addf %67, %71 : vector<56x64xf32>
    %c0_77 = arith.constant 0 : index
    %c0_78 = arith.constant 0 : index
    %73 = vector.load %arg8[%c0_77, %c0_78] : memref<1x64xf32, #tpu.memory_space<vmem>>, vector<1x64xf32>
    %74 = vector.broadcast %73 : vector<1x64xf32> to vector<56x64xf32>
    %75 = arith.addf %72, %74 : vector<56x64xf32>
    %cst_79 = arith.constant 0.000000e+00 : f32
    %76 = vector.broadcast %cst_79 : f32 to vector<56x64xf32>
    %77 = arith.maximumf %75, %76 : vector<56x64xf32>
    %c0_80 = arith.constant 0 : index
    %c0_81 = arith.constant 0 : index
    %78 = vector.load %arg9[%c0_80, %c0_81] : memref<28x56xf32, #tpu.memory_space<vmem>>, vector<28x56xf32>
    %cst_82 = arith.constant dense<0.000000e+00> : vector<28x64xf32>
    %79 = tpu.matmul %78, %77, %cst_82 {dimension_numbers = #tpu.dot_dimension_numbers<[1], [0], [0], [1], [0, 0, 1, 1], [], []>} : vector<28x56xf32>, vector<56x64xf32>, vector<28x64xf32> -> vector<28x64xf32>
    %80 = math.tanh %79 : vector<28x64xf32>
    %c0_83 = arith.constant 0 : index
    %c0_84 = arith.constant 0 : index
    %81 = vector.load %arg16[%c0_83, %c0_84] : memref<28x64xf32, #tpu.memory_space<vmem>>, vector<28x64xf32>
    tpu.vector_store %arg16[%c0_83, %c0_84], %80 {strides = array<i32>} : memref<28x64xf32, #tpu.memory_space<vmem>>, vector<28x64xf32>,
    %c0_85 = arith.constant 0 : index
    %c0_86 = arith.constant 0 : index
    %82 = vector.load %arg11[%c0_85, %c0_86] : memref<1x64xf32, #tpu.memory_space<vmem>>, vector<1x64xf32>
    %c0_87 = arith.constant 0 : index
    %c0_88 = arith.constant 0 : index
    %83 = vector.load %arg16[%c0_87, %c0_88] : memref<28x64xf32, #tpu.memory_space<vmem>>, vector<1x64xf32>
    %c0_89 = arith.constant 0 : index
    %c0_90 = arith.constant 0 : index
    %c0_91 = arith.constant 0 : index
    %84 = vector.load %arg10[%c0_89, %c0_90, %c0_91] : memref<28x64x64xf32, #tpu.memory_space<vmem>>, vector<1x64x64xf32>
    %85 = vector.shape_cast %84 : vector<1x64x64xf32> to vector<64x64xf32>
    %cst_92 = arith.constant dense<0.000000e+00> : vector<1x64xf32>
    %86 = tpu.matmul %83, %85, %cst_92 {dimension_numbers = #tpu.dot_dimension_numbers<[1], [0], [0], [1], [0, 0, 1, 1], [], []>} : vector<1x64xf32>, vector<64x64xf32>, vector<1x64xf32> -> vector<1x64xf32>
    %87 = arith.addf %82, %86 : vector<1x64xf32>
    %c1_93 = arith.constant 1 : index
    %c0_94 = arith.constant 0 : index
    %88 = vector.load %arg16[%c1_93, %c0_94] : memref<28x64xf32, #tpu.memory_space<vmem>>, vector<1x64xf32>
    %c1_95 = arith.constant 1 : index
    %c0_96 = arith.constant 0 : index
    %c0_97 = arith.constant 0 : index
    %89 = vector.load %arg10[%c1_95, %c0_96, %c0_97] : memref<28x64x64xf32, #tpu.memory_space<vmem>>, vector<1x64x64xf32>
    %90 = vector.shape_cast %89 : vector<1x64x64xf32> to vector<64x64xf32>
    %cst_98 = arith.constant dense<0.000000e+00> : vector<1x64xf32>
    %91 = tpu.matmul %88, %90, %cst_98 {dimension_numbers = #tpu.dot_dimension_numbers<[1], [0], [0], [1], [0, 0, 1, 1], [], []>} : vector<1x64xf32>, vector<64x64xf32>, vector<1x64xf32> -> vector<1x64xf32>
    %92 = arith.addf %87, %91 : vector<1x64xf32>
    %c2_99 = arith.constant 2 : index
    %c0_100 = arith.constant 0 : index
    %93 = vector.load %arg16[%c2_99, %c0_100] : memref<28x64xf32, #tpu.memory_space<vmem>>, vector<1x64xf32>
    %c2_101 = arith.constant 2 : index
    %c0_102 = arith.constant 0 : index
    %c0_103 = arith.constant 0 : index
    %94 = vector.load %arg10[%c2_101, %c0_102, %c0_103] : memref<28x64x64xf32, #tpu.memory_space<vmem>>, vector<1x64x64xf32>
    %95 = vector.shape_cast %94 : vector<1x64x64xf32> to vector<64x64xf32>
    %cst_104 = arith.constant dense<0.000000e+00> : vector<1x64xf32>
    %96 = tpu.matmul %93, %95, %cst_104 {dimension_numbers = #tpu.dot_dimension_numbers<[1], [0], [0], [1], [0, 0, 1, 1], [], []>} : vector<1x64xf32>, vector<64x64xf32>, vector<1x64xf32> -> vector<1x64xf32>
    %97 = arith.addf %92, %96 : vector<1x64xf32>
    %c3_105 = arith.constant 3 : index
    %c0_106 = arith.constant 0 : index
    %98 = vector.load %arg16[%c3_105, %c0_106] : memref<28x64xf32, #tpu.memory_space<vmem>>, vector<1x64xf32>
    %c3_107 = arith.constant 3 : index
    %c0_108 = arith.constant 0 : index
    %c0_109 = arith.constant 0 : index
    %99 = vector.load %arg10[%c3_107, %c0_108, %c0_109] : memref<28x64x64xf32, #tpu.memory_space<vmem>>, vector<1x64x64xf32>
    %100 = vector.shape_cast %99 : vector<1x64x64xf32> to vector<64x64xf32>
    %cst_110 = arith.constant dense<0.000000e+00> : vector<1x64xf32>
    %101 = tpu.matmul %98, %100, %cst_110 {dimension_numbers = #tpu.dot_dimension_numbers<[1], [0], [0], [1], [0, 0, 1, 1], [], []>} : vector<1x64xf32>, vector<64x64xf32>, vector<1x64xf32> -> vector<1x64xf32>
    %102 = arith.addf %97, %101 : vector<1x64xf32>
    %c4_111 = arith.constant 4 : index
    %c0_112 = arith.constant 0 : index
    %103 = vector.load %arg16[%c4_111, %c0_112] : memref<28x64xf32, #tpu.memory_space<vmem>>, vector<1x64xf32>
    %c4_113 = arith.constant 4 : index
    %c0_114 = arith.constant 0 : index
    %c0_115 = arith.constant 0 : index
    %104 = vector.load %arg10[%c4_113, %c0_114, %c0_115] : memref<28x64x64xf32, #tpu.memory_space<vmem>>, vector<1x64x64xf32>
    %105 = vector.shape_cast %104 : vector<1x64x64xf32> to vector<64x64xf32>
    %cst_116 = arith.constant dense<0.000000e+00> : vector<1x64xf32>
    %106 = tpu.matmul %103, %105, %cst_116 {dimension_numbers = #tpu.dot_dimension_numbers<[1], [0], [0], [1], [0, 0, 1, 1], [], []>} : vector<1x64xf32>, vector<64x64xf32>, vector<1x64xf32> -> vector<1x64xf32>
    %107 = arith.addf %102, %106 : vector<1x64xf32>
    %c5_117 = arith.constant 5 : index
    %c0_118 = arith.constant 0 : index
    %108 = vector.load %arg16[%c5_117, %c0_118] : memref<28x64xf32, #tpu.memory_space<vmem>>, vector<1x64xf32>
    %c5_119 = arith.constant 5 : index
    %c0_120 = arith.constant 0 : index
    %c0_121 = arith.constant 0 : index
    %109 = vector.load %arg10[%c5_119, %c0_120, %c0_121] : memref<28x64x64xf32, #tpu.memory_space<vmem>>, vector<1x64x64xf32>
    %110 = vector.shape_cast %109 : vector<1x64x64xf32> to vector<64x64xf32>
    %cst_122 = arith.constant dense<0.000000e+00> : vector<1x64xf32>
    %111 = tpu.matmul %108, %110, %cst_122 {dimension_numbers = #tpu.dot_dimension_numbers<[1], [0], [0], [1], [0, 0, 1, 1], [], []>} : vector<1x64xf32>, vector<64x64xf32>, vector<1x64xf32> -> vector<1x64xf32>
    %112 = arith.addf %107, %111 : vector<1x64xf32>
    %c6 = arith.constant 6 : index
    %c0_123 = arith.constant 0 : index
    %113 = vector.load %arg16[%c6, %c0_123] : memref<28x64xf32, #tpu.memory_space<vmem>>, vector<1x64xf32>
    %c6_124 = arith.constant 6 : index
    %c0_125 = arith.constant 0 : index
    %c0_126 = arith.constant 0 : index
    %114 = vector.load %arg10[%c6_124, %c0_125, %c0_126] : memref<28x64x64xf32, #tpu.memory_space<vmem>>, vector<1x64x64xf32>
    %115 = vector.shape_cast %114 : vector<1x64x64xf32> to vector<64x64xf32>
    %cst_127 = arith.constant dense<0.000000e+00> : vector<1x64xf32>
    %116 = tpu.matmul %113, %115, %cst_127 {dimension_numbers = #tpu.dot_dimension_numbers<[1], [0], [0], [1], [0, 0, 1, 1], [], []>} : vector<1x64xf32>, vector<64x64xf32>, vector<1x64xf32> -> vector<1x64xf32>
    %117 = arith.addf %112, %116 : vector<1x64xf32>
    %c7 = arith.constant 7 : index
    %c0_128 = arith.constant 0 : index
    %118 = vector.load %arg16[%c7, %c0_128] : memref<28x64xf32, #tpu.memory_space<vmem>>, vector<1x64xf32>
    %c7_129 = arith.constant 7 : index
    %c0_130 = arith.constant 0 : index
    %c0_131 = arith.constant 0 : index
    %119 = vector.load %arg10[%c7_129, %c0_130, %c0_131] : memref<28x64x64xf32, #tpu.memory_space<vmem>>, vector<1x64x64xf32>
    %120 = vector.shape_cast %119 : vector<1x64x64xf32> to vector<64x64xf32>
    %cst_132 = arith.constant dense<0.000000e+00> : vector<1x64xf32>
    %121 = tpu.matmul %118, %120, %cst_132 {dimension_numbers = #tpu.dot_dimension_numbers<[1], [0], [0], [1], [0, 0, 1, 1], [], []>} : vector<1x64xf32>, vector<64x64xf32>, vector<1x64xf32> -> vector<1x64xf32>
    %122 = arith.addf %117, %121 : vector<1x64xf32>
    %c8 = arith.constant 8 : index
    %c0_133 = arith.constant 0 : index
    %123 = vector.load %arg16[%c8, %c0_133] : memref<28x64xf32, #tpu.memory_space<vmem>>, vector<1x64xf32>
    %c8_134 = arith.constant 8 : index
    %c0_135 = arith.constant 0 : index
    %c0_136 = arith.constant 0 : index
    %124 = vector.load %arg10[%c8_134, %c0_135, %c0_136] : memref<28x64x64xf32, #tpu.memory_space<vmem>>, vector<1x64x64xf32>
    %125 = vector.shape_cast %124 : vector<1x64x64xf32> to vector<64x64xf32>
    %cst_137 = arith.constant dense<0.000000e+00> : vector<1x64xf32>
    %126 = tpu.matmul %123, %125, %cst_137 {dimension_numbers = #tpu.dot_dimension_numbers<[1], [0], [0], [1], [0, 0, 1, 1], [], []>} : vector<1x64xf32>, vector<64x64xf32>, vector<1x64xf32> -> vector<1x64xf32>
    %127 = arith.addf %122, %126 : vector<1x64xf32>
    %c9 = arith.constant 9 : index
    %c0_138 = arith.constant 0 : index
    %128 = vector.load %arg16[%c9, %c0_138] : memref<28x64xf32, #tpu.memory_space<vmem>>, vector<1x64xf32>
    %c9_139 = arith.constant 9 : index
    %c0_140 = arith.constant 0 : index
    %c0_141 = arith.constant 0 : index
    %129 = vector.load %arg10[%c9_139, %c0_140, %c0_141] : memref<28x64x64xf32, #tpu.memory_space<vmem>>, vector<1x64x64xf32>
    %130 = vector.shape_cast %129 : vector<1x64x64xf32> to vector<64x64xf32>
    %cst_142 = arith.constant dense<0.000000e+00> : vector<1x64xf32>
    %131 = tpu.matmul %128, %130, %cst_142 {dimension_numbers = #tpu.dot_dimension_numbers<[1], [0], [0], [1], [0, 0, 1, 1], [], []>} : vector<1x64xf32>, vector<64x64xf32>, vector<1x64xf32> -> vector<1x64xf32>
    %132 = arith.addf %127, %131 : vector<1x64xf32>
    %c10 = arith.constant 10 : index
    %c0_143 = arith.constant 0 : index
    %133 = vector.load %arg16[%c10, %c0_143] : memref<28x64xf32, #tpu.memory_space<vmem>>, vector<1x64xf32>
    %c10_144 = arith.constant 10 : index
    %c0_145 = arith.constant 0 : index
    %c0_146 = arith.constant 0 : index
    %134 = vector.load %arg10[%c10_144, %c0_145, %c0_146] : memref<28x64x64xf32, #tpu.memory_space<vmem>>, vector<1x64x64xf32>
    %135 = vector.shape_cast %134 : vector<1x64x64xf32> to vector<64x64xf32>
    %cst_147 = arith.constant dense<0.000000e+00> : vector<1x64xf32>
    %136 = tpu.matmul %133, %135, %cst_147 {dimension_numbers = #tpu.dot_dimension_numbers<[1], [0], [0], [1], [0, 0, 1, 1], [], []>} : vector<1x64xf32>, vector<64x64xf32>, vector<1x64xf32> -> vector<1x64xf32>
    %137 = arith.addf %132, %136 : vector<1x64xf32>
    %c11 = arith.constant 11 : index
    %c0_148 = arith.constant 0 : index
    %138 = vector.load %arg16[%c11, %c0_148] : memref<28x64xf32, #tpu.memory_space<vmem>>, vector<1x64xf32>
    %c11_149 = arith.constant 11 : index
    %c0_150 = arith.constant 0 : index
    %c0_151 = arith.constant 0 : index
    %139 = vector.load %arg10[%c11_149, %c0_150, %c0_151] : memref<28x64x64xf32, #tpu.memory_space<vmem>>, vector<1x64x64xf32>
    %140 = vector.shape_cast %139 : vector<1x64x64xf32> to vector<64x64xf32>
    %cst_152 = arith.constant dense<0.000000e+00> : vector<1x64xf32>
    %141 = tpu.matmul %138, %140, %cst_152 {dimension_numbers = #tpu.dot_dimension_numbers<[1], [0], [0], [1], [0, 0, 1, 1], [], []>} : vector<1x64xf32>, vector<64x64xf32>, vector<1x64xf32> -> vector<1x64xf32>
    %142 = arith.addf %137, %141 : vector<1x64xf32>
    %c12 = arith.constant 12 : index
    %c0_153 = arith.constant 0 : index
    %143 = vector.load %arg16[%c12, %c0_153] : memref<28x64xf32, #tpu.memory_space<vmem>>, vector<1x64xf32>
    %c12_154 = arith.constant 12 : index
    %c0_155 = arith.constant 0 : index
    %c0_156 = arith.constant 0 : index
    %144 = vector.load %arg10[%c12_154, %c0_155, %c0_156] : memref<28x64x64xf32, #tpu.memory_space<vmem>>, vector<1x64x64xf32>
    %145 = vector.shape_cast %144 : vector<1x64x64xf32> to vector<64x64xf32>
    %cst_157 = arith.constant dense<0.000000e+00> : vector<1x64xf32>
    %146 = tpu.matmul %143, %145, %cst_157 {dimension_numbers = #tpu.dot_dimension_numbers<[1], [0], [0], [1], [0, 0, 1, 1], [], []>} : vector<1x64xf32>, vector<64x64xf32>, vector<1x64xf32> -> vector<1x64xf32>
    %147 = arith.addf %142, %146 : vector<1x64xf32>
    %c13 = arith.constant 13 : index
    %c0_158 = arith.constant 0 : index
    %148 = vector.load %arg16[%c13, %c0_158] : memref<28x64xf32, #tpu.memory_space<vmem>>, vector<1x64xf32>
    %c13_159 = arith.constant 13 : index
    %c0_160 = arith.constant 0 : index
    %c0_161 = arith.constant 0 : index
    %149 = vector.load %arg10[%c13_159, %c0_160, %c0_161] : memref<28x64x64xf32, #tpu.memory_space<vmem>>, vector<1x64x64xf32>
    %150 = vector.shape_cast %149 : vector<1x64x64xf32> to vector<64x64xf32>
    %cst_162 = arith.constant dense<0.000000e+00> : vector<1x64xf32>
    %151 = tpu.matmul %148, %150, %cst_162 {dimension_numbers = #tpu.dot_dimension_numbers<[1], [0], [0], [1], [0, 0, 1, 1], [], []>} : vector<1x64xf32>, vector<64x64xf32>, vector<1x64xf32> -> vector<1x64xf32>
    %152 = arith.addf %147, %151 : vector<1x64xf32>
    %c14 = arith.constant 14 : index
    %c0_163 = arith.constant 0 : index
    %153 = vector.load %arg16[%c14, %c0_163] : memref<28x64xf32, #tpu.memory_space<vmem>>, vector<1x64xf32>
    %c14_164 = arith.constant 14 : index
    %c0_165 = arith.constant 0 : index
    %c0_166 = arith.constant 0 : index
    %154 = vector.load %arg10[%c14_164, %c0_165, %c0_166] : memref<28x64x64xf32, #tpu.memory_space<vmem>>, vector<1x64x64xf32>
    %155 = vector.shape_cast %154 : vector<1x64x64xf32> to vector<64x64xf32>
    %cst_167 = arith.constant dense<0.000000e+00> : vector<1x64xf32>
    %156 = tpu.matmul %153, %155, %cst_167 {dimension_numbers = #tpu.dot_dimension_numbers<[1], [0], [0], [1], [0, 0, 1, 1], [], []>} : vector<1x64xf32>, vector<64x64xf32>, vector<1x64xf32> -> vector<1x64xf32>
    %157 = arith.addf %152, %156 : vector<1x64xf32>
    %c15 = arith.constant 15 : index
    %c0_168 = arith.constant 0 : index
    %158 = vector.load %arg16[%c15, %c0_168] : memref<28x64xf32, #tpu.memory_space<vmem>>, vector<1x64xf32>
    %c15_169 = arith.constant 15 : index
    %c0_170 = arith.constant 0 : index
    %c0_171 = arith.constant 0 : index
    %159 = vector.load %arg10[%c15_169, %c0_170, %c0_171] : memref<28x64x64xf32, #tpu.memory_space<vmem>>, vector<1x64x64xf32>
    %160 = vector.shape_cast %159 : vector<1x64x64xf32> to vector<64x64xf32>
    %cst_172 = arith.constant dense<0.000000e+00> : vector<1x64xf32>
    %161 = tpu.matmul %158, %160, %cst_172 {dimension_numbers = #tpu.dot_dimension_numbers<[1], [0], [0], [1], [0, 0, 1, 1], [], []>} : vector<1x64xf32>, vector<64x64xf32>, vector<1x64xf32> -> vector<1x64xf32>
    %162 = arith.addf %157, %161 : vector<1x64xf32>
    %c16 = arith.constant 16 : index
    %c0_173 = arith.constant 0 : index
    %163 = vector.load %arg16[%c16, %c0_173] : memref<28x64xf32, #tpu.memory_space<vmem>>, vector<1x64xf32>
    %c16_174 = arith.constant 16 : index
    %c0_175 = arith.constant 0 : index
    %c0_176 = arith.constant 0 : index
    %164 = vector.load %arg10[%c16_174, %c0_175, %c0_176] : memref<28x64x64xf32, #tpu.memory_space<vmem>>, vector<1x64x64xf32>
    %165 = vector.shape_cast %164 : vector<1x64x64xf32> to vector<64x64xf32>
    %cst_177 = arith.constant dense<0.000000e+00> : vector<1x64xf32>
    %166 = tpu.matmul %163, %165, %cst_177 {dimension_numbers = #tpu.dot_dimension_numbers<[1], [0], [0], [1], [0, 0, 1, 1], [], []>} : vector<1x64xf32>, vector<64x64xf32>, vector<1x64xf32> -> vector<1x64xf32>
    %167 = arith.addf %162, %166 : vector<1x64xf32>
    %c17 = arith.constant 17 : index
    %c0_178 = arith.constant 0 : index
    %168 = vector.load %arg16[%c17, %c0_178] : memref<28x64xf32, #tpu.memory_space<vmem>>, vector<1x64xf32>
    %c17_179 = arith.constant 17 : index
    %c0_180 = arith.constant 0 : index
    %c0_181 = arith.constant 0 : index
    %169 = vector.load %arg10[%c17_179, %c0_180, %c0_181] : memref<28x64x64xf32, #tpu.memory_space<vmem>>, vector<1x64x64xf32>
    %170 = vector.shape_cast %169 : vector<1x64x64xf32> to vector<64x64xf32>
    %cst_182 = arith.constant dense<0.000000e+00> : vector<1x64xf32>
    %171 = tpu.matmul %168, %170, %cst_182 {dimension_numbers = #tpu.dot_dimension_numbers<[1], [0], [0], [1], [0, 0, 1, 1], [], []>} : vector<1x64xf32>, vector<64x64xf32>, vector<1x64xf32> -> vector<1x64xf32>
    %172 = arith.addf %167, %171 : vector<1x64xf32>
    %c18 = arith.constant 18 : index
    %c0_183 = arith.constant 0 : index
    %173 = vector.load %arg16[%c18, %c0_183] : memref<28x64xf32, #tpu.memory_space<vmem>>, vector<1x64xf32>
    %c18_184 = arith.constant 18 : index
    %c0_185 = arith.constant 0 : index
    %c0_186 = arith.constant 0 : index
    %174 = vector.load %arg10[%c18_184, %c0_185, %c0_186] : memref<28x64x64xf32, #tpu.memory_space<vmem>>, vector<1x64x64xf32>
    %175 = vector.shape_cast %174 : vector<1x64x64xf32> to vector<64x64xf32>
    %cst_187 = arith.constant dense<0.000000e+00> : vector<1x64xf32>
    %176 = tpu.matmul %173, %175, %cst_187 {dimension_numbers = #tpu.dot_dimension_numbers<[1], [0], [0], [1], [0, 0, 1, 1], [], []>} : vector<1x64xf32>, vector<64x64xf32>, vector<1x64xf32> -> vector<1x64xf32>
    %177 = arith.addf %172, %176 : vector<1x64xf32>
    %c19 = arith.constant 19 : index
    %c0_188 = arith.constant 0 : index
    %178 = vector.load %arg16[%c19, %c0_188] : memref<28x64xf32, #tpu.memory_space<vmem>>, vector<1x64xf32>
    %c19_189 = arith.constant 19 : index
    %c0_190 = arith.constant 0 : index
    %c0_191 = arith.constant 0 : index
    %179 = vector.load %arg10[%c19_189, %c0_190, %c0_191] : memref<28x64x64xf32, #tpu.memory_space<vmem>>, vector<1x64x64xf32>
    %180 = vector.shape_cast %179 : vector<1x64x64xf32> to vector<64x64xf32>
    %cst_192 = arith.constant dense<0.000000e+00> : vector<1x64xf32>
    %181 = tpu.matmul %178, %180, %cst_192 {dimension_numbers = #tpu.dot_dimension_numbers<[1], [0], [0], [1], [0, 0, 1, 1], [], []>} : vector<1x64xf32>, vector<64x64xf32>, vector<1x64xf32> -> vector<1x64xf32>
    %182 = arith.addf %177, %181 : vector<1x64xf32>
    %c20 = arith.constant 20 : index
    %c0_193 = arith.constant 0 : index
    %183 = vector.load %arg16[%c20, %c0_193] : memref<28x64xf32, #tpu.memory_space<vmem>>, vector<1x64xf32>
    %c20_194 = arith.constant 20 : index
    %c0_195 = arith.constant 0 : index
    %c0_196 = arith.constant 0 : index
    %184 = vector.load %arg10[%c20_194, %c0_195, %c0_196] : memref<28x64x64xf32, #tpu.memory_space<vmem>>, vector<1x64x64xf32>
    %185 = vector.shape_cast %184 : vector<1x64x64xf32> to vector<64x64xf32>
    %cst_197 = arith.constant dense<0.000000e+00> : vector<1x64xf32>
    %186 = tpu.matmul %183, %185, %cst_197 {dimension_numbers = #tpu.dot_dimension_numbers<[1], [0], [0], [1], [0, 0, 1, 1], [], []>} : vector<1x64xf32>, vector<64x64xf32>, vector<1x64xf32> -> vector<1x64xf32>
    %187 = arith.addf %182, %186 : vector<1x64xf32>
    %c21 = arith.constant 21 : index
    %c0_198 = arith.constant 0 : index
    %188 = vector.load %arg16[%c21, %c0_198] : memref<28x64xf32, #tpu.memory_space<vmem>>, vector<1x64xf32>
    %c21_199 = arith.constant 21 : index
    %c0_200 = arith.constant 0 : index
    %c0_201 = arith.constant 0 : index
    %189 = vector.load %arg10[%c21_199, %c0_200, %c0_201] : memref<28x64x64xf32, #tpu.memory_space<vmem>>, vector<1x64x64xf32>
    %190 = vector.shape_cast %189 : vector<1x64x64xf32> to vector<64x64xf32>
    %cst_202 = arith.constant dense<0.000000e+00> : vector<1x64xf32>
    %191 = tpu.matmul %188, %190, %cst_202 {dimension_numbers = #tpu.dot_dimension_numbers<[1], [0], [0], [1], [0, 0, 1, 1], [], []>} : vector<1x64xf32>, vector<64x64xf32>, vector<1x64xf32> -> vector<1x64xf32>
    %192 = arith.addf %187, %191 : vector<1x64xf32>
    %c22 = arith.constant 22 : index
    %c0_203 = arith.constant 0 : index
    %193 = vector.load %arg16[%c22, %c0_203] : memref<28x64xf32, #tpu.memory_space<vmem>>, vector<1x64xf32>
    %c22_204 = arith.constant 22 : index
    %c0_205 = arith.constant 0 : index
    %c0_206 = arith.constant 0 : index
    %194 = vector.load %arg10[%c22_204, %c0_205, %c0_206] : memref<28x64x64xf32, #tpu.memory_space<vmem>>, vector<1x64x64xf32>
    %195 = vector.shape_cast %194 : vector<1x64x64xf32> to vector<64x64xf32>
    %cst_207 = arith.constant dense<0.000000e+00> : vector<1x64xf32>
    %196 = tpu.matmul %193, %195, %cst_207 {dimension_numbers = #tpu.dot_dimension_numbers<[1], [0], [0], [1], [0, 0, 1, 1], [], []>} : vector<1x64xf32>, vector<64x64xf32>, vector<1x64xf32> -> vector<1x64xf32>
    %197 = arith.addf %192, %196 : vector<1x64xf32>
    %c23 = arith.constant 23 : index
    %c0_208 = arith.constant 0 : index
    %198 = vector.load %arg16[%c23, %c0_208] : memref<28x64xf32, #tpu.memory_space<vmem>>, vector<1x64xf32>
    %c23_209 = arith.constant 23 : index
    %c0_210 = arith.constant 0 : index
    %c0_211 = arith.constant 0 : index
    %199 = vector.load %arg10[%c23_209, %c0_210, %c0_211] : memref<28x64x64xf32, #tpu.memory_space<vmem>>, vector<1x64x64xf32>
    %200 = vector.shape_cast %199 : vector<1x64x64xf32> to vector<64x64xf32>
    %cst_212 = arith.constant dense<0.000000e+00> : vector<1x64xf32>
    %201 = tpu.matmul %198, %200, %cst_212 {dimension_numbers = #tpu.dot_dimension_numbers<[1], [0], [0], [1], [0, 0, 1, 1], [], []>} : vector<1x64xf32>, vector<64x64xf32>, vector<1x64xf32> -> vector<1x64xf32>
    %202 = arith.addf %197, %201 : vector<1x64xf32>
    %c24 = arith.constant 24 : index
    %c0_213 = arith.constant 0 : index
    %203 = vector.load %arg16[%c24, %c0_213] : memref<28x64xf32, #tpu.memory_space<vmem>>, vector<1x64xf32>
    %c24_214 = arith.constant 24 : index
    %c0_215 = arith.constant 0 : index
    %c0_216 = arith.constant 0 : index
    %204 = vector.load %arg10[%c24_214, %c0_215, %c0_216] : memref<28x64x64xf32, #tpu.memory_space<vmem>>, vector<1x64x64xf32>
    %205 = vector.shape_cast %204 : vector<1x64x64xf32> to vector<64x64xf32>
    %cst_217 = arith.constant dense<0.000000e+00> : vector<1x64xf32>
    %206 = tpu.matmul %203, %205, %cst_217 {dimension_numbers = #tpu.dot_dimension_numbers<[1], [0], [0], [1], [0, 0, 1, 1], [], []>} : vector<1x64xf32>, vector<64x64xf32>, vector<1x64xf32> -> vector<1x64xf32>
    %207 = arith.addf %202, %206 : vector<1x64xf32>
    %c25 = arith.constant 25 : index
    %c0_218 = arith.constant 0 : index
    %208 = vector.load %arg16[%c25, %c0_218] : memref<28x64xf32, #tpu.memory_space<vmem>>, vector<1x64xf32>
    %c25_219 = arith.constant 25 : index
    %c0_220 = arith.constant 0 : index
    %c0_221 = arith.constant 0 : index
    %209 = vector.load %arg10[%c25_219, %c0_220, %c0_221] : memref<28x64x64xf32, #tpu.memory_space<vmem>>, vector<1x64x64xf32>
    %210 = vector.shape_cast %209 : vector<1x64x64xf32> to vector<64x64xf32>
    %cst_222 = arith.constant dense<0.000000e+00> : vector<1x64xf32>
    %211 = tpu.matmul %208, %210, %cst_222 {dimension_numbers = #tpu.dot_dimension_numbers<[1], [0], [0], [1], [0, 0, 1, 1], [], []>} : vector<1x64xf32>, vector<64x64xf32>, vector<1x64xf32> -> vector<1x64xf32>
    %212 = arith.addf %207, %211 : vector<1x64xf32>
    %c26 = arith.constant 26 : index
    %c0_223 = arith.constant 0 : index
    %213 = vector.load %arg16[%c26, %c0_223] : memref<28x64xf32, #tpu.memory_space<vmem>>, vector<1x64xf32>
    %c26_224 = arith.constant 26 : index
    %c0_225 = arith.constant 0 : index
    %c0_226 = arith.constant 0 : index
    %214 = vector.load %arg10[%c26_224, %c0_225, %c0_226] : memref<28x64x64xf32, #tpu.memory_space<vmem>>, vector<1x64x64xf32>
    %215 = vector.shape_cast %214 : vector<1x64x64xf32> to vector<64x64xf32>
    %cst_227 = arith.constant dense<0.000000e+00> : vector<1x64xf32>
    %216 = tpu.matmul %213, %215, %cst_227 {dimension_numbers = #tpu.dot_dimension_numbers<[1], [0], [0], [1], [0, 0, 1, 1], [], []>} : vector<1x64xf32>, vector<64x64xf32>, vector<1x64xf32> -> vector<1x64xf32>
    %217 = arith.addf %212, %216 : vector<1x64xf32>
    %c27 = arith.constant 27 : index
    %c0_228 = arith.constant 0 : index
    %218 = vector.load %arg16[%c27, %c0_228] : memref<28x64xf32, #tpu.memory_space<vmem>>, vector<1x64xf32>
    %c27_229 = arith.constant 27 : index
    %c0_230 = arith.constant 0 : index
    %c0_231 = arith.constant 0 : index
    %219 = vector.load %arg10[%c27_229, %c0_230, %c0_231] : memref<28x64x64xf32, #tpu.memory_space<vmem>>, vector<1x64x64xf32>
    %220 = vector.shape_cast %219 : vector<1x64x64xf32> to vector<64x64xf32>
    %cst_232 = arith.constant dense<0.000000e+00> : vector<1x64xf32>
    %221 = tpu.matmul %218, %220, %cst_232 {dimension_numbers = #tpu.dot_dimension_numbers<[1], [0], [0], [1], [0, 0, 1, 1], [], []>} : vector<1x64xf32>, vector<64x64xf32>, vector<1x64xf32> -> vector<1x64xf32>
    %222 = arith.addf %217, %221 : vector<1x64xf32>
    %c0_233 = arith.constant 0 : index
    %c0_234 = arith.constant 0 : index
    %223 = vector.load %arg12[%c0_233, %c0_234] : memref<64x2xf32, #tpu.memory_space<vmem>>, vector<64x2xf32>
    %cst_235 = arith.constant dense<0.000000e+00> : vector<1x2xf32>
    %224 = tpu.matmul %222, %223, %cst_235 {dimension_numbers = #tpu.dot_dimension_numbers<[1], [0], [0], [1], [0, 0, 1, 1], [], []>} : vector<1x64xf32>, vector<64x2xf32>, vector<1x2xf32> -> vector<1x2xf32>
    %c0_236 = arith.constant 0 : index
    %c0_237 = arith.constant 0 : index
    %225 = vector.load %arg13[%c0_236, %c0_237] : memref<1x2xf32, #tpu.memory_space<vmem>>, vector<1x2xf32>
    %226 = arith.addf %224, %225 : vector<1x2xf32>
    %cst_238 = arith.constant dense<0xFF800000> : vector<1xf32>
    %227 = vector.multi_reduction <maximumf>, %226, %cst_238 [1] : vector<1x2xf32> to vector<1xf32>
    %228 = vector.shape_cast %227 : vector<1xf32> to vector<1x1xf32>
    %229 = vector.broadcast %228 : vector<1x1xf32> to vector<1x2xf32>
    %230 = arith.subf %226, %229 : vector<1x2xf32>
    %231 = math.exp %230 : vector<1x2xf32>
    %cst_239 = arith.constant dense<0.000000e+00> : vector<1xf32>
    %232 = vector.multi_reduction <add>, %231, %cst_239 [1] : vector<1x2xf32> to vector<1xf32>
    %233 = vector.shape_cast %232 : vector<1xf32> to vector<1x1xf32>
    %234 = vector.broadcast %233 : vector<1x1xf32> to vector<1x2xf32>
    %235 = arith.divf %231, %234 : vector<1x2xf32>
    %c0_240 = arith.constant 0 : index
    %c0_241 = arith.constant 0 : index
    %c0_242 = arith.constant 0 : index
    %236 = vector.load %arg14[%c0_240, %c0_241, %c0_242] : memref<1x1x2xf32, #tpu.memory_space<vmem>>, vector<1x1x2xf32>
    %237 = vector.shape_cast %236 : vector<1x1x2xf32> to vector<1x2xf32>
    %238 = vector.shape_cast %235 : vector<1x2xf32> to vector<1x1x2xf32>
    tpu.vector_store %arg14[%c0_240, %c0_241, %c0_242], %238 {strides = array<i32>} : memref<1x1x2xf32, #tpu.memory_space<vmem>>, vector<1x1x2xf32>,
    return
  }
  func.func @transform_0(%arg0: i32) -> (i32, i32, i32) {
    %c0_i32 = arith.constant 0 : i32
    %c0_i32_0 = arith.constant 0 : i32
    %c0_i32_1 = arith.constant 0 : i32
    return %arg0, %c0_i32, %c0_i32_0 : i32, i32, i32
  }
  func.func @transform_1(%arg0: i32) -> (i32, i32, i32) {
    %c0_i32 = arith.constant 0 : i32
    %c0_i32_0 = arith.constant 0 : i32
    %c0_i32_1 = arith.constant 0 : i32
    %c0_i32_2 = arith.constant 0 : i32
    return %c0_i32, %c0_i32_0, %c0_i32_1 : i32, i32, i32
  }
  func.func @transform_2(%arg0: i32) -> (i32, i32) {
    %c0_i32 = arith.constant 0 : i32
    %c0_i32_0 = arith.constant 0 : i32
    %c0_i32_1 = arith.constant 0 : i32
    return %c0_i32, %c0_i32_0 : i32, i32
  }
  func.func @transform_3(%arg0: i32) -> (i32, i32) {
    %c0_i32 = arith.constant 0 : i32
    %c0_i32_0 = arith.constant 0 : i32
    %c0_i32_1 = arith.constant 0 : i32
    return %c0_i32, %c0_i32_0 : i32, i32
  }
  func.func @transform_4(%arg0: i32) -> (i32, i32) {
    %c0_i32 = arith.constant 0 : i32
    %c0_i32_0 = arith.constant 0 : i32
    %c0_i32_1 = arith.constant 0 : i32
    return %c0_i32, %c0_i32_0 : i32, i32
  }
  func.func @transform_5(%arg0: i32) -> (i32, i32) {
    %c0_i32 = arith.constant 0 : i32
    %c0_i32_0 = arith.constant 0 : i32
    %c0_i32_1 = arith.constant 0 : i32
    return %c0_i32, %c0_i32_0 : i32, i32
  }
  func.func @transform_6(%arg0: i32) -> (i32, i32, i32) {
    %c0_i32 = arith.constant 0 : i32
    %c0_i32_0 = arith.constant 0 : i32
    %c0_i32_1 = arith.constant 0 : i32
    %c0_i32_2 = arith.constant 0 : i32
    return %c0_i32, %c0_i32_0, %c0_i32_1 : i32, i32, i32
  }
  func.func @transform_7(%arg0: i32) -> (i32, i32) {
    %c0_i32 = arith.constant 0 : i32
    %c0_i32_0 = arith.constant 0 : i32
    %c0_i32_1 = arith.constant 0 : i32
    return %c0_i32, %c0_i32_0 : i32, i32
  }
  func.func @transform_8(%arg0: i32) -> (i32, i32) {
    %c0_i32 = arith.constant 0 : i32
    %c0_i32_0 = arith.constant 0 : i32
    %c0_i32_1 = arith.constant 0 : i32
    return %c0_i32, %c0_i32_0 : i32, i32
  }
  func.func @transform_9(%arg0: i32) -> (i32, i32, i32) {
    %c0_i32 = arith.constant 0 : i32
    %c0_i32_0 = arith.constant 0 : i32
    %c0_i32_1 = arith.constant 0 : i32
    %c0_i32_2 = arith.constant 0 : i32
    return %c0_i32, %c0_i32_0, %c0_i32_1 : i32, i32, i32
  }
  func.func @transform_10(%arg0: i32) -> (i32, i32) {
    %c0_i32 = arith.constant 0 : i32
    %c0_i32_0 = arith.constant 0 : i32
    %c0_i32_1 = arith.constant 0 : i32
    return %c0_i32, %c0_i32_0 : i32, i32
  }
  func.func @transform_11(%arg0: i32) -> (i32, i32) {
    %c0_i32 = arith.constant 0 : i32
    %c0_i32_0 = arith.constant 0 : i32
    %c0_i32_1 = arith.constant 0 : i32
    return %c0_i32, %c0_i32_0 : i32, i32
  }
  func.func @transform_12(%arg0: i32) -> (i32, i32) {
    %c0_i32 = arith.constant 0 : i32
    %c0_i32_0 = arith.constant 0 : i32
    %c0_i32_1 = arith.constant 0 : i32
    return %c0_i32, %c0_i32_0 : i32, i32
  }
  func.func @transform_13(%arg0: i32) -> (i32, i32, i32) {
    %c0_i32 = arith.constant 0 : i32
    %c0_i32_0 = arith.constant 0 : i32
    %c0_i32_1 = arith.constant 0 : i32
    return %arg0, %c0_i32, %c0_i32_0 : i32, i32, i32
  }
}

</mosaic_0001>

<bundles_post_ra>
// kernel: imc_gender_conv_forward.1
= control target key start
LH: loop header
LB: loop body
LE: loop exit
PB: predicated region body
PF: predicated region fallthrough
CT: control target
= control target key end

     0   :  { %s9857_s0 = inlined_call_operand.vmem [shape: f32[2,125,6], index: 0, kind: input, shape index: {}]   ;;  %s9858_s1 = inlined_call_operand.vmem [shape: f32[6,6,64], index: 1, kind: input, shape index: {}]   ;;  %s9859_s2 = inlined_call_operand.vmem [shape: f32[1,64], index: 2, kind: input, shape index: {}]   ;;  %s9860_s3 = inlined_call_operand.vmem [shape: f32[1,64], index: 3, kind: input, shape index: {}]   ;;  %s9861_s4 = inlined_call_operand.vmem [shape: f32[1,64], index: 4, kind: input, shape index: {}]   ;;  %s9862_s5 = inlined_call_operand.vmem [shape: f32[60,120], index: 5, kind: input, shape index: {}]   ;;  %s9863_s6 = inlined_call_operand.vmem [shape: f32[5,64,64], index: 6, kind: input, shape index: {}]   ;;  %s9864_s7 = inlined_call_operand.vmem [shape: f32[1,64], index: 7, kind: input, shape index: {}]   ;;  %s9865_s8 = inlined_call_operand.vmem [shape: f32[28,56], index: 8, kind: input, shape index: {}]   ;;  %s9866_s9 = inlined_call_operand.vmem [shape: f32[28,64,64], index: 9, kind: input, shape index: {}]   ;;  %s9867_s10 = inlined_call_operand.vmem [shape: f32[1,64], index: 10, kind: input, shape index: {}]   ;;  %s9868_s11 = inlined_call_operand.vmem [shape: f32[64,2], index: 11, kind: input, shape index: {}]   ;;  %s9869_s12 = inlined_call_operand.vmem [shape: f32[1,2], index: 12, kind: input, shape index: {}]   ;;  %s9870_s13 = inlined_call_operand.hbm [shape: f32[2,1,2], index: 13, kind: output, shape index: {}]  }
   0x1   :  { %9871 = sst [smem:[#allocation7_spill]] %s9857_s0 }
   0x2   :  { %9872 = sst [smem:[#allocation8_spill]] %s9858_s1 }
   0x3   :  { %9873 = sst [smem:[#allocation9_spill]] %s9859_s2 }
   0x4   :  { %18 = vsyncpa [#allocation5], 0 }
   0x5   :  { %20 = vsyncpa [#allocation5 + $0x1], 0  ;;  %s7983_s25 = smov 0   ;;  %s7985_s26 = smov 0  }
   0x6   :  { %s7987_s27 = smov 0   ;;  %s7989_s28 = smov 0  }
   0x7 LB: > { %s8004_s29 = sadd.s32 4294967295, %s7907_s28   ;;  %s5295_s30 = sadd.s32 4294967294, %s7907_s28   ;;  %s7907_s28 = sphi %s7989_s28, %s9882_s28   ;;  %s7903_s27 = sphi %s7987_s27, %s9881_s27   ;;  %s7899_s26 = sphi %s7985_s26, %s9880_s26   ;;  %s7895_s25 = sphi %s7983_s25, %s9879_s25  }
   0x8   : > { %s8008_s14 = sadd.s32 1, %s7907_s28   ;;  %s311_s15 = sadd.s32 1, %s7903_s27 }
   0x9   : > { %s308_s16 = ssub.s32 %s7907_s28, %s8008_s14  ;;  %p321_p0 = scmp.ne.s32.totalorder %s7903_s27, %s7899_s26 }
   0xa   : > { %p309_p1 = scmp.eq.s32.totalorder %s308_s16, 0  ;;  %p322_p2 = scmp.eq.s32.totalorder %s8004_s29, 1 }
   0xb   : > { %p327_p3 = scmp.ne.s32.totalorder %s7899_s26, %s7895_s25  ;;  %p328_p4 = scmp.eq.s32.totalorder %s5295_s30, 1 }
   0xc   : > { %s8019_s17 = scalar_select %p309_p1, %s7903_s27, %s311_s15  }
   0xd   : > { %p8021_p5 = por %p322_p2, %p321_p0  ;;  %p8025_p6 = por %p328_p4, %p327_p3 }
   0xe   : > { %p5298_p7 = scmp.ge.s32.totalorder %s7907_s28, 1  ;;  %p390_p8 = scmp.lt.s32.totalorder %s7907_s28, 3 }
  0x10   : > { %p391_p9 = pnand %p5298_p7, %p390_p8 }
  0x11   : > { %s9876_s1 = sld [smem:[#allocation8_spill]] (!%p391_p9)  ;;  %vm517_vm0 = vcmask (!%p391_p9), 1045504   ;;  %p433_p10 = scmp.lt.s32.totalorder (!%p391_p9), %s8004_s29, 1  ;;  %v7909_v1 = vmov (!%p391_p9), 0.0   ;;  %vm7910_vm1 = vmmov (!%p391_p9), 0   ;;  %vm471_vm2 = vcmask (!%p391_p9), 48128  }
  0x12   : > { %394 = sbr.rel (%p391_p9) target bundleno = 2575 (0xa0f), region = 72  ;;  %6200 = vmatprep.subr.mxu0 (!%p391_p9), %v7909_v1  ;;  %6202 = vmatprep.mubr.msk.f32.mxu0 (!%p391_p9), %vm7910_vm1, %v7909_v1  ;;  %s9877_s0 = sld [smem:[#allocation7_spill]] (!%p391_p9)  ;;  %vm1774_vm3 = vcmask (!%p391_p9), 982016   ;;  %vm1934_vm4 = vcmask (!%p391_p9), 523264   ;;  %vm1942_vm5 = vcmask (!%p391_p9), 519168   ;;  %vm2674_vm6 = vcmask (!%p391_p9), 457728  }
  0x13   : > { %6614 = vmatprep.mubr.msk.f32.mxu1 (!%p391_p9), %vm7910_vm1, %v7909_v1  ;;  %s9878_s2 = sld [smem:[#allocation9_spill]] (!%p391_p9)  ;;  %vm5214_vm7 = vcmask (!%p391_p9), 8192   ;;  %s431_s24 = sand.u32 (!%p391_p9), 1, %s7899_s26  }
  0x14   : > { %s5730_s30 = sshll.u32 (!%p391_p9), %s8004_s29, 4 }
  0x15   : > { %s9814_s21 = scalar_lea.hbm (!%p391_p9), %s9870_s13, %s5730_s30 }
  0x17   : > { %v5301_v0 = vld [vmem:[%s9876_s1 + $0x8] sm:$0x3f] (!%p391_p9)  ;;  %v453_v2 = vld [vmem:[%s9876_s1] sm:$0x3f] (!%p391_p9)  ;;  %v5334_v19 = vld [vmem:[%s9876_s1 + $0x10] sm:$0x3f] (!%p391_p9) }
  0x18   : > { %6201 = vmatpush3.msk.msra.mxu0 (!%p391_p9), %vm517_vm0, %v5301_v0  ;;  %v5351_v35 = vld [vmem:[%s9876_s1 + $0x18] sm:$0x3f] (!%p391_p9)  ;;  %v5368_v51 = vld [vmem:[%s9876_s1 + $0x20] sm:$0x3f] (!%p391_p9) }
  0x19   : > { %s434_s22 = scalar_select %p433_p10, %s8004_s29, 1  ;;  %6247 = vmatprep.subr.mxu0 %v7909_v1 }
  0x1a   : > { %s7912_s29 = smov [#allocation4]  }
  0x1b   : > { %s5733_s23 = sshll.u32 %s434_s22, 7 }
  0x1c   : > { %s8046_s15 = scalar_lea.vmem %s9877_s0, %s5733_s23  ;;  %s7849_s23 = sshll.u32 %s7912_s29, 4  ;;  %s7850_s23 = int_to_ptr.vmem [resolvable:$false] %s7849_s23 }
  0x1d   : > { %v454_v3 = vld [vmem:[%s8046_s15 + $0x1] sm:$0xff]  ;;  %v455_v4 = vld [vmem:[%s8046_s15 + $0x9] sm:$0xff]  ;;  %v456_v5 = vld [vmem:[%s8046_s15 + $0x11] sm:$0xff] }
  0x1e   : > { %6203 = vmatmul.mubr.msk.f32.vlgmr.msra.gmra.mrb[0].mxu0 %vm471_vm2, %v454_v3  ;;  %v457_v6 = vld [vmem:[%s8046_s15 + $0x19] sm:$0xff]  ;;  %v458_v7 = vld [vmem:[%s8046_s15 + $0x21] sm:$0xff]  ;;  %v459_v8 = vld [vmem:[%s8046_s15 + $0x29] sm:$0xff] }
  0x1f   : > { %6205 = vmatprep.mubr.msk.f32.mxu0 %vm7910_vm1, %v7909_v1  ;;  %6248 = vmatpush3.msk.msra.mxu0 %vm517_vm0, %v453_v2  ;;  %v460_v9 = vld [vmem:[%s8046_s15 + $0x31] sm:$0xff]  ;;  %v461_v10 = vld [vmem:[%s8046_s15 + $0x39] sm:$0xff]  ;;  %v462_v11 = vld [vmem:[%s8046_s15 + $0x41] sm:$0xff] }
  0x20   : > { %6294 = vmatprep.subr.mxu0 %v7909_v1  ;;  %v463_v12 = vld [vmem:[%s8046_s15 + $0x49] sm:$0xff]  ;;  %v464_v13 = vld [vmem:[%s8046_s15 + $0x51] sm:$0xff]  ;;  %v465_v14 = vld [vmem:[%s8046_s15 + $0x59] sm:$0xff] }
  0x21   : > { %v466_v15 = vld [vmem:[%s8046_s15 + $0x61] sm:$0xff]  ;;  %v467_v16 = vld [vmem:[%s8046_s15 + $0x69] sm:$0xff]  ;;  %v468_v17 = vld [vmem:[%s8046_s15 + $0x71] sm:$0xff] }
  0x22   : > { %6206 = vmatmul.mubr.msk.f32.gmra.mrb[2].mxu0 %vm471_vm2, %v455_v4  ;;  %v438_v18 = vld [vmem:[%s8046_s15] sm:$0xff]  ;;  %v439_v20 = vld [vmem:[%s8046_s15 + $0x8] sm:$0xff]  ;;  %v440_v21 = vld [vmem:[%s8046_s15 + $0x10] sm:$0xff] }
  0x23   : > { %6208 = vmatprep.mubr.msk.f32.mxu0 %vm7910_vm1, %v7909_v1  ;;  %v441_v22 = vld [vmem:[%s8046_s15 + $0x18] sm:$0xff]  ;;  %v442_v23 = vld [vmem:[%s8046_s15 + $0x20] sm:$0xff]  ;;  %v443_v24 = vld [vmem:[%s8046_s15 + $0x28] sm:$0xff] }
  0x24   : > { %v444_v25 = vld [vmem:[%s8046_s15 + $0x30] sm:$0xff]  ;;  %v445_v26 = vld [vmem:[%s8046_s15 + $0x38] sm:$0xff]  ;;  %v446_v27 = vld [vmem:[%s8046_s15 + $0x40] sm:$0xff] }
  0x25   : > { %v447_v28 = vld [vmem:[%s8046_s15 + $0x48] sm:$0xff]  ;;  %v448_v29 = vld [vmem:[%s8046_s15 + $0x50] sm:$0xff]  ;;  %v449_v30 = vld [vmem:[%s8046_s15 + $0x58] sm:$0xff] }
  0x26   : > { %6209 = vmatmul.mubr.msk.f32.gmra.mrb[4].mxu0 %vm471_vm2, %v456_v5  ;;  %v450_v31 = vld [vmem:[%s8046_s15 + $0x60] sm:$0xff]  ;;  %v451_v32 = vld [vmem:[%s8046_s15 + $0x68] sm:$0xff]  ;;  %v452_v33 = vld [vmem:[%s8046_s15 + $0x70] sm:$0xff] }
  0x27   : > { %6211 = vmatprep.mubr.msk.f32.mxu0 %vm7910_vm1, %v7909_v1  ;;  %v849_v34 = vld [vmem:[%s8046_s15 + $0x2] sm:$0xff]  ;;  %v850_v36 = vld [vmem:[%s8046_s15 + $0xa] sm:$0xff]  ;;  %v851_v37 = vld [vmem:[%s8046_s15 + $0x12] sm:$0xff] }
  0x28   : > { %v852_v38 = vld [vmem:[%s8046_s15 + $0x1a] sm:$0xff]  ;;  %v853_v39 = vld [vmem:[%s8046_s15 + $0x22] sm:$0xff]  ;;  %v854_v40 = vld [vmem:[%s8046_s15 + $0x2a] sm:$0xff] }
  0x29   : > { %v855_v41 = vld [vmem:[%s8046_s15 + $0x32] sm:$0xff]  ;;  %v856_v42 = vld [vmem:[%s8046_s15 + $0x3a] sm:$0xff]  ;;  %v857_v43 = vld [vmem:[%s8046_s15 + $0x42] sm:$0xff] }
  0x2a   : > { %6212 = vmatmul.mubr.msk.f32.gmra.mrb[6].mxu0 %vm471_vm2, %v457_v6  ;;  %v858_v44 = vld [vmem:[%s8046_s15 + $0x4a] sm:$0xff]  ;;  %v859_v45 = vld [vmem:[%s8046_s15 + $0x52] sm:$0xff]  ;;  %v860_v46 = vld [vmem:[%s8046_s15 + $0x5a] sm:$0xff] }
  0x2b   : > { %6214 = vmatprep.mubr.msk.f32.mxu0 %vm7910_vm1, %v7909_v1  ;;  %v861_v47 = vld [vmem:[%s8046_s15 + $0x62] sm:$0xff]  ;;  %v862_v48 = vld [vmem:[%s8046_s15 + $0x6a] sm:$0xff]  ;;  %v863_v49 = vld [vmem:[%s8046_s15 + $0x72] sm:$0xff] }
  0x2c   : > { %v1069_v50 = vld [vmem:[%s8046_s15 + $0x3] sm:$0xff]  ;;  %v1070_v52 = vld [vmem:[%s8046_s15 + $0xb] sm:$0xff]  ;;  %v1071_v53 = vld [vmem:[%s8046_s15 + $0x13] sm:$0xff] }
  0x2d   : > { %v1072_v54 = vld [vmem:[%s8046_s15 + $0x1b] sm:$0xff]  ;;  %v1073_v55 = vld [vmem:[%s8046_s15 + $0x23] sm:$0xff]  ;;  %v1074_v56 = vld [vmem:[%s8046_s15 + $0x2b] sm:$0xff] }
  0x2e   : > { %6215 = vmatmul.mubr.msk.f32.gmra.mrb[8].mxu0 %vm471_vm2, %v458_v7  ;;  %v1075_v57 = vld [vmem:[%s8046_s15 + $0x33] sm:$0xff]  ;;  %v1076_v58 = vld [vmem:[%s8046_s15 + $0x3b] sm:$0xff]  ;;  %v1077_v59 = vld [vmem:[%s8046_s15 + $0x43] sm:$0xff] }
  0x2f   : > { %6217 = vmatprep.mubr.msk.f32.mxu0 %vm7910_vm1, %v7909_v1  ;;  %v1078_v62 = vld [vmem:[%s8046_s15 + $0x4b] sm:$0xff]  ;;  %v1079_v2 = vld [vmem:[%s8046_s15 + $0x53] sm:$0xff]  ;;  %v1080_v5 = vld [vmem:[%s8046_s15 + $0x5b] sm:$0xff] }
  0x32   : > { %6218 = vmatmul.mubr.msk.f32.gmra.mrb[10].mxu0 %vm471_vm2, %v459_v8  ;;  %v1081_v8 = vld [vmem:[%s8046_s15 + $0x63] sm:$0xff] }
  0x33   : > { %6220 = vmatprep.mubr.msk.f32.mxu0 %vm7910_vm1, %v7909_v1 }
  0x36   : > { %6221 = vmatmul.mubr.msk.f32.gmra.mrb[12].mxu0 %vm471_vm2, %v460_v9 }
  0x37   : > { %6223 = vmatprep.mubr.msk.f32.mxu0 %vm7910_vm1, %v7909_v1 }
  0x3a   : > { %6224 = vmatmul.mubr.msk.f32.gmra.mrb[14].mxu0 %vm471_vm2, %v461_v10 }
  0x3b   : > { %6226 = vmatprep.mubr.msk.f32.mxu0 %vm7910_vm1, %v7909_v1 }
  0x3e   : > { %6227 = vmatmul.mubr.msk.f32.gmra.mrb[16].mxu0 %vm471_vm2, %v462_v11  ;;  %v1082_v11 = vld [vmem:[%s8046_s15 + $0x6b] sm:$0xff] }
  0x3f   : > { %6229 = vmatprep.mubr.msk.f32.mxu0 %vm7910_vm1, %v7909_v1 }
  0x42   : > { %6230 = vmatmul.mubr.msk.f32.gmra.mrb[18].mxu0 %vm471_vm2, %v463_v12 }
  0x43   : > { %6232 = vmatprep.mubr.msk.f32.mxu0 %vm7910_vm1, %v7909_v1 }
  0x46   : > { %6233 = vmatmul.mubr.msk.f32.gmra.mrb[20].mxu0 %vm471_vm2, %v464_v13 }
  0x47   : > { %6235 = vmatprep.mubr.msk.f32.mxu0 %vm7910_vm1, %v7909_v1 }
  0x4a   : > { %6236 = vmatmul.mubr.msk.f32.gmra.mrb[22].mxu0 %vm471_vm2, %v465_v14  ;;  %v1083_v14 = vld [vmem:[%s8046_s15 + $0x73] sm:$0xff] }
  0x4b   : > { %6238 = vmatprep.mubr.msk.f32.mxu0 %vm7910_vm1, %v7909_v1 }
  0x4e   : > { %6239 = vmatmul.mubr.msk.f32.gmra.mrb[24].mxu0 %vm471_vm2, %v466_v15 }
  0x4f   : > { %6241 = vmatprep.mubr.msk.f32.mxu0 %vm7910_vm1, %v7909_v1 }
  0x52   : > { %6242 = vmatmul.mubr.msk.f32.gmra.mrb[26].mxu0 %vm471_vm2, %v467_v16 }
  0x53   : > { %6244 = vmatprep.mubr.msk.f32.mxu0 %vm7910_vm1, %v7909_v1 }
  0x56   : > { %6245 = vmatmul.mubr.msk.f32.gmra.mrb[28].mxu0 %vm471_vm2, %v468_v17  ;;  %v1289_v17 = vld [vmem:[%s8046_s15 + $0x4] sm:$0xff] }
  0x57   : > { %6249 = vmatprep.mubr.msk.f32.mxu0 %vm7910_vm1, %v7909_v1 }
  0x5a   : > { %6250 = vmatmul.mubr.msk.f32.vlgmr.msra.gmra.mrb[30].mxu0 %vm471_vm2, %v438_v18  ;;  %v5385_v18 = vld [vmem:[%s9876_s1 + $0x28] sm:$0x3f]  ;;  %s432_s1 = scalar_lea.vmem [#allocation4], %s431_s24 }
  0x5b   : > { %6252 = vmatprep.mubr.msk.f32.mxu0 %vm7910_vm1, %v7909_v1  ;;  %6295 = vmatpush3.msk.msra.mxu0 %vm517_vm0, %v5334_v19  ;;  %s5240_s0 = sshll.u32 %s432_s1, 4  ;;  %s9816_s0 = int_to_ptr.vmem [resolvable:$true] %s5240_s0 }
  0x5c   : > { %6341 = vmatprep.subr.mxu0 %v7909_v1  ;;  %s7845_s22 = scalar_lea.vmem %s9816_s0, 16  ;;  %p7852_p0 = scmp.lt.s32.totalorder %s9816_s0, %s7850_s23 }
  0x5d   : > { %p7846_p11 = scmp.ne.s32.totalorder %s9816_s0, %s7845_s22 }
  0x5e   : > { %6253 = vmatmul.mubr.msk.f32.gmra.mrb[32].mxu0 %vm471_vm2, %v439_v20 }
  0x5f   : > { %6255 = vmatprep.mubr.msk.f32.mxu0 %vm7910_vm1, %v7909_v1  ;;  %p7847_p12 = pnand %p7846_p11, %p8021_p5 }
  0x61   : > { %p7848_p13 = pneg %p7847_p12 }
  0x62   : > { %6256 = vmatmul.mubr.msk.f32.gmra.mrb[34].mxu0 %vm471_vm2, %v440_v21  ;;  %v1290_v21 = vld [vmem:[%s8046_s15 + $0xc] sm:$0xff] }
  0x63   : > { %6258 = vmatprep.mubr.msk.f32.mxu0 %vm7910_vm1, %v7909_v1 }
  0x66   : > { %6259 = vmatmul.mubr.msk.f32.gmra.mrb[36].mxu0 %vm471_vm2, %v441_v22 }
  0x67   : > { %6261 = vmatprep.mubr.msk.f32.mxu0 %vm7910_vm1, %v7909_v1 }
  0x6a   : > { %6262 = vmatmul.mubr.msk.f32.gmra.mrb[38].mxu0 %vm471_vm2, %v442_v23 }
  0x6b   : > { %6264 = vmatprep.mubr.msk.f32.mxu0 %vm7910_vm1, %v7909_v1 }
  0x6e   : > { %6265 = vmatmul.mubr.msk.f32.gmra.mrb[40].mxu0 %vm471_vm2, %v443_v24  ;;  %v1291_v24 = vld [vmem:[%s8046_s15 + $0x14] sm:$0xff] }
  0x6f   : > { %6267 = vmatprep.mubr.msk.f32.mxu0 %vm7910_vm1, %v7909_v1 }
  0x72   : > { %6268 = vmatmul.mubr.msk.f32.gmra.mrb[42].mxu0 %vm471_vm2, %v444_v25 }
  0x73   : > { %6270 = vmatprep.mubr.msk.f32.mxu0 %vm7910_vm1, %v7909_v1 }
  0x76   : > { %6271 = vmatmul.mubr.msk.f32.gmra.mrb[44].mxu0 %vm471_vm2, %v445_v26 }
  0x77   : > { %6273 = vmatprep.mubr.msk.f32.mxu0 %vm7910_vm1, %v7909_v1 }
  0x7a   : > { %6274 = vmatmul.mubr.msk.f32.gmra.mrb[46].mxu0 %vm471_vm2, %v446_v27  ;;  %v1292_v27 = vld [vmem:[%s8046_s15 + $0x1c] sm:$0xff] }
  0x7b   : > { %6276 = vmatprep.mubr.msk.f32.mxu0 %vm7910_vm1, %v7909_v1 }
  0x7e   : > { %6277 = vmatmul.mubr.msk.f32.gmra.mrb[48].mxu0 %vm471_vm2, %v447_v28 }
  0x7f   : > { %6279 = vmatprep.mubr.msk.f32.mxu0 %vm7910_vm1, %v7909_v1 }
  0x82   : > { %6280 = vmatmul.mubr.msk.f32.gmra.mrb[50].mxu0 %vm471_vm2, %v448_v29 }
  0x83   : > { %6282 = vmatprep.mubr.msk.f32.mxu0 %vm7910_vm1, %v7909_v1 }
  0x86   : > { %6283 = vmatmul.mubr.msk.f32.gmra.mrb[52].mxu0 %vm471_vm2, %v449_v30  ;;  %v1293_v30 = vld [vmem:[%s8046_s15 + $0x24] sm:$0xff] }
  0x87   : > { %6285 = vmatprep.mubr.msk.f32.mxu0 %vm7910_vm1, %v7909_v1 }
  0x8a   : > { %6286 = vmatmul.mubr.msk.f32.gmra.mrb[54].mxu0 %vm471_vm2, %v450_v31 }
  0x8b   : > { %6288 = vmatprep.mubr.msk.f32.mxu0 %vm7910_vm1, %v7909_v1 }
  0x8e   : > { %6289 = vmatmul.mubr.msk.f32.gmra.mrb[56].mxu0 %vm471_vm2, %v451_v32 }
  0x8f   : > { %6291 = vmatprep.mubr.msk.f32.mxu0 %vm7910_vm1, %v7909_v1 }
  0x92   : > { %6292 = vmatmul.mubr.msk.f32.gmra.mrb[58].mxu0 %vm471_vm2, %v452_v33  ;;  %v1294_v33 = vld [vmem:[%s8046_s15 + $0x2c] sm:$0xff] }
  0x93   : > { %6296 = vmatprep.mubr.msk.f32.mxu0 %vm7910_vm1, %v7909_v1 }
  0x96   : > { %6297 = vmatmul.mubr.msk.f32.vlgmr.msra.gmra.mrb[60].mxu0 %vm471_vm2, %v849_v34 }
  0x97   : > { %6299 = vmatprep.mubr.msk.f32.mxu0 %vm7910_vm1, %v7909_v1  ;;  %6342 = vmatpush3.msk.msra.mxu0 %vm517_vm0, %v5351_v35 }
  0x98   : > { %6388 = vmatprep.subr.mxu0 %v7909_v1 }
  0x9a   : > { %6300 = vmatmul.mubr.msk.f32.gmra.mrb[62].mxu0 %vm471_vm2, %v850_v36  ;;  %v1295_v36 = vld [vmem:[%s8046_s15 + $0x34] sm:$0xff] }
  0x9b   : > { %6302 = vmatprep.mubr.msk.f32.mxu0 %vm7910_vm1, %v7909_v1 }
  0x9e   : > { %6303 = vmatmul.mubr.msk.f32.gmra.mrb[64].mxu0 %vm471_vm2, %v851_v37 }
  0x9f   : > { %6305 = vmatprep.mubr.msk.f32.mxu0 %vm7910_vm1, %v7909_v1 }
  0xa2   : > { %6306 = vmatmul.mubr.msk.f32.gmra.mrb[66].mxu0 %vm471_vm2, %v852_v38 }
  0xa3   : > { %6308 = vmatprep.mubr.msk.f32.mxu0 %vm7910_vm1, %v7909_v1 }
  0xa6   : > { %6309 = vmatmul.mubr.msk.f32.gmra.mrb[68].mxu0 %vm471_vm2, %v853_v39  ;;  %v1296_v39 = vld [vmem:[%s8046_s15 + $0x3c] sm:$0xff] }
  0xa7   : > { %6311 = vmatprep.mubr.msk.f32.mxu0 %vm7910_vm1, %v7909_v1 }
  0xaa   : > { %6312 = vmatmul.mubr.msk.f32.gmra.mrb[70].mxu0 %vm471_vm2, %v854_v40 }
  0xab   : > { %6314 = vmatprep.mubr.msk.f32.mxu0 %vm7910_vm1, %v7909_v1 }
  0xae   : > { %6315 = vmatmul.mubr.msk.f32.gmra.mrb[72].mxu0 %vm471_vm2, %v855_v41 }
  0xaf   : > { %6317 = vmatprep.mubr.msk.f32.mxu0 %vm7910_vm1, %v7909_v1 }
  0xb2   : > { %6318 = vmatmul.mubr.msk.f32.gmra.mrb[74].mxu0 %vm471_vm2, %v856_v42  ;;  %v1297_v42 = vld [vmem:[%s8046_s15 + $0x44] sm:$0xff] }
  0xb3   : > { %6320 = vmatprep.mubr.msk.f32.mxu0 %vm7910_vm1, %v7909_v1 }
  0xb6   : > { %6321 = vmatmul.mubr.msk.f32.gmra.mrb[76].mxu0 %vm471_vm2, %v857_v43 }
  0xb7   : > { %6323 = vmatprep.mubr.msk.f32.mxu0 %vm7910_vm1, %v7909_v1 }
  0xba   : > { %6324 = vmatmul.mubr.msk.f32.gmra.mrb[78].mxu0 %vm471_vm2, %v858_v44 }
  0xbb   : > { %6326 = vmatprep.mubr.msk.f32.mxu0 %vm7910_vm1, %v7909_v1 }
  0xbe   : > { %6327 = vmatmul.mubr.msk.f32.gmra.mrb[80].mxu0 %vm471_vm2, %v859_v45 }
  0xbf   : > { %6329 = vmatprep.mubr.msk.f32.mxu0 %vm7910_vm1, %v7909_v1 }
  0xc2   : > { %6330 = vmatmul.mubr.msk.f32.gmra.mrb[82].mxu0 %vm471_vm2, %v860_v46  ;;  %v1298_v46 = vld [vmem:[%s8046_s15 + $0x4c] sm:$0xff] }
  0xc3   : > { %6332 = vmatprep.mubr.msk.f32.mxu0 %vm7910_vm1, %v7909_v1 }
  0xc6   : > { %6333 = vmatmul.mubr.msk.f32.gmra.mrb[84].mxu0 %vm471_vm2, %v861_v47 }
  0xc7   : > { %6335 = vmatprep.mubr.msk.f32.mxu0 %vm7910_vm1, %v7909_v1 }
  0xca   : > { %6336 = vmatmul.mubr.msk.f32.gmra.mrb[86].mxu0 %vm471_vm2, %v862_v48 }
  0xcb   : > { %6338 = vmatprep.mubr.msk.f32.mxu0 %vm7910_vm1, %v7909_v1 }
  0xce   : > { %6339 = vmatmul.mubr.msk.f32.gmra.mrb[88].mxu0 %vm471_vm2, %v863_v49 }
  0xcf   : > { %6343 = vmatprep.mubr.msk.f32.mxu0 %vm7910_vm1, %v7909_v1 }
  0xd2   : > { %6344 = vmatmul.mubr.msk.f32.vlgmr.msra.gmra.mrb[90].mxu0 %vm471_vm2, %v1069_v50  ;;  %v1299_v50 = vld [vmem:[%s8046_s15 + $0x54] sm:$0xff] }
  0xd3   : > { %6346 = vmatprep.mubr.msk.f32.mxu0 %vm7910_vm1, %v7909_v1  ;;  %6389 = vmatpush3.msk.msra.mxu0 %vm517_vm0, %v5368_v51 }
  0xd4   : > { %6435 = vmatprep.subr.mxu0 %v7909_v1 }
  0xd6   : > { %6347 = vmatmul.mubr.msk.f32.gmra.mrb[92].mxu0 %vm471_vm2, %v1070_v52 }
  0xd7   : > { %6349 = vmatprep.mubr.msk.f32.mxu0 %vm7910_vm1, %v7909_v1 }
  0xda   : > { %6350 = vmatmul.mubr.msk.f32.gmra.mrb[94].mxu0 %vm471_vm2, %v1071_v53 }
  0xdb   : > { %6352 = vmatprep.mubr.msk.f32.mxu0 %vm7910_vm1, %v7909_v1 }
  0xde   : > { %6353 = vmatmul.mubr.msk.f32.gmra.mrb[96].mxu0 %vm471_vm2, %v1072_v54  ;;  %v1300_v54 = vld [vmem:[%s8046_s15 + $0x5c] sm:$0xff] }
  0xdf   : > { %6355 = vmatprep.mubr.msk.f32.mxu0 %vm7910_vm1, %v7909_v1 }
  0xe2   : > { %6356 = vmatmul.mubr.msk.f32.gmra.mrb[98].mxu0 %vm471_vm2, %v1073_v55 }
  0xe3   : > { %6358 = vmatprep.mubr.msk.f32.mxu0 %vm7910_vm1, %v7909_v1 }
  0xe6   : > { %6359 = vmatmul.mubr.msk.f32.gmra.mrb[100].mxu0 %vm471_vm2, %v1074_v56 }
  0xe7   : > { %6361 = vmatprep.mubr.msk.f32.mxu0 %vm7910_vm1, %v7909_v1 }
  0xea   : > { %6362 = vmatmul.mubr.msk.f32.gmra.mrb[102].mxu0 %vm471_vm2, %v1075_v57 }
  0xeb   : > { %6364 = vmatprep.mubr.msk.f32.mxu0 %vm7910_vm1, %v7909_v1 }
  0xee   : > { %6365 = vmatmul.mubr.msk.f32.gmra.mrb[104].mxu0 %vm471_vm2, %v1076_v58  ;;  %v1301_v58 = vld [vmem:[%s8046_s15 + $0x64] sm:$0xff] }
  0xef   : > { %6367 = vmatprep.mubr.msk.f32.mxu0 %vm7910_vm1, %v7909_v1 }
  0xf1   : > { %v8281_v60 = vpop.f32.mrb[0].mxu0 }
  0xf2   : > { %v6204_v61 = vpop.f32.mrb[1].mxu0  ;;  %6368 = vmatmul.mubr.msk.f32.gmra.mrb[106].mxu0 %vm471_vm2, %v1077_v59 }
  0xf3   : > { %6370 = vmatprep.mubr.msk.f32.mxu0 %vm7910_vm1, %v7909_v1 }
  0xf5   : > { %v8287_v63 = vpop.f32.mrb[2].mxu0 }
  0xf6   : > { %v6207_v0 = vpop.f32.mrb[3].mxu0  ;;  %6371 = vmatmul.mubr.msk.f32.gmra.mrb[108].mxu0 %vm471_vm2, %v1078_v62  ;;  %v1302_v62 = vld [vmem:[%s8046_s15 + $0x6c] sm:$0xff] }
  0xf7   : > { %6373 = vmatprep.mubr.msk.f32.mxu0 %vm7910_vm1, %v7909_v1 }
  0xf9   : > { %v8293_v3 = vpop.f32.mrb[4].mxu0 }
  0xfa   : > { %v6210_v4 = vpop.f32.mrb[5].mxu0  ;;  %6374 = vmatmul.mubr.msk.f32.gmra.mrb[110].mxu0 %vm471_vm2, %v1079_v2 }
  0xfb   : > { %6376 = vmatprep.mubr.msk.f32.mxu0 %vm7910_vm1, %v7909_v1 }
  0xfd   : > { %v8299_v6 = vpop.f32.mrb[6].mxu0 }
  0xfe   : > { %v6213_v7 = vpop.f32.mrb[7].mxu0  ;;  %6377 = vmatmul.mubr.msk.f32.gmra.mrb[112].mxu0 %vm471_vm2, %v1080_v5 }
  0xff   : > { %6379 = vmatprep.mubr.msk.f32.mxu0 %vm7910_vm1, %v7909_v1  ;;  %v1509_v7 = vld [vmem:[%s8046_s15 + $0x5] sm:$0xff] }
 0x101   : > { %v8305_v9 = vpop.f32.mrb[8].mxu0 }
 0x102   : > { %v6216_v10 = vpop.f32.mrb[9].mxu0  ;;  %6380 = vmatmul.mubr.msk.f32.gmra.mrb[114].mxu0 %vm471_vm2, %v1081_v8 }
 0x103   : > { %6382 = vmatprep.mubr.msk.f32.mxu0 %vm7910_vm1, %v7909_v1 }
 0x105   : > { %v8311_v12 = vpop.f32.mrb[10].mxu0 }
 0x106   : > { %v6219_v13 = vpop.f32.mrb[11].mxu0  ;;  %6383 = vmatmul.mubr.msk.f32.gmra.mrb[116].mxu0 %vm471_vm2, %v1082_v11  ;;  %v1510_v11 = vld [vmem:[%s8046_s15 + $0xd] sm:$0xff] }
 0x107   : > { %6385 = vmatprep.mubr.msk.f32.mxu0 %vm7910_vm1, %v7909_v1 }
 0x109   : > { %v8317_v15 = vpop.f32.mrb[12].mxu0 }
 0x10a   : > { %v6222_v16 = vpop.f32.mrb[13].mxu0  ;;  %6386 = vmatmul.mubr.msk.f32.gmra.mrb[118].mxu0 %vm471_vm2, %v1083_v14 }
 0x10b   : > { %6390 = vmatprep.mubr.msk.f32.mxu0 %vm7910_vm1, %v7909_v1 }
 0x10d   : > { %v8326_v19 = vpop.f32.mrb[14].mxu0 }
 0x10e   : > { %v6225_v20 = vpop.f32.mrb[15].mxu0  ;;  %6391 = vmatmul.mubr.msk.f32.vlgmr.msra.gmra.mrb[120].mxu0 %vm471_vm2, %v1289_v17 }
 0x10f   : > { %6393 = vmatprep.mubr.msk.f32.mxu0 %vm7910_vm1, %v7909_v1  ;;  %6436 = vmatpush3.msk.msra.mxu0 %vm517_vm0, %v5385_v18 }
 0x111   : > { %v8333_v22 = vpop.f32.mrb[16].mxu0 }
 0x112   : > { %v6228_v23 = vpop.f32.mrb[17].mxu0  ;;  %6394 = vmatmul.mubr.msk.f32.gmra.mrb[122].mxu0 %vm471_vm2, %v1290_v21 }
 0x113   : > { %6396 = vmatprep.mubr.msk.f32.mxu0 %vm7910_vm1, %v7909_v1  ;;  %v1513_v23 = vld [vmem:[%s8046_s15 + $0x25] sm:$0xff] }
 0x115   : > { %v8339_v25 = vpop.f32.mrb[18].mxu0 }
 0x116   : > { %v6231_v26 = vpop.f32.mrb[19].mxu0  ;;  %6397 = vmatmul.mubr.msk.f32.gmra.mrb[124].mxu0 %vm471_vm2, %v1291_v24 }
 0x117   : > { %6399 = vmatprep.mubr.msk.f32.mxu0 %vm7910_vm1, %v7909_v1 }
 0x119   : > { %v8345_v28 = vpop.f32.mrb[20].mxu0 }
 0x11a   : > { %v6234_v29 = vpop.f32.mrb[21].mxu0  ;;  %6400 = vmatmul.mubr.msk.f32.gmra.mrb[126].mxu0 %vm471_vm2, %v1292_v27  ;;  %v1514_v27 = vld [vmem:[%s8046_s15 + $0x2d] sm:$0xff] }
 0x11b   : > { %6402 = vmatprep.mubr.msk.f32.mxu0 %vm7910_vm1, %v7909_v1 }
 0x11d   : > { %v8351_v31 = vpop.f32.mrb[22].mxu0 }
 0x11e   : > { %v6237_v32 = vpop.f32.mrb[23].mxu0  ;;  %6403 = vmatmul.mubr.msk.f32.gmra.mrb[128].mxu0 %vm471_vm2, %v1293_v30 }
 0x11f   : > { %6405 = vmatprep.mubr.msk.f32.mxu0 %vm7910_vm1, %v7909_v1 }
 0x121   : > { %v8357_v34 = vpop.f32.mrb[24].mxu0 }
 0x122   : > { %v6240_v35 = vpop.f32.mrb[25].mxu0  ;;  %6406 = vmatmul.mubr.msk.f32.gmra.mrb[130].mxu0 %vm471_vm2, %v1294_v33 }
 0x123   : > { %6408 = vmatprep.mubr.msk.f32.mxu0 %vm7910_vm1, %v7909_v1 }
 0x125   : > { %v8363_v37 = vpop.f32.mrb[26].mxu0 }
 0x126   : > { %v6243_v38 = vpop.f32.mrb[27].mxu0  ;;  %6409 = vmatmul.mubr.msk.f32.gmra.mrb[132].mxu0 %vm471_vm2, %v1295_v36 }
 0x127   : > { %6411 = vmatprep.mubr.msk.f32.mxu0 %vm7910_vm1, %v7909_v1 }
 0x129   : > { %v8369_v40 = vpop.f32.mrb[28].mxu0 }
 0x12a   : > { %v6246_v41 = vpop.f32.mrb[29].mxu0  ;;  %6412 = vmatmul.mubr.msk.f32.gmra.mrb[134].mxu0 %vm471_vm2, %v1296_v39 }
 0x12b   : > { %6414 = vmatprep.mubr.msk.f32.mxu0 %vm7910_vm1, %v7909_v1 }
 0x12d   : > { %v775_v43 = vpop.f32.mrb[30].mxu0 }
 0x12e   : > { %v8376_v44 = vadd.f32 %v775_v43, %v8281_v60  ;;  %v6251_v45 = vpop.f32.mrb[31].mxu0  ;;  %6415 = vmatmul.mubr.msk.f32.gmra.mrb[136].mxu0 %vm471_vm2, %v1297_v42 }
 0x12f   : > { %6417 = vmatprep.mubr.msk.f32.mxu0 %vm7910_vm1, %v7909_v1 }
 0x131   : > { %v780_v47 = vpop.f32.mrb[32].mxu0 }
 0x132   : > { %v8383_v48 = vadd.f32 %v780_v47, %v8287_v63  ;;  %v6254_v49 = vpop.f32.mrb[33].mxu0  ;;  %6418 = vmatmul.mubr.msk.f32.gmra.mrb[138].mxu0 %vm471_vm2, %v1298_v46 }
 0x133   : > { %6420 = vmatprep.mubr.msk.f32.mxu0 %vm7910_vm1, %v7909_v1 }
 0x135   : > { %v785_v51 = vpop.f32.mrb[34].mxu0 }
 0x136   : > { %v8390_v52 = vadd.f32 %v785_v51, %v8293_v3  ;;  %v6257_v53 = vpop.f32.mrb[35].mxu0  ;;  %6421 = vmatmul.mubr.msk.f32.gmra.mrb[140].mxu0 %vm471_vm2, %v1299_v50  ;;  %v1303_v3 = vld [vmem:[%s8046_s15 + $0x74] sm:$0xff] }
 0x137   : > { %6423 = vmatprep.mubr.msk.f32.mxu0 %vm7910_vm1, %v7909_v1  ;;  %v1520_v53 = vld [vmem:[%s8046_s15 + $0x5d] sm:$0xff] }
 0x139   : > { %v790_v55 = vpop.f32.mrb[36].mxu0 }
 0x13a   : > { %v8397_v56 = vadd.f32 %v790_v55, %v8299_v6  ;;  %v6260_v57 = vpop.f32.mrb[37].mxu0  ;;  %6424 = vmatmul.mubr.msk.f32.gmra.mrb[142].mxu0 %vm471_vm2, %v1300_v54 }
 0x13b   : > { %6426 = vmatprep.mubr.msk.f32.mxu0 %vm7910_vm1, %v7909_v1  ;;  %v1521_v57 = vld [vmem:[%s8046_s15 + $0x65] sm:$0xff] }
 0x13d   : > { %v795_v59 = vpop.f32.mrb[38].mxu0 }
 0x13e   : > { %v8404_v60 = vadd.f32 %v795_v59, %v8305_v9  ;;  %v6263_v61 = vpop.f32.mrb[39].mxu0  ;;  %6427 = vmatmul.mubr.msk.f32.gmra.mrb[144].mxu0 %vm471_vm2, %v1301_v58 }
 0x13f   : > { %6429 = vmatprep.mubr.msk.f32.mxu0 %vm7910_vm1, %v7909_v1  ;;  %v1522_v61 = vld [vmem:[%s8046_s15 + $0x6d] sm:$0xff] }
 0x141   : > { %v800_v63 = vpop.f32.mrb[40].mxu0 }
 0x142   : > { %v8411_v0 = vadd.f32 %v800_v63, %v8311_v12  ;;  %v6266_v2 = vpop.f32.mrb[41].mxu0  ;;  %6430 = vmatmul.mubr.msk.f32.gmra.mrb[146].mxu0 %vm471_vm2, %v1302_v62 }
 0x143   : > { %6432 = vmatprep.mubr.msk.f32.mxu0 %vm7910_vm1, %v7909_v1  ;;  %v1523_v2 = vld [vmem:[%s8046_s15 + $0x75] sm:$0xff] }
 0x145   : > { %v805_v4 = vpop.f32.mrb[42].mxu0 }
 0x146   : > { %v8418_v5 = vadd.f32 %v805_v4, %v8317_v15  ;;  %v6269_v6 = vpop.f32.mrb[43].mxu0  ;;  %6433 = vmatmul.mubr.msk.f32.gmra.mrb[148].mxu0 %vm471_vm2, %v1303_v3  ;;  %v1511_v15 = vld [vmem:[%s8046_s15 + $0x15] sm:$0xff] }
 0x147   : > { %6437 = vmatprep.mubr.msk.f32.mxu0 %vm7910_vm1, %v7909_v1 }
 0x149   : > { %v810_v8 = vpop.f32.mrb[44].mxu0 }
 0x14a   : > { %v8425_v9 = vadd.f32 %v810_v8, %v8326_v19  ;;  %v6272_v10 = vpop.f32.mrb[45].mxu0  ;;  %6438 = vmatmul.mubr.msk.f32.vlgmr.msra.gmra.mrb[150].mxu0 %vm471_vm2, %v1509_v7  ;;  %v1512_v19 = vld [vmem:[%s8046_s15 + $0x1d] sm:$0xff] }
 0x14b   : > { %6440 = vmatprep.mubr.msk.f32.mxu0 %vm7910_vm1, %v7909_v1 }
 0x14d   : > { %v815_v12 = vpop.f32.mrb[46].mxu0 }
 0x14e   : > { %v8432_v13 = vadd.f32 %v815_v12, %v8333_v22  ;;  %v6275_v14 = vpop.f32.mrb[47].mxu0  ;;  %6441 = vmatmul.mubr.msk.f32.gmra.mrb[152].mxu0 %vm471_vm2, %v1510_v11 }
 0x14f   : > { %6443 = vmatprep.mubr.msk.f32.mxu0 %vm7910_vm1, %v7909_v1 }
 0x151   : > { %v820_v16 = vpop.f32.mrb[48].mxu0 }
 0x152   : > { %v8439_v17 = vadd.f32 %v820_v16, %v8339_v25  ;;  %v6278_v18 = vpop.f32.mrb[49].mxu0  ;;  %6444 = vmatmul.mubr.msk.f32.gmra.mrb[154].mxu0 %vm471_vm2, %v1511_v15 }
 0x153   : > { %6446 = vmatprep.mubr.msk.f32.mxu0 %vm7910_vm1, %v7909_v1 }
 0x155   : > { %v825_v20 = vpop.f32.mrb[50].mxu0 }
 0x156   : > { %v8446_v21 = vadd.f32 %v825_v20, %v8345_v28  ;;  %v6281_v22 = vpop.f32.mrb[51].mxu0  ;;  %6447 = vmatmul.mubr.msk.f32.gmra.mrb[156].mxu0 %vm471_vm2, %v1512_v19 }
 0x157   : > { %6449 = vmatprep.mubr.msk.f32.mxu0 %vm7910_vm1, %v7909_v1 }
 0x159   : > { %v830_v24 = vpop.f32.mrb[52].mxu0 }
 0x15a   : > { %v8453_v25 = vadd.f32 %v830_v24, %v8351_v31  ;;  %v6284_v26 = vpop.f32.mrb[53].mxu0  ;;  %6450 = vmatmul.mubr.msk.f32.gmra.mrb[158].mxu0 %vm471_vm2, %v1513_v23  ;;  %v1515_v31 = vld [vmem:[%s8046_s15 + $0x35] sm:$0xff] }
 0x15b   : > { %6452 = vmatprep.mubr.msk.f32.mxu0 %vm7910_vm1, %v7909_v1 }
 0x15d   : > { %v835_v28 = vpop.f32.mrb[54].mxu0 }
 0x15e   : > { %v8460_v29 = vadd.f32 %v835_v28, %v8357_v34  ;;  %v6287_v30 = vpop.f32.mrb[55].mxu0  ;;  %6453 = vmatmul.mubr.msk.f32.gmra.mrb[160].mxu0 %vm471_vm2, %v1514_v27  ;;  %v1516_v34 = vld [vmem:[%s8046_s15 + $0x3d] sm:$0xff] }
 0x15f   : > { %6455 = vmatprep.mubr.msk.f32.mxu0 %vm7910_vm1, %v7909_v1 }
 0x161   : > { %v840_v32 = vpop.f32.mrb[56].mxu0 }
 0x162   : > { %v8467_v33 = vadd.f32 %v840_v32, %v8363_v37  ;;  %v6290_v35 = vpop.f32.mrb[57].mxu0  ;;  %6456 = vmatmul.mubr.msk.f32.gmra.mrb[162].mxu0 %vm471_vm2, %v1515_v31  ;;  %v1517_v37 = vld [vmem:[%s8046_s15 + $0x45] sm:$0xff] }
 0x163   : > { %6458 = vmatprep.mubr.msk.f32.mxu0 %vm7910_vm1, %v7909_v1 }
 0x165   : > { %v845_v36 = vpop.f32.mrb[58].mxu0 }
 0x166   : > { %v8474_v38 = vadd.f32 %v845_v36, %v8369_v40  ;;  %v6293_v39 = vpop.f32.mrb[59].mxu0  ;;  %6459 = vmatmul.mubr.msk.f32.gmra.mrb[164].mxu0 %vm471_vm2, %v1516_v34  ;;  %v1518_v40 = vld [vmem:[%s8046_s15 + $0x4d] sm:$0xff] }
 0x167   : > { %6461 = vmatprep.mubr.msk.f32.mxu0 %vm7910_vm1, %v7909_v1 }
 0x169   : > { %v980_v41 = vpop.f32.mrb[60].mxu0 }
 0x16a   : > { %v8481_v42 = vadd.f32 %v980_v41, %v8376_v44  ;;  %v6298_v43 = vpop.f32.mrb[61].mxu0  ;;  %6462 = vmatmul.mubr.msk.f32.gmra.mrb[166].mxu0 %vm471_vm2, %v1517_v37  ;;  %v1519_v44 = vld [vmem:[%s8046_s15 + $0x55] sm:$0xff]  ;;  %s5228_s15 = scalar_lea.sflag [#allocation5], %s431_s24 }
 0x16b   : > { %6464 = vmatprep.mubr.msk.f32.mxu0 %vm7910_vm1, %v7909_v1 }
 0x16d   : > { %v985_v45 = vpop.f32.mrb[62].mxu0 }
 0x16e   : > { %v1055_v46 = vadd.f32 %v985_v45, %v8383_v48  ;;  %v6301_v47 = vpop.f32.mrb[63].mxu0  ;;  %6465 = vmatmul.mubr.msk.f32.gmra.mrb[168].mxu0 %vm471_vm2, %v1518_v40 }
 0x16f   : > { %6467 = vmatprep.mubr.msk.f32.mxu0 %vm7910_vm1, %v7909_v1 }
 0x171   : > { %v990_v49 = vpop.f32.mrb[64].mxu0 }
 0x172   : > { %v1056_v50 = vadd.f32 %v990_v49, %v8390_v52  ;;  %v6304_v51 = vpop.f32.mrb[65].mxu0  ;;  %6468 = vmatmul.mubr.msk.f32.gmra.mrb[170].mxu0 %vm471_vm2, %v1519_v44 }
 0x173   : > { %6470 = vmatprep.mubr.msk.f32.mxu0 %vm7910_vm1, %v7909_v1 }
 0x175   : > { %v995_v48 = vpop.f32.mrb[66].mxu0 }
 0x176   : > { %v1057_v54 = vadd.f32 %v995_v48, %v8397_v56  ;;  %v6307_v55 = vpop.f32.mrb[67].mxu0  ;;  %6471 = vmatmul.mubr.msk.f32.gmra.mrb[172].mxu0 %vm471_vm2, %v1520_v53 }
 0x177   : > { %6473 = vmatprep.mubr.msk.f32.mxu0 %vm7910_vm1, %v7909_v1 }
 0x179   : > { %v1000_v52 = vpop.f32.mrb[68].mxu0 }
 0x17a   : > { %v1058_v58 = vadd.f32 %v1000_v52, %v8404_v60  ;;  %v6310_v59 = vpop.f32.mrb[69].mxu0  ;;  %6474 = vmatmul.mubr.msk.f32.gmra.mrb[174].mxu0 %vm471_vm2, %v1521_v57 }
 0x17b   : > { %6476 = vmatprep.mubr.msk.f32.mxu0 %vm7910_vm1, %v7909_v1 }
 0x17d   : > { %v1005_v62 = vpop.f32.mrb[70].mxu0 }
 0x17e   : > { %v1059_v56 = vadd.f32 %v1005_v62, %v8411_v0  ;;  %v6313_v63 = vpop.f32.mrb[71].mxu0  ;;  %6477 = vmatmul.mubr.msk.f32.gmra.mrb[176].mxu0 %vm471_vm2, %v1522_v61 }
 0x17f   : > { %6479 = vmatprep.mubr.msk.f32.mxu0 %vm7910_vm1, %v7909_v1 }
 0x181   : > { %v1010_v3 = vpop.f32.mrb[72].mxu0 }
 0x182   : > { %v1060_v60 = vadd.f32 %v1010_v3, %v8418_v5  ;;  %v6316_v4 = vpop.f32.mrb[73].mxu0  ;;  %6480 = vmatmul.mubr.msk.f32.gmra.mrb[178].mxu0 %vm471_vm2, %v1523_v2 }
 0x185   : > { %v1015_v6 = vpop.f32.mrb[74].mxu0 }
 0x186   : > { %v1061_v7 = vadd.f32 %v1015_v6, %v8425_v9  ;;  %v6319_v8 = vpop.f32.mrb[75].mxu0 }
 0x189   : > { %v1020_v10 = vpop.f32.mrb[76].mxu0 }
 0x18a   : > { %v1062_v0 = vadd.f32 %v1020_v10, %v8432_v13  ;;  %v6322_v11 = vpop.f32.mrb[77].mxu0 }
 0x18d   : > { %v1025_v12 = vpop.f32.mrb[78].mxu0 }
 0x18e   : > { %v1063_v14 = vadd.f32 %v1025_v12, %v8439_v17  ;;  %v6325_v15 = vpop.f32.mrb[79].mxu0 }
 0x191   : > { %v1030_v16 = vpop.f32.mrb[80].mxu0 }
 0x192   : > { %v1064_v18 = vadd.f32 %v1030_v16, %v8446_v21  ;;  %v6328_v19 = vpop.f32.mrb[81].mxu0 }
 0x195   : > { %v1035_v5 = vpop.f32.mrb[82].mxu0 }
 0x196   : > { %v1065_v20 = vadd.f32 %v1035_v5, %v8453_v25  ;;  %v6331_v22 = vpop.f32.mrb[83].mxu0 }
 0x199   : > { %v1040_v23 = vpop.f32.mrb[84].mxu0 }
 0x19a   : > { %v1066_v9 = vadd.f32 %v1040_v23, %v8460_v29  ;;  %v6334_v24 = vpop.f32.mrb[85].mxu0 }
 0x19d   : > { %v1045_v26 = vpop.f32.mrb[86].mxu0 }
 0x19e   : > { %v1067_v13 = vadd.f32 %v1045_v26, %v8467_v33  ;;  %v6337_v27 = vpop.f32.mrb[87].mxu0  ;;  %v7911_v26 = vmov 0.0|0.0  }
 0x19f   : > { %7332 = vmatprep.subr.bf16.mxu1 %v7911_v26 }
 0x1a1   : > { %v1050_v28 = vpop.f32.mrb[88].mxu0 }
 0x1a2   : > { %v1068_v17 = vadd.f32 %v1050_v28, %v8474_v38  ;;  %v6340_v30 = vpop.f32.mrb[89].mxu0 }
 0x1a5   : > { %v1200_v31 = vpop.f32.mrb[90].mxu0 }
 0x1a6   : > { %v1274_v21 = vadd.f32 %v1200_v31, %v8481_v42  ;;  %v6345_v32 = vpop.f32.mrb[91].mxu0 }
 0x1a9   : > { %v1205_v35 = vpop.f32.mrb[92].mxu0 }
 0x1aa   : > { %v1275_v34 = vadd.f32 %v1205_v35, %v1055_v46  ;;  %v6348_v25 = vpop.f32.mrb[93].mxu0 }
 0x1ad   : > { %v1210_v36 = vpop.f32.mrb[94].mxu0 }
 0x1ae   : > { %v1276_v39 = vadd.f32 %v1210_v36, %v1056_v50  ;;  %v6351_v37 = vpop.f32.mrb[95].mxu0 }
 0x1b1   : > { %v1215_v29 = vpop.f32.mrb[96].mxu0 }
 0x1b2   : > { %v1277_v41 = vadd.f32 %v1215_v29, %v1057_v54  ;;  %v6354_v43 = vpop.f32.mrb[97].mxu0 }
 0x1b5   : > { %v1220_v40 = vpop.f32.mrb[98].mxu0 }
 0x1b6   : > { %v1278_v33 = vadd.f32 %v1220_v40, %v1058_v58  ;;  %v6357_v45 = vpop.f32.mrb[99].mxu0 }
 0x1b9   : > { %v1225_v47 = vpop.f32.mrb[100].mxu0 }
 0x1ba   : > { %v1279_v44 = vadd.f32 %v1225_v47, %v1059_v56  ;;  %v6360_v38 = vpop.f32.mrb[101].mxu0 }
 0x1bd   : > { %v1230_v49 = vpop.f32.mrb[102].mxu0 }
 0x1be   : > { %v1280_v51 = vadd.f32 %v1230_v49, %v1060_v60  ;;  %v6363_v53 = vpop.f32.mrb[103].mxu0 }
 0x1c1   : > { %v1235_v42 = vpop.f32.mrb[104].mxu0 }
 0x1c2   : > { %v1281_v48 = vadd.f32 %v1235_v42, %v1061_v7  ;;  %v6366_v55 = vpop.f32.mrb[105].mxu0 }
 0x1c5   : > { %v1240_v46 = vpop.f32.mrb[106].mxu0 }
 0x1c6   : > { %v1282_v57 = vadd.f32 %v1240_v46, %v1062_v0  ;;  %v6369_v52 = vpop.f32.mrb[107].mxu0  ;;  %v1766_v0 = vld [vmem:[%s9862_s5] sm:$0xff] }
 0x1c7   : > { %6512 = vmatprep.mubr.msk.f32.mxu0 %vm1774_vm3, %v1766_v0 }
 0x1c9   : > { %v1245_v50 = vpop.f32.mrb[108].mxu0 }
 0x1ca   : > { %v1283_v59 = vadd.f32 %v1245_v50, %v1063_v14  ;;  %v6372_v61 = vpop.f32.mrb[109].mxu0 }
 0x1cd   : > { %v1250_v54 = vpop.f32.mrb[110].mxu0 }
 0x1ce   : > { %v1284_v62 = vadd.f32 %v1250_v54, %v1064_v18  ;;  %v6375_v63 = vpop.f32.mrb[111].mxu0 }
 0x1d1   : > { %v1255_v58 = vpop.f32.mrb[112].mxu0 }
 0x1d2   : > { %v1285_v2 = vadd.f32 %v1255_v58, %v1065_v20  ;;  %v6378_v3 = vpop.f32.mrb[113].mxu0 }
 0x1d5   : > { %v1260_v56 = vpop.f32.mrb[114].mxu0 }
 0x1d6   : > { %v1286_v4 = vadd.f32 %v1260_v56, %v1066_v9  ;;  %v6381_v6 = vpop.f32.mrb[115].mxu0  ;;  %v5435_v9 = vld [vmem:[%s9863_s6 + $0x80] sm:$0xff] }
 0x1d9   : > { %v1265_v60 = vpop.f32.mrb[116].mxu0 }
 0x1da   : > { %v1287_v8 = vadd.f32 %v1265_v60, %v1067_v13  ;;  %v6384_v10 = vpop.f32.mrb[117].mxu0  ;;  %v5436_v13 = vld [vmem:[%s9863_s6 + $0x88] sm:$0xff] }
 0x1dd   : > { %v1270_v7 = vpop.f32.mrb[118].mxu0 }
 0x1de   : > { %v1288_v11 = vadd.f32 %v1270_v7, %v1068_v17  ;;  %v6387_v12 = vpop.f32.mrb[119].mxu0  ;;  %v7333_v17 = vpack.c.bf16 %v5436_v13, %v5435_v9 }
 0x1e0   : > { %7334 = vmatpush3.bf16.msra.mxu1 %v7333_v17 }
 0x1e1   : > { %v1420_v14 = vpop.f32.mrb[120].mxu0  ;;  %7335 = vmatprep.subr.bf16.mxu1 %v7911_v26 }
 0x1e2   : > { %v1494_v15 = vadd.f32 %v1420_v14, %v1274_v21  ;;  %v6392_v16 = vpop.f32.mrb[121].mxu0 }
 0x1e5   : > { %v1425_v18 = vpop.f32.mrb[122].mxu0 }
 0x1e6   : > { %v1495_v19 = vadd.f32 %v1425_v18, %v1275_v34  ;;  %v6395_v5 = vpop.f32.mrb[123].mxu0 }
 0x1e9   : > { %v1430_v20 = vpop.f32.mrb[124].mxu0 }
 0x1ea   : > { %v1496_v22 = vadd.f32 %v1430_v20, %v1276_v39  ;;  %v6398_v23 = vpop.f32.mrb[125].mxu0 }
 0x1ed   : > { %v1435_v24 = vpop.f32.mrb[126].mxu0 }
 0x1ee   : > { %v1497_v27 = vadd.f32 %v1435_v24, %v1277_v41  ;;  %v6401_v28 = vpop.f32.mrb[127].mxu0 }
 0x1f1   : > { %v1440_v30 = vpop.f32.mrb[128].mxu0 }
 0x1f2   : > { %v1498_v31 = vadd.f32 %v1440_v30, %v1278_v33  ;;  %v6404_v21 = vpop.f32.mrb[129].mxu0 }
 0x1f5   : > { %v1445_v32 = vpop.f32.mrb[130].mxu0 }
 0x1f6   : > { %v1499_v35 = vadd.f32 %v1445_v32, %v1279_v44  ;;  %v6407_v34 = vpop.f32.mrb[131].mxu0 }
 0x1f9   : > { %v1450_v25 = vpop.f32.mrb[132].mxu0 }
 0x1fa   : > { %v8535_v36 = vadd.f32 %v1450_v25, %v1280_v51  ;;  %v6410_v39 = vpop.f32.mrb[133].mxu0 }
 0x1fd   : > { %v1455_v37 = vpop.f32.mrb[134].mxu0 }
 0x1fe   : > { %v8537_v29 = vadd.f32 %v1455_v37, %v1281_v48  ;;  %v6413_v43 = vpop.f32.mrb[135].mxu0 }
 0x201   : > { %v1460_v41 = vpop.f32.mrb[136].mxu0 }
 0x202   : > { %v8539_v40 = vadd.f32 %v1460_v41, %v1282_v57  ;;  %v6416_v45 = vpop.f32.mrb[137].mxu0 }
 0x205   : > { %v1465_v47 = vpop.f32.mrb[138].mxu0 }
 0x206   : > { %v8541_v38 = vadd.f32 %v1465_v47, %v1283_v59  ;;  %v6419_v33 = vpop.f32.mrb[139].mxu0 }
 0x209   : > { %v1470_v49 = vpop.f32.mrb[140].mxu0 }
 0x20a   : > { %v8543_v53 = vadd.f32 %v1470_v49, %v1284_v62  ;;  %v6422_v44 = vpop.f32.mrb[141].mxu0 }
 0x20d   : > { %v1475_v42 = vpop.f32.mrb[142].mxu0 }
 0x20e   : > { %v8545_v51 = vadd.f32 %v1475_v42, %v1285_v2  ;;  %v6425_v55 = vpop.f32.mrb[143].mxu0  ;;  %v8556_v2 = vld [vmem:[%s9878_s2] ss:$0 sm:$0xff]  ;;  %s7851_s2 = scalar_lea.vmem %s7850_s23, 32 }
 0x20f   : > { %p7853_p1 = scmp.lt.s32.totalorder %s7851_s2, %s7845_s22 }
 0x211   : > { %v1480_v46 = vpop.f32.mrb[144].mxu0  ;;  %p7854_p2 = por %p7853_p1, %p7852_p0 }
 0x212   : > { %v8547_v48 = vadd.f32 %v1480_v46, %v1286_v4  ;;  %v6428_v52 = vpop.f32.mrb[145].mxu0 }
 0x213   : > { %p7855_p3 = pnand %p7854_p2, %p7848_p13 }
 0x215   : > { %v1485_v50 = vpop.f32.mrb[146].mxu0 }
 0x216   : > { %v8549_v57 = vadd.f32 %v1485_v50, %v1287_v8  ;;  %v6431_v61 = vpop.f32.mrb[147].mxu0 }
 0x219   : > { %v1490_v54 = vpop.f32.mrb[148].mxu0 }
 0x21a   : > { %v8551_v59 = vadd.f32 %v1490_v54, %v1288_v11  ;;  %v6434_v63 = vpop.f32.mrb[149].mxu0 }
 0x21d   : > { %v1640_v58 = vpop.f32.mrb[150].mxu0 }
 0x21e   : > { %v1714_v62 = vadd.f32 %v1640_v58, %v1494_v15  ;;  %v6439_v3 = vpop.f32.mrb[151].mxu0 }
 0x220   : > { %v1736_v4 = vadd.f32 %v8556_v2, %v1714_v62 }
 0x221   : > { %v1645_v56 = vpop.f32.mrb[152].mxu0 }
 0x222   : > { %v1715_v6 = vadd.f32 %v1645_v56, %v1495_v19  ;;  %v6442_v60 = vpop.f32.mrb[153].mxu0  ;;  %v1751_v7 = vmax.f32 %v1736_v4, 0.0 }
 0x224   : > { %v1737_v8 = vadd.f32 %v8556_v2, %v1715_v6 }
 0x225   : > { %v1650_v10 = vpop.f32.mrb[154].mxu0 }
 0x226   : > { %v1752_v11 = vmax.f32 %v1737_v8, 0.0  ;;  %v1716_v12 = vadd.f32 %v1650_v10, %v1496_v22  ;;  %v6445_v0 = vpop.f32.mrb[155].mxu0 }
 0x228   : > { %v7280_v14 = vpack.c.bf16 %v1752_v11, %v1751_v7  ;;  %v1738_v16 = vadd.f32 %v8556_v2, %v1716_v12 }
 0x229   : > { %v1655_v15 = vpop.f32.mrb[156].mxu0 }
 0x22a   : > { %v1717_v18 = vadd.f32 %v1655_v15, %v1497_v27  ;;  %v6448_v5 = vpop.f32.mrb[157].mxu0  ;;  %7281 = vmatprep.subr.bf16.mxu0 %v7280_v14  ;;  %v1753_v19 = vmax.f32 %v1738_v16, 0.0 }
 0x22b   : > { %7283 = vmatpush3.bf16.msra.mxu0 %v7280_v14 }
 0x22c   : > { %v1739_v20 = vadd.f32 %v8556_v2, %v1717_v18 }
 0x22d   : > { %v1660_v23 = vpop.f32.mrb[158].mxu0 }
 0x22e   : > { %v1754_v9 = vmax.f32 %v1739_v20, 0.0  ;;  %v1718_v24 = vadd.f32 %v1660_v23, %v1498_v31  ;;  %v6451_v13 = vpop.f32.mrb[159].mxu0 }
 0x22f   : > { %v5414_v13 = vld [vmem:[%s9863_s6 + $0x48] sm:$0xff] }
 0x230   : > { %v7284_v28 = vpack.c.bf16 %v1754_v9, %v1753_v19  ;;  %v1740_v22 = vadd.f32 %v8556_v2, %v1718_v24 }
 0x231   : > { %v1665_v17 = vpop.f32.mrb[160].mxu0 }
 0x232   : > { %v1719_v30 = vadd.f32 %v1665_v17, %v1499_v35  ;;  %v6454_v21 = vpop.f32.mrb[161].mxu0  ;;  %7285 = vmatprep.subr.bf16.mxu0 %v7284_v28  ;;  %v1755_v34 = vmax.f32 %v1740_v22, 0.0  ;;  %v1769_v17 = vld [vmem:[%s9862_s5 + $0x18] sm:$0xff]  ;;  %v1770_v22 = vld [vmem:[%s9862_s5 + $0x20] sm:$0xff] }
 0x233   : > { %7287 = vmatpush3.bf16.msra.mxu0 %v7284_v28  ;;  %v1772_v21 = vld [vmem:[%s9862_s5 + $0x30] sm:$0xff] }
 0x234   : > { %v1741_v27 = vadd.f32 %v8556_v2, %v1719_v30  ;;  %v1771_v30 = vld [vmem:[%s9862_s5 + $0x28] sm:$0xff] }
 0x235   : > { %v1670_v32 = vpop.f32.mrb[162].mxu0 }
 0x236   : > { %v1756_v25 = vmax.f32 %v1741_v27, 0.0  ;;  %v1720_v39 = vadd.f32 %v1670_v32, %v8535_v36  ;;  %v6457_v37 = vpop.f32.mrb[163].mxu0  ;;  %v1773_v27 = vld [vmem:[%s9862_s5 + $0x38] sm:$0xf]  ;;  %v5415_v32 = vld [vmem:[%s9863_s6 + $0x50] sm:$0xff] }
 0x237   : > { %v5438_v37 = vld [vmem:[%s9863_s6 + $0x98] sm:$0xff] }
 0x238   : > { %v7288_v43 = vpack.c.bf16 %v1756_v25, %v1755_v34  ;;  %v1742_v31 = vadd.f32 %v8556_v2, %v1720_v39  ;;  %v5416_v34 = vld [vmem:[%s9863_s6 + $0x58] sm:$0xff]  ;;  %v5437_v39 = vld [vmem:[%s9863_s6 + $0x90] sm:$0xff] }
 0x239   : > { %v1675_v41 = vpop.f32.mrb[164].mxu0  ;;  %v7312_v25 = vpack.c.bf16 %v5416_v34, %v5415_v32  ;;  %v5470_v34 = vld [vmem:[%s9863_s6 + $0x128] sm:$0xff] }
 0x23a   : > { %v1721_v45 = vadd.f32 %v1675_v41, %v8537_v29  ;;  %v6460_v47 = vpop.f32.mrb[165].mxu0  ;;  %7289 = vmatprep.subr.bf16.mxu0 %v7288_v43  ;;  %v1757_v49 = vmax.f32 %v1742_v31, 0.0  ;;  %v5417_v41 = vld [vmem:[%s9863_s6 + $0x60] sm:$0xff]  ;;  %v5418_v31 = vld [vmem:[%s9863_s6 + $0x68] sm:$0xff] }
 0x23b   : > { %7291 = vmatpush3.bf16.msra.mxu0 %v7288_v43  ;;  %v7336_v43 = vpack.c.bf16 %v5438_v37, %v5437_v39  ;;  %v7315_v47 = vpack.c.bf16 %v5418_v31, %v5417_v41  ;;  %v1957_v37 = vld [vmem:[%s9863_s6 + $0x30] sm:$0xff] }
 0x23c   : > { %v1743_v35 = vadd.f32 %v8556_v2, %v1721_v45  ;;  %v5439_v45 = vld [vmem:[%s9863_s6 + $0xa0] sm:$0xff]  ;;  %v5471_v41 = vld [vmem:[%s9863_s6 + $0x130] sm:$0xff] }
 0x23d   : > { %v1680_v33 = vpop.f32.mrb[166].mxu0  ;;  %7337 = vmatpush3.bf16.msra.mxu1 %v7336_v43  ;;  %v1958_v43 = vld [vmem:[%s9863_s6 + $0x38] sm:$0xff] }
 0x23e   : > { %v1758_v44 = vmax.f32 %v1743_v35, 0.0  ;;  %v1722_v42 = vadd.f32 %v1680_v33, %v8539_v40  ;;  %v6463_v55 = vpop.f32.mrb[167].mxu0  ;;  %7338 = vmatprep.subr.bf16.mxu1 %v7911_v26  ;;  %v5440_v35 = vld [vmem:[%s9863_s6 + $0xa8] sm:$0xff] }
 0x23f   : > { %v7339_v33 = vpack.c.bf16 %v5440_v35, %v5439_v45  ;;  %v7330_v35 = vpack.c.bf16 %v1958_v43, %v1957_v37 }
 0x240   : > { %v7292_v46 = vpack.c.bf16 %v1758_v44, %v1757_v49  ;;  %v1744_v52 = vadd.f32 %v8556_v2, %v1722_v42  ;;  %v5419_v49 = vld [vmem:[%s9863_s6 + $0x70] sm:$0xff]  ;;  %v5420_v44 = vld [vmem:[%s9863_s6 + $0x78] sm:$0xff] }
 0x241   : > { %v1685_v36 = vpop.f32.mrb[168].mxu0  ;;  %7340 = vmatpush3.bf16.msra.mxu1 %v7339_v33  ;;  %v5441_v42 = vld [vmem:[%s9863_s6 + $0xb0] sm:$0xff]  ;;  %v7318_v55 = vpack.c.bf16 %v5420_v44, %v5419_v49 }
 0x242   : > { %v1723_v50 = vadd.f32 %v1685_v36, %v8541_v38  ;;  %v6466_v61 = vpop.f32.mrb[169].mxu0  ;;  %7293 = vmatprep.subr.bf16.mxu0 %v7292_v46  ;;  %v1759_v63 = vmax.f32 %v1744_v52, 0.0  ;;  %7341 = vmatprep.subr.bf16.mxu1 %v7911_v26  ;;  %v5411_v52 = vld [vmem:[%s9860_s3] ss:$0 sm:$0xff] }
 0x243   : > { %7295 = vmatpush3.bf16.msra.mxu0 %v7292_v46  ;;  %v5442_v46 = vld [vmem:[%s9863_s6 + $0xb8] sm:$0xff]  ;;  %v5412_v61 = vld [vmem:[%s9861_s4] ss:$0 sm:$0xff] }
 0x244   : > { %v1745_v29 = vadd.f32 %v8556_v2, %v1723_v50  ;;  %v7342_v36 = vpack.c.bf16 %v5442_v46, %v5441_v42 }
 0x245   : > { %v1690_v54 = vpop.f32.mrb[170].mxu0 }
 0x246   : > { %v1760_v58 = vmax.f32 %v1745_v29, 0.0  ;;  %v1724_v62 = vadd.f32 %v1690_v54, %v8543_v53  ;;  %v6469_v3 = vpop.f32.mrb[171].mxu0  ;;  %7343 = vmatpush3.bf16.msra.mxu1 %v7342_v36 }
 0x247   : > { %7728 = vmatprep.subr.bf16.mxu1 %v7911_v26 }
 0x248   : > { %v7296_v56 = vpack.c.bf16 %v1760_v58, %v1759_v63  ;;  %v1746_v4 = vadd.f32 %v8556_v2, %v1724_v62 }
 0x249   : > { %v1695_v40 = vpop.f32.mrb[172].mxu0 }
 0x24a   : > { %v1725_v6 = vadd.f32 %v1695_v40, %v8545_v51  ;;  %v6472_v60 = vpop.f32.mrb[173].mxu0  ;;  %7297 = vmatprep.subr.bf16.mxu0 %v7296_v56  ;;  %v1761_v10 = vmax.f32 %v1746_v4, 0.0 }
 0x24b   : > { %7299 = vmatpush3.bf16.msra.mxu0 %v7296_v56 }
 0x24c   : > { %v1747_v38 = vadd.f32 %v8556_v2, %v1725_v6 }
 0x24d   : > { %v1700_v8 = vpop.f32.mrb[174].mxu0 }
 0x24e   : > { %v1762_v7 = vmax.f32 %v1747_v38, 0.0  ;;  %v1726_v11 = vadd.f32 %v1700_v8, %v8547_v48  ;;  %v6475_v12 = vpop.f32.mrb[175].mxu0  ;;  %v1951_v8 = vld [vmem:[%s9863_s6] sm:$0xff] }
 0x24f   : > { %v5465_v12 = vld [vmem:[%s9863_s6 + $0x100] sm:$0xff] }
 0x250   : > { %v7300_v0 = vpack.c.bf16 %v1762_v7, %v1761_v10  ;;  %v1748_v14 = vadd.f32 %v8556_v2, %v1726_v11  ;;  %v1952_v11 = vld [vmem:[%s9863_s6 + $0x8] sm:$0xff] }
 0x251   : > { %v1705_v53 = vpop.f32.mrb[176].mxu0 }
 0x252   : > { %v1727_v15 = vadd.f32 %v1705_v53, %v8549_v57  ;;  %v6478_v16 = vpop.f32.mrb[177].mxu0  ;;  %7301 = vmatprep.subr.bf16.mxu0 %v7300_v0  ;;  %v1763_v5 = vmax.f32 %v1748_v14, 0.0  ;;  %v5413_v57 = vld [vmem:[%s9863_s6 + $0x40] sm:$0xff] }
 0x253   : > { %7303 = vmatpush3.bf16.msra.mxu0 %v7300_v0  ;;  %v7309_v28 = vpack.c.bf16 %v5414_v13, %v5413_v57  ;;  %v5466_v0 = vld [vmem:[%s9863_s6 + $0x108] sm:$0xff]  ;;  %v5468_v57 = vld [vmem:[%s9863_s6 + $0x118] sm:$0xff] }
 0x254   : > { %v1749_v51 = vadd.f32 %v8556_v2, %v1727_v15 }
 0x255   : > { %v1710_v18 = vpop.f32.mrb[178].mxu0 }
 0x256   : > { %v1764_v20 = vmax.f32 %v1749_v51, 0.0  ;;  %v1728_v23 = vadd.f32 %v1710_v18, %v8551_v59  ;;  %v6481_v19 = vpop.f32.mrb[179].mxu0  ;;  %v1767_v59 = vld [vmem:[%s9862_s5 + $0x8] sm:$0xff]  ;;  %v7321_v51 = vpack.c.bf16 %v1952_v11, %v1951_v8  ;;  %v8684_v18 = vpack.c.bf16 %v5466_v0, %v5465_v12  ;;  %v5456_v8 = vld [vmem:[%s9863_s6 + $0xf0] sm:$0xff]  ;;  %v5457_v11 = vld [vmem:[%s9863_s6 + $0xf8] sm:$0xff] }
 0x257   : > { %v7354_v12 = vpack.c.bf16 %v5457_v11, %v5456_v8 }
 0x258   : > { %v1750_v48 = vadd.f32 %v8556_v2, %v1728_v23  ;;  %v7304_v9 = vpack.c.bf16 %v1764_v20, %v1763_v5  ;;  %v1768_v2 = vld [vmem:[%s9862_s5 + $0x10] sm:$0xff]  ;;  %v1954_v20 = vld [vmem:[%s9863_s6 + $0x18] sm:$0xff] }
 0x259   : > { %v1953_v5 = vld [vmem:[%s9863_s6 + $0x10] sm:$0xff] }
 0x25a   : > { %v1765_v24 = vmax.f32 %v1750_v48, 0.0  ;;  %7305 = vmatprep.subr.bf16.mxu0 %v7304_v9  ;;  %v5467_v23 = vld [vmem:[%s9863_s6 + $0x110] sm:$0xff] }
 0x25b   : > { %7307 = vmatpush3.bf16.msra.mxu0 %v7304_v9 }
 0x25c   : > { %6510 = vmatprep.subr.mxu0 %v1765_v24 }
 0x25f   : > { %6511 = vmatpush3.msra.mxu0 %v1765_v24 }
 0x260   : > { %6513 = vmatmul.mubr.msk.f32.vlgmr.msra.gmra.mrb[180].mxu0 %vm1774_vm3, %v1767_v59  ;;  %7308 = vmatprep.subr.bf16.mxu0 %v7911_v26 }
 0x261   : > { %6515 = vmatprep.mubr.msk.f32.mxu0 %vm1774_vm3, %v1768_v2  ;;  %7310 = vmatpush3.bf16.msra.mxu0 %v7309_v28  ;;  %v7324_v2 = vpack.c.bf16 %v1954_v20, %v1953_v5 }
 0x262   : > { %7311 = vmatprep.subr.bf16.mxu0 %v7911_v26 }
 0x264   : > { %6516 = vmatmul.mubr.msk.f32.gmra.mrb[182].mxu0 %vm1774_vm3, %v1769_v17  ;;  %v8707_v17 = vpack.c.bf16 %v5468_v57, %v5467_v23 }
 0x265   : > { %6518 = vmatprep.mubr.msk.f32.mxu0 %vm1774_vm3, %v1770_v22  ;;  %7313 = vmatpush3.bf16.msra.mxu0 %v7312_v25  ;;  %v1955_v22 = vld [vmem:[%s9863_s6 + $0x20] sm:$0xff] }
 0x266   : > { %7314 = vmatprep.subr.bf16.mxu0 %v7911_v26 }
 0x268   : > { %6519 = vmatmul.mubr.msk.f32.gmra.mrb[184].mxu0 %vm1774_vm3, %v1771_v30  ;;  %v1956_v30 = vld [vmem:[%s9863_s6 + $0x28] sm:$0xff] }
 0x269   : > { %6521 = vmatprep.mubr.msk.f32.mxu0 %vm1774_vm3, %v1772_v21  ;;  %7316 = vmatpush3.bf16.msra.mxu0 %v7315_v47  ;;  %v5469_v21 = vld [vmem:[%s9863_s6 + $0x120] sm:$0xff]  ;;  %v7327_v25 = vpack.c.bf16 %v1956_v30, %v1955_v22  ;;  %v5472_v47 = vld [vmem:[%s9863_s6 + $0x138] sm:$0xff] }
 0x26a   : > { %7317 = vmatprep.subr.bf16.mxu0 %v7911_v26  ;;  %v8732_v39 = vpack.c.bf16 %v5470_v34, %v5469_v21  ;;  %v8755_v33 = vpack.c.bf16 %v5472_v47, %v5471_v41 }
 0x26c   : > { %6522 = vmatmul.mubr.msk.f32.gmra.mrb[186].mxu0 %vm1774_vm3, %v1773_v27 }
 0x26d   : > { %6540 = vmatprep.mubr.msk.f32.mxu0 %vm7910_vm1, %v7909_v1  ;;  %7319 = vmatpush3.bf16.msra.mxu0 %v7318_v55 }
 0x26e   : > { %7320 = vmatprep.subr.bf16.mxu0 %v7911_v26 }
 0x333   : > { %v6514_v50 = vpop.f32.mrb[180].mxu0 }
 0x334   : > { %v1912_v29 = vmul.f32 %v6514_v50, %v5411_v52  ;;  %v1865_v54 = vpop.f32.mrb[181].mxu0 }
 0x335   : > { %v1911_v63 = vmul.f32 %v5411_v52, %v1865_v54 }
 0x336   : > { %v1927_v58 = vadd.f32 %v5412_v61, %v1912_v29  ;;  %v5451_v29 = vld [vmem:[%s9863_s6 + $0xc8] sm:$0xff] }
 0x337   : > { %v1926_v62 = vadd.f32 %v5412_v61, %v1911_v63  ;;  %v6517_v3 = vpop.f32.mrb[182].mxu0  ;;  %v5452_v63 = vld [vmem:[%s9863_s6 + $0xd0] sm:$0xff] }
 0x338   : > { %1936 = vst.msk [vmem:[#allocation2 + $0x8] sm:$0xff] %vm1934_vm4, %v1927_v58  ;;  %v1914_v56 = vmul.f32 %v6517_v3, %v5411_v52  ;;  %v1875_v40 = vpop.f32.mrb[183].mxu0  ;;  %v5453_v3 = vld [vmem:[%s9863_s6 + $0xd8] sm:$0xff] }
 0x339   : > { %1935 = vst.msk [vmem:[#allocation2] sm:$0xff] %vm1934_vm4, %v1926_v62  ;;  %v1913_v4 = vmul.f32 %v5411_v52, %v1875_v40  ;;  %v5454_v40 = vld [vmem:[%s9863_s6 + $0xe0] sm:$0xff] }
 0x33a   : > { %v1929_v6 = vadd.f32 %v5412_v61, %v1914_v56  ;;  %v7348_v56 = vpack.c.bf16 %v5453_v3, %v5452_v63 }
 0x33b   : > { %v1928_v60 = vadd.f32 %v5412_v61, %v1913_v4  ;;  %v6520_v38 = vpop.f32.mrb[184].mxu0 }
 0x33c   : > { %1938 = vst.msk [vmem:[#allocation2 + $0x18] sm:$0xff] %vm1934_vm4, %v1929_v6  ;;  %v1916_v10 = vmul.f32 %v6520_v38, %v5411_v52  ;;  %v1885_v7 = vpop.f32.mrb[185].mxu0 }
 0x33d   : > { %1937 = vst.msk [vmem:[#allocation2 + $0x10] sm:$0xff] %vm1934_vm4, %v1928_v60  ;;  %v1915_v53 = vmul.f32 %v5411_v52, %v1885_v7  ;;  %v5455_v60 = vld [vmem:[%s9863_s6 + $0xe8] sm:$0xff] }
 0x33e   : > { %v1931_v14 = vadd.f32 %v5412_v61, %v1916_v10  ;;  %v7351_v38 = vpack.c.bf16 %v5455_v60, %v5454_v40 }
 0x33f   : > { %v1930_v15 = vadd.f32 %v5412_v61, %v1915_v53  ;;  %v6523_v16 = vpop.f32.mrb[186].mxu0  ;;  %v1945_v4 = vld [vmem:[#allocation2 + $0x8] sm:$0xff] }
 0x340   : > { %1940 = vst.msk [vmem:[#allocation2 + $0x28] sm:$0xff] %vm1934_vm4, %v1931_v14  ;;  %v1959_v19 = vld [vmem:[#allocation2 + $0x1] sm:$0xff]  ;;  %v1918_v9 = vmul.f32 %v6523_v16, %v5411_v52  ;;  %v1895_v24 = vpop.f32.mrb[187].mxu0 }
 0x341   : > { %v2217_v48 = vld [vmem:[#allocation2 + $0x2] sm:$0xff]  ;;  %1939 = vst.msk [vmem:[#allocation2 + $0x20] sm:$0xff] %vm1934_vm4, %v1930_v15  ;;  %6541 = vmatmul.mubr.msk.f32.vlgmr.msra.gmra.mrb[188].mxu0 %vm1934_vm4, %v1959_v19  ;;  %v1917_v13 = vmul.f32 %v5411_v52, %v1895_v24 }
 0x342   : > { %6615 = vmatmul.mubr.msk.f32.vlgmr.msra.gmra.mrb[0].mxu1 %vm1934_vm4, %v2217_v48  ;;  %6543 = vmatprep.mubr.msk.f32.mxu0 %vm7910_vm1, %v7909_v1  ;;  %v1933_v59 = vadd.f32 %v5412_v61, %v1918_v9  ;;  %v5450_v52 = vld [vmem:[%s9863_s6 + $0xc0] sm:$0xff] }
 0x343   : > { %6617 = vmatprep.mubr.msk.f32.mxu1 %vm7910_vm1, %v7909_v1  ;;  %v1932_v28 = vadd.f32 %v5412_v61, %v1917_v13  ;;  %7322 = vmatpush3.bf16.msra.mxu0 %v7321_v51  ;;  %v7345_v54 = vpack.c.bf16 %v5451_v29, %v5450_v52  ;;  %v1944_v58 = vld [vmem:[#allocation2] sm:$0xff]  ;;  %v1947_v0 = vld [vmem:[#allocation2 + $0x18] sm:$0xff] }
 0x344   : > { %7732 = vmatpush3.bf16.msra.mxu1 %v8684_v18  ;;  %v1960_v27 = vld [vmem:[#allocation2 + $0x9] sm:$0xff]  ;;  %1943 = vst.msk [vmem:[#allocation2 + $0x38] sm:$0xf] %vm1942_vm5, %v1933_v59  ;;  %7323 = vmatprep.subr.bf16.mxu0 %v7911_v26  ;;  %v1961_v31 = vld [vmem:[#allocation2 + $0x11] sm:$0xff]  ;;  %v2670_v13 = vld [vmem:[%s9865_s8] sm:$0xff] }
 0x345   : > { %v2218_v32 = vld [vmem:[#allocation2 + $0xa] sm:$0xff]  ;;  %7729 = vmatprep.subr.bf16.mxu1 %v7911_v26  ;;  %6544 = vmatmul.mubr.msk.f32.gmra.mrb[190].mxu0 %vm1934_vm4, %v1960_v27  ;;  %1941 = vst.msk [vmem:[#allocation2 + $0x30] sm:$0xff] %vm1934_vm4, %v1932_v28  ;;  %v2219_v45 = vld [vmem:[#allocation2 + $0x12] sm:$0xff] }
 0x346   : > { %6618 = vmatmul.mubr.msk.f32.gmra.mrb[2].mxu1 %vm1934_vm4, %v2218_v32  ;;  %6546 = vmatprep.mubr.msk.f32.mxu0 %vm7910_vm1, %v7909_v1  ;;  %v1946_v10 = vld [vmem:[#allocation2 + $0x10] sm:$0xff]  ;;  %v2361_v51 = vld [vmem:[#allocation2 + $0x3] sm:$0xff] }
 0x347   : > { %6620 = vmatprep.mubr.msk.f32.mxu1 %vm7910_vm1, %v7909_v1  ;;  %7325 = vmatpush3.bf16.msra.mxu0 %v7324_v2  ;;  %v1949_v15 = vld [vmem:[#allocation2 + $0x28] sm:$0xff]  ;;  %v2363_v20 = vld [vmem:[#allocation2 + $0x13] sm:$0xff] }
 0x348   : > { %7733 = vmatpush3.bf16.msra.mxu1 %v8707_v17  ;;  %7326 = vmatprep.subr.bf16.mxu0 %v7911_v26  ;;  %v1962_v49 = vld [vmem:[#allocation2 + $0x19] sm:$0xff]  ;;  %v1963_v42 = vld [vmem:[#allocation2 + $0x21] sm:$0xff]  ;;  %v2362_v5 = vld [vmem:[#allocation2 + $0xb] sm:$0xff] }
 0x349   : > { %7730 = vmatprep.subr.bf16.mxu1 %v7911_v26  ;;  %6547 = vmatmul.mubr.msk.f32.gmra.mrb[192].mxu0 %vm1934_vm4, %v1961_v31  ;;  %v2220_v44 = vld [vmem:[#allocation2 + $0x1a] sm:$0xff]  ;;  %v2221_v55 = vld [vmem:[#allocation2 + $0x22] sm:$0xff]  ;;  %v2506_v24 = vld [vmem:[#allocation2 + $0xc] sm:$0xff] }
 0x34a   : > { %6621 = vmatmul.mubr.msk.f32.gmra.mrb[4].mxu1 %vm1934_vm4, %v2219_v45  ;;  %6549 = vmatprep.mubr.msk.f32.mxu0 %vm7910_vm1, %v7909_v1  ;;  %v2508_v62 = vld [vmem:[#allocation2 + $0x1c] sm:$0xff]  ;;  %v2509_v6 = vld [vmem:[#allocation2 + $0x24] sm:$0xff]  ;;  %v2507_v57 = vld [vmem:[#allocation2 + $0x14] sm:$0xff] }
 0x34b   : > { %6623 = vmatprep.mubr.msk.f32.mxu1 %vm7910_vm1, %v7909_v1  ;;  %7328 = vmatpush3.bf16.msra.mxu0 %v7327_v25  ;;  %v1948_v14 = vld [vmem:[#allocation2 + $0x20] sm:$0xff] }
 0x34c   : > { %7734 = vmatpush3.bf16.msra.mxu1 %v8732_v39  ;;  %7329 = vmatprep.subr.bf16.mxu0 %v7911_v26  ;;  %v1964_v46 = vld [vmem:[#allocation2 + $0x29] sm:$0xff]  ;;  %v1965_v50 = vld [vmem:[#allocation2 + $0x31] sm:$0xff] }
 0x34d   : > { %7731 = vmatprep.subr.bf16.mxu1 %v7911_v26  ;;  %6550 = vmatmul.mubr.msk.f32.gmra.mrb[194].mxu0 %vm1934_vm4, %v1962_v49  ;;  %v2222_v36 = vld [vmem:[#allocation2 + $0x2a] sm:$0xff]  ;;  %v2223_v61 = vld [vmem:[#allocation2 + $0x32] sm:$0xff] }
 0x34e   : > { %6624 = vmatmul.mubr.msk.f32.gmra.mrb[6].mxu1 %vm1934_vm4, %v2220_v44  ;;  %6552 = vmatprep.mubr.msk.f32.mxu0 %vm7910_vm1, %v7909_v1  ;;  %v2510_v7 = vld [vmem:[#allocation2 + $0x2c] sm:$0xff]  ;;  %v2511_v53 = vld [vmem:[#allocation2 + $0x34] sm:$0xff]  ;;  %v2365_v23 = vld [vmem:[#allocation2 + $0x23] sm:$0xff] }
 0x34f   : > { %6626 = vmatprep.mubr.msk.f32.mxu1 %vm7910_vm1, %v7909_v1  ;;  %7331 = vmatpush3.bf16.msra.mxu0 %v7330_v35  ;;  %v1950_v16 = vld [vmem:[#allocation2 + $0x30] sm:$0xff]  ;;  %v2505_v9 = vld [vmem:[#allocation2 + $0x4] sm:$0xff] }
 0x350   : > { %7735 = vmatpush3.bf16.msra.mxu1 %v8755_v33  ;;  %7344 = vmatprep.subr.bf16.mxu0 %v7911_v26  ;;  %v2366_v19 = vld [vmem:[#allocation2 + $0x2b] sm:$0xff]  ;;  %v2367_v48 = vld [vmem:[#allocation2 + $0x33] sm:$0xff] }
 0x351   : > { %7380 = vmatprep.subr.bf16.mxu1 %v7911_v26  ;;  %6553 = vmatmul.mubr.msk.f32.gmra.mrb[196].mxu0 %vm1934_vm4, %v1963_v42 }
 0x352   : > { %6627 = vmatmul.mubr.msk.f32.gmra.mrb[8].mxu1 %vm1934_vm4, %v2221_v55  ;;  %6555 = vmatprep.mubr.msk.f32.mxu0 %vm7910_vm1, %v7909_v1 }
 0x353   : > { %6629 = vmatprep.mubr.msk.f32.mxu1 %vm7910_vm1, %v7909_v1 }
 0x355   : > { %6556 = vmatmul.mubr.msk.f32.gmra.mrb[198].mxu0 %vm1934_vm4, %v1964_v46 }
 0x356   : > { %6630 = vmatmul.mubr.msk.f32.gmra.mrb[10].mxu1 %vm1934_vm4, %v2222_v36  ;;  %6558 = vmatprep.mubr.msk.f32.mxu0 %vm7910_vm1, %v7909_v1 }
 0x357   : > { %6632 = vmatprep.mubr.msk.f32.mxu1 %vm7910_vm1, %v7909_v1 }
 0x359   : > { %6559 = vmatmul.mubr.msk.f32.gmra.mrb[200].mxu0 %vm1934_vm4, %v1965_v50 }
 0x35a   : > { %6633 = vmatmul.mubr.msk.f32.gmra.mrb[12].mxu1 %vm1934_vm4, %v2223_v61  ;;  %6577 = vmatprep.mubr.msk.f32.mxu0 %vm7910_vm1, %v7909_v1 }
 0x35b   : > { %6697 = vmatprep.mubr.msk.f32.mxu1 %vm7910_vm1, %v7909_v1 }
 0x35d   : > { %6578 = vmatmul.mubr.msk.f32.vlgmr.msra.gmra.mrb[202].mxu0 %vm1934_vm4, %v1944_v58 }
 0x35e   : > { %6698 = vmatmul.mubr.msk.f32.vlgmr.msra.gmra.mrb[14].mxu1 %vm1934_vm4, %v2508_v62  ;;  %6580 = vmatprep.mubr.msk.f32.mxu0 %vm7910_vm1, %v7909_v1 }
 0x35f   : > { %6700 = vmatprep.mubr.msk.f32.mxu1 %vm7910_vm1, %v7909_v1  ;;  %7346 = vmatpush3.bf16.msra.mxu0 %v7345_v54 }
 0x360   : > { %7347 = vmatprep.subr.bf16.mxu0 %v7911_v26 }
 0x361   : > { %6581 = vmatmul.mubr.msk.f32.gmra.mrb[204].mxu0 %vm1934_vm4, %v1945_v4 }
 0x362   : > { %6701 = vmatmul.mubr.msk.f32.gmra.mrb[16].mxu1 %vm1934_vm4, %v2509_v6  ;;  %6583 = vmatprep.mubr.msk.f32.mxu0 %vm7910_vm1, %v7909_v1 }
 0x363   : > { %6703 = vmatprep.mubr.msk.f32.mxu1 %vm7910_vm1, %v7909_v1  ;;  %7349 = vmatpush3.bf16.msra.mxu0 %v7348_v56 }
 0x364   : > { %7350 = vmatprep.subr.bf16.mxu0 %v7911_v26 }
 0x365   : > { %6584 = vmatmul.mubr.msk.f32.gmra.mrb[206].mxu0 %vm1934_vm4, %v1946_v10 }
 0x366   : > { %6704 = vmatmul.mubr.msk.f32.gmra.mrb[18].mxu1 %vm1934_vm4, %v2510_v7  ;;  %6586 = vmatprep.mubr.msk.f32.mxu0 %vm7910_vm1, %v7909_v1 }
 0x367   : > { %6706 = vmatprep.mubr.msk.f32.mxu1 %vm7910_vm1, %v7909_v1  ;;  %7352 = vmatpush3.bf16.msra.mxu0 %v7351_v38 }
 0x368   : > { %7353 = vmatprep.subr.bf16.mxu0 %v7911_v26 }
 0x369   : > { %6587 = vmatmul.mubr.msk.f32.gmra.mrb[208].mxu0 %vm1934_vm4, %v1947_v0 }
 0x36a   : > { %6707 = vmatmul.mubr.msk.f32.gmra.mrb[20].mxu1 %vm1934_vm4, %v2511_v53  ;;  %6589 = vmatprep.mubr.msk.f32.mxu0 %vm7910_vm1, %v7909_v1 }
 0x36b   : > { %6745 = vmatprep.mubr.msk.f32.mxu1 %vm7910_vm1, %v7909_v1  ;;  %7355 = vmatpush3.bf16.msra.mxu0 %v7354_v12 }
 0x36c   : > { %7356 = vmatprep.subr.bf16.mxu0 %v7911_v26 }
 0x36d   : > { %6590 = vmatmul.mubr.msk.f32.gmra.mrb[210].mxu0 %vm1934_vm4, %v1948_v14 }
 0x36e   : > { %6592 = vmatprep.mubr.msk.f32.mxu0 %vm7910_vm1, %v7909_v1 }
 0x371   : > { %6593 = vmatmul.mubr.msk.f32.gmra.mrb[212].mxu0 %vm1934_vm4, %v1949_v15 }
 0x372   : > { %6595 = vmatprep.mubr.msk.f32.mxu0 %vm7910_vm1, %v7909_v1 }
 0x375   : > { %6596 = vmatmul.mubr.msk.f32.gmra.mrb[214].mxu0 %vm1934_vm4, %v1950_v16 }
 0x376   : > { %6651 = vmatprep.mubr.msk.f32.mxu0 %vm7910_vm1, %v7909_v1 }
 0x379   : > { %6652 = vmatmul.mubr.msk.f32.vlgmr.msra.gmra.mrb[216].mxu0 %vm1934_vm4, %v2361_v51 }
 0x37a   : > { %6654 = vmatprep.mubr.msk.f32.mxu0 %vm7910_vm1, %v7909_v1  ;;  %7358 = vmatpush3.bf16.msra.mxu0 %v8684_v18  ;;  %v2364_v18 = vld [vmem:[#allocation2 + $0x1b] sm:$0xff] }
 0x37b   : > { %7359 = vmatprep.subr.bf16.mxu0 %v7911_v26 }
 0x37d   : > { %6655 = vmatmul.mubr.msk.f32.gmra.mrb[218].mxu0 %vm1934_vm4, %v2362_v5 }
 0x37e   : > { %6657 = vmatprep.mubr.msk.f32.mxu0 %vm7910_vm1, %v7909_v1  ;;  %7361 = vmatpush3.bf16.msra.mxu0 %v8707_v17 }
 0x37f   : > { %7362 = vmatprep.subr.bf16.mxu0 %v7911_v26 }
 0x381   : > { %6658 = vmatmul.mubr.msk.f32.gmra.mrb[220].mxu0 %vm1934_vm4, %v2363_v20 }
 0x382   : > { %6660 = vmatprep.mubr.msk.f32.mxu0 %vm7910_vm1, %v7909_v1  ;;  %7364 = vmatpush3.bf16.msra.mxu0 %v8732_v39 }
 0x383   : > { %7365 = vmatprep.subr.bf16.mxu0 %v7911_v26 }
 0x385   : > { %6661 = vmatmul.mubr.msk.f32.gmra.mrb[222].mxu0 %vm1934_vm4, %v2364_v18 }
 0x386   : > { %6663 = vmatprep.mubr.msk.f32.mxu0 %vm7910_vm1, %v7909_v1  ;;  %7367 = vmatpush3.bf16.msra.mxu0 %v8755_v33 }
 0x389   : > { %6664 = vmatmul.mubr.msk.f32.gmra.mrb[224].mxu0 %vm1934_vm4, %v2365_v23 }
 0x38a   : > { %6666 = vmatprep.mubr.msk.f32.mxu0 %vm7910_vm1, %v7909_v1 }
 0x38d   : > { %6667 = vmatmul.mubr.msk.f32.gmra.mrb[226].mxu0 %vm1934_vm4, %v2366_v19 }
 0x38e   : > { %6669 = vmatprep.mubr.msk.f32.mxu0 %vm7910_vm1, %v7909_v1 }
 0x391   : > { %6670 = vmatmul.mubr.msk.f32.gmra.mrb[228].mxu0 %vm1934_vm4, %v2367_v48 }
 0x392   : > { %6688 = vmatprep.mubr.msk.f32.mxu0 %vm7910_vm1, %v7909_v1 }
 0x395   : > { %6689 = vmatmul.mubr.msk.f32.vlgmr.msra.gmra.mrb[230].mxu0 %vm1934_vm4, %v2505_v9 }
 0x396   : > { %6691 = vmatprep.mubr.msk.f32.mxu0 %vm7910_vm1, %v7909_v1 }
 0x399   : > { %6692 = vmatmul.mubr.msk.f32.gmra.mrb[232].mxu0 %vm1934_vm4, %v2506_v24 }
 0x39a   : > { %6694 = vmatprep.mubr.msk.f32.mxu0 %vm7910_vm1, %v7909_v1 }
 0x39d   : > { %6695 = vmatmul.mubr.msk.f32.gmra.mrb[234].mxu0 %vm1934_vm4, %v2507_v57 }
 0x39e   : > { %6723 = vmatprep.mubr.msk.f32.mxu0 %vm2674_vm6, %v2670_v13 }
 0x414   : > { %v2062_v59 = vpop.f32.mrb[188].mxu0 }
 0x415   : > { %v2320_v28 = vpop.f32.mrb[0].mxu1  ;;  %v6542_v2 = vpop.f32.mrb[189].mxu0 }
 0x416   : > { %v6616_v17 = vpop.f32.mrb[1].mxu1 }
 0x418   : > { %v2067_v22 = vpop.f32.mrb[190].mxu0 }
 0x419   : > { %v2325_v30 = vpop.f32.mrb[2].mxu1  ;;  %v6545_v21 = vpop.f32.mrb[191].mxu0 }
 0x41a   : > { %v6619_v27 = vpop.f32.mrb[3].mxu1 }
 0x41c   : > { %v2072_v32 = vpop.f32.mrb[192].mxu0 }
 0x41d   : > { %v2330_v34 = vpop.f32.mrb[4].mxu1  ;;  %v6548_v25 = vpop.f32.mrb[193].mxu0 }
 0x41e   : > { %v6622_v39 = vpop.f32.mrb[5].mxu1 }
 0x420   : > { %v2077_v37 = vpop.f32.mrb[194].mxu0 }
 0x421   : > { %v2335_v43 = vpop.f32.mrb[6].mxu1  ;;  %v6551_v41 = vpop.f32.mrb[195].mxu0 }
 0x422   : > { %v6625_v31 = vpop.f32.mrb[7].mxu1 }
 0x424   : > { %v2082_v45 = vpop.f32.mrb[196].mxu0 }
 0x425   : > { %v2340_v47 = vpop.f32.mrb[8].mxu1  ;;  %v6554_v35 = vpop.f32.mrb[197].mxu0 }
 0x426   : > { %v6628_v33 = vpop.f32.mrb[9].mxu1 }
 0x428   : > { %v2087_v49 = vpop.f32.mrb[198].mxu0 }
 0x429   : > { %v2345_v44 = vpop.f32.mrb[10].mxu1  ;;  %v6557_v42 = vpop.f32.mrb[199].mxu0 }
 0x42a   : > { %v6631_v55 = vpop.f32.mrb[11].mxu1  ;;  %v5480_v42 = vld [vmem:[%s9864_s7] ss:$0 sm:$0xff] }
 0x42c   : > { %v2092_v46 = vpop.f32.mrb[200].mxu0 }
 0x42d   : > { %v2350_v36 = vpop.f32.mrb[12].mxu1  ;;  %v6560_v52 = vpop.f32.mrb[201].mxu0 }
 0x42e   : > { %v6634_v50 = vpop.f32.mrb[13].mxu1 }
 0x430   : > { %v2183_v61 = vpop.f32.mrb[202].mxu0 }
 0x431   : > { %v2623_v29 = vpop.f32.mrb[14].mxu1  ;;  %v2184_v54 = vadd.f32 %v2183_v61, %v2062_v59  ;;  %v6579_v63 = vpop.f32.mrb[203].mxu0 }
 0x432   : > { %v6699_v58 = vpop.f32.mrb[15].mxu1 }
 0x433   : > { %v2354_v62 = vadd.f32 %v2320_v28, %v2184_v54 }
 0x434   : > { %v2188_v3 = vpop.f32.mrb[204].mxu0 }
 0x435   : > { %v2628_v56 = vpop.f32.mrb[16].mxu1  ;;  %v2189_v40 = vadd.f32 %v2188_v3, %v2067_v22  ;;  %v6582_v4 = vpop.f32.mrb[205].mxu0 }
 0x436   : > { %v6702_v6 = vpop.f32.mrb[17].mxu1 }
 0x437   : > { %v2355_v60 = vadd.f32 %v2325_v30, %v2189_v40 }
 0x438   : > { %v2193_v38 = vpop.f32.mrb[206].mxu0 }
 0x439   : > { %v2633_v8 = vpop.f32.mrb[18].mxu1  ;;  %v2194_v10 = vadd.f32 %v2193_v38, %v2072_v32  ;;  %v6585_v7 = vpop.f32.mrb[207].mxu0 }
 0x43a   : > { %v6705_v11 = vpop.f32.mrb[19].mxu1 }
 0x43b   : > { %v2356_v12 = vadd.f32 %v2330_v34, %v2194_v10 }
 0x43c   : > { %v2198_v0 = vpop.f32.mrb[208].mxu0 }
 0x43d   : > { %v2638_v53 = vpop.f32.mrb[20].mxu1  ;;  %v2199_v14 = vadd.f32 %v2198_v0, %v2077_v37  ;;  %v6588_v15 = vpop.f32.mrb[209].mxu0 }
 0x43e   : > { %v6708_v16 = vpop.f32.mrb[21].mxu1 }
 0x43f   : > { %v2357_v51 = vadd.f32 %v2335_v43, %v2199_v14 }
 0x440   : > { %v2203_v5 = vpop.f32.mrb[210].mxu0 }
 0x441   : > { %v2204_v20 = vadd.f32 %v2203_v5, %v2082_v45  ;;  %v6591_v18 = vpop.f32.mrb[211].mxu0 }
 0x442   : > { %v2671_v18 = vld [vmem:[%s9865_s8 + $0x8] sm:$0xff] }
 0x443   : > { %v2358_v23 = vadd.f32 %v2340_v47, %v2204_v20 }
 0x444   : > { %v2208_v19 = vpop.f32.mrb[212].mxu0 }
 0x445   : > { %v2209_v48 = vadd.f32 %v2208_v19, %v2087_v49  ;;  %v6594_v9 = vpop.f32.mrb[213].mxu0  ;;  %v2783_v19 = vld [vmem:[%s9866_s9 + $0x8] sm:$0xff] }
 0x446   : > { %v2784_v9 = vld [vmem:[%s9866_s9 + $0x10] sm:$0xff] }
 0x447   : > { %v2359_v24 = vadd.f32 %v2345_v44, %v2209_v48 }
 0x448   : > { %v2213_v57 = vpop.f32.mrb[214].mxu0 }
 0x449   : > { %v2214_v13 = vadd.f32 %v2213_v57, %v2092_v46  ;;  %v6597_v59 = vpop.f32.mrb[215].mxu0 }
 0x44a   : > { %v2787_v59 = vld [vmem:[%s9866_s9 + $0x28] sm:$0xff] }
 0x44b   : > { %v2360_v28 = vadd.f32 %v2350_v36, %v2214_v13  ;;  %v2786_v13 = vld [vmem:[%s9866_s9 + $0x20] sm:$0xff] }
 0x44c   : > { %v2464_v2 = vpop.f32.mrb[216].mxu0 }
 0x44d   : > { %v2498_v17 = vadd.f32 %v2464_v2, %v2354_v62  ;;  %v6653_v22 = vpop.f32.mrb[217].mxu0  ;;  %v2788_v2 = vld [vmem:[%s9866_s9 + $0x30] sm:$0xff] }
 0x450   : > { %v2469_v30 = vpop.f32.mrb[218].mxu0 }
 0x451   : > { %v2499_v21 = vadd.f32 %v2469_v30, %v2355_v60  ;;  %v6656_v27 = vpop.f32.mrb[219].mxu0  ;;  %v2672_v30 = vld [vmem:[%s9865_s8 + $0x10] sm:$0xff] }
 0x454   : > { %v2474_v32 = vpop.f32.mrb[220].mxu0 }
 0x455   : > { %v2500_v34 = vadd.f32 %v2474_v32, %v2356_v12  ;;  %v6659_v25 = vpop.f32.mrb[221].mxu0 }
 0x458   : > { %v2479_v39 = vpop.f32.mrb[222].mxu0 }
 0x459   : > { %v2501_v37 = vadd.f32 %v2479_v39, %v2357_v51  ;;  %v6662_v43 = vpop.f32.mrb[223].mxu0  ;;  %v5486_v39 = vld [vmem:[%s9866_s9 + $0x40] sm:$0xff] }
 0x45b   : > { %v2645_v41 = vadd.f32 %v2623_v29, %v2501_v37  ;;  %v5487_v37 = vld [vmem:[%s9866_s9 + $0x48] sm:$0xff] }
 0x45c   : > { %v2484_v31 = vpop.f32.mrb[224].mxu0  ;;  %v7393_v43 = vpack.c.bf16 %v5487_v37, %v5486_v39  ;;  %v5528_v39 = vld [vmem:[%s9866_s9 + $0x170] sm:$0xff]  ;;  %v5529_v37 = vld [vmem:[%s9866_s9 + $0x178] sm:$0xff] }
 0x45d   : > { %v2502_v45 = vadd.f32 %v2484_v31, %v2358_v23  ;;  %v6665_v47 = vpop.f32.mrb[225].mxu0  ;;  %v2659_v7 = vadd.f32 %v5480_v42, %v2645_v41  ;;  %v2782_v23 = vld [vmem:[%s9866_s9] sm:$0xff]  ;;  %v5488_v41 = vld [vmem:[%s9866_s9 + $0x50] sm:$0xff]  ;;  %v5489_v31 = vld [vmem:[%s9866_s9 + $0x58] sm:$0xff] }
 0x45e   : > { %v7381_v48 = vpack.c.bf16 %v2783_v19, %v2782_v23  ;;  %v7396_v47 = vpack.c.bf16 %v5489_v31, %v5488_v41  ;;  %v5531_v41 = vld [vmem:[%s9866_s9 + $0x180] sm:$0xff]  ;;  %v5532_v31 = vld [vmem:[%s9866_s9 + $0x188] sm:$0xff] }
 0x45f   : > { %v2646_v35 = vadd.f32 %v2628_v56, %v2502_v45  ;;  %v2666_v16 = vmax.f32 %v2659_v7, 0.0 }
 0x460   : > { %v2489_v33 = vpop.f32.mrb[226].mxu0  ;;  %7382 = vmatpush3.bf16.msra.mxu1 %v7381_v48  ;;  %v5517_v48 = vld [vmem:[%s9866_s9 + $0x120] sm:$0xff] }
 0x461   : > { %v2503_v49 = vadd.f32 %v2489_v33, %v2359_v24  ;;  %v6668_v44 = vpop.f32.mrb[227].mxu0  ;;  %v2660_v55 = vadd.f32 %v5480_v42, %v2646_v35  ;;  %7383 = vmatprep.subr.bf16.mxu1 %v7911_v26  ;;  %v2785_v24 = vld [vmem:[%s9866_s9 + $0x18] sm:$0xff]  ;;  %v5490_v35 = vld [vmem:[%s9866_s9 + $0x60] sm:$0xff]  ;;  %v5491_v33 = vld [vmem:[%s9866_s9 + $0x68] sm:$0xff] }
 0x462   : > { %v7384_v57 = vpack.c.bf16 %v2785_v24, %v2784_v9  ;;  %v5492_v44 = vld [vmem:[%s9866_s9 + $0x70] sm:$0xff]  ;;  %v5518_v9 = vld [vmem:[%s9866_s9 + $0x128] sm:$0xff] }
 0x463   : > { %v2647_v46 = vadd.f32 %v2633_v8, %v2503_v49  ;;  %v2667_v54 = vmax.f32 %v2660_v55, 0.0  ;;  %v7399_v49 = vpack.c.bf16 %v5491_v33, %v5490_v35  ;;  %v7435_v24 = vpack.c.bf16 %v5518_v9, %v5517_v48  ;;  %v5534_v35 = vld [vmem:[%s9866_s9 + $0x198] sm:$0xff]  ;;  %v5558_v48 = vld [vmem:[%s9866_s9 + $0x240] sm:$0xff]  ;;  %v5559_v9 = vld [vmem:[%s9866_s9 + $0x248] sm:$0xff] }
 0x464   : > { %v2494_v36 = vpop.f32.mrb[228].mxu0  ;;  %7385 = vmatpush3.bf16.msra.mxu1 %v7384_v57  ;;  %v5519_v57 = vld [vmem:[%s9866_s9 + $0x130] sm:$0xff] }
 0x465   : > { %v2661_v52 = vadd.f32 %v5480_v42, %v2647_v46  ;;  %v2504_v50 = vadd.f32 %v2494_v36, %v2360_v28  ;;  %v6671_v61 = vpop.f32.mrb[229].mxu0  ;;  %7386 = vmatprep.subr.bf16.mxu1 %v7911_v26  ;;  %v7387_v28 = vpack.c.bf16 %v2787_v59, %v2786_v13  ;;  %v5495_v46 = vld [vmem:[%s9866_s9 + $0x80] sm:$0xff]  ;;  %v5496_v36 = vld [vmem:[%s9866_s9 + $0x88] sm:$0xff]  ;;  %v5520_v13 = vld [vmem:[%s9866_s9 + $0x138] sm:$0xff] }
 0x466   : > { %v5498_v61 = vld [vmem:[%s9866_s9 + $0x98] sm:$0xff]  ;;  %v7438_v59 = vpack.c.bf16 %v5520_v13, %v5519_v57  ;;  %v5560_v57 = vld [vmem:[%s9866_s9 + $0x250] sm:$0xff] }
 0x467   : > { %v2668_v63 = vmax.f32 %v2661_v52, 0.0  ;;  %v2648_v29 = vadd.f32 %v2638_v53, %v2504_v50  ;;  %v7405_v52 = vpack.c.bf16 %v5496_v36, %v5495_v46  ;;  %v5497_v50 = vld [vmem:[%s9866_s9 + $0x90] sm:$0xff]  ;;  %v5538_v36 = vld [vmem:[%s9866_s9 + $0x1b8] sm:$0xff] }
 0x468   : > { %v2608_v58 = vpop.f32.mrb[230].mxu0  ;;  %7388 = vmatpush3.bf16.msra.mxu1 %v7387_v28  ;;  %v5522_v28 = vld [vmem:[%s9866_s9 + $0x140] sm:$0xff]  ;;  %v5537_v46 = vld [vmem:[%s9866_s9 + $0x1b0] sm:$0xff]  ;;  %v5561_v13 = vld [vmem:[%s9866_s9 + $0x258] sm:$0xff] }
 0x469   : > { %v2642_v62 = vadd.f32 %v2608_v58, %v2498_v17  ;;  %v6690_v3 = vpop.f32.mrb[231].mxu0  ;;  %v7376_v56 = vpack.c.bf16 %v2668_v63, %v2667_v54  ;;  %v2662_v5 = vadd.f32 %v5480_v42, %v2648_v29  ;;  %v2789_v17 = vld [vmem:[%s9866_s9 + $0x38] sm:$0xff]  ;;  %7389 = vmatprep.subr.bf16.mxu1 %v7911_v26  ;;  %v7408_v63 = vpack.c.bf16 %v5498_v61, %v5497_v50  ;;  %v5499_v29 = vld [vmem:[%s9866_s9 + $0xa0] sm:$0xff]  ;;  %v5500_v58 = vld [vmem:[%s9866_s9 + $0xa8] sm:$0xff] }
 0x46a   : > { %v7390_v22 = vpack.c.bf16 %v2789_v17, %v2788_v2  ;;  %v5501_v3 = vld [vmem:[%s9866_s9 + $0xb0] sm:$0xff]  ;;  %v5523_v2 = vld [vmem:[%s9866_s9 + $0x148] sm:$0xff]  ;;  %v5540_v50 = vld [vmem:[%s9866_s9 + $0x1c0] sm:$0xff] }
 0x46b   : > { %v2656_v4 = vadd.f32 %v5480_v42, %v2642_v62  ;;  %v2669_v20 = vmax.f32 %v2662_v5, 0.0  ;;  %v7411_v62 = vpack.c.bf16 %v5500_v58, %v5499_v29  ;;  %v7441_v17 = vpack.c.bf16 %v5523_v2, %v5522_v28  ;;  %v5541_v61 = vld [vmem:[%s9866_s9 + $0x1c8] sm:$0xff]  ;;  %v5543_v29 = vld [vmem:[%s9866_s9 + $0x1d8] sm:$0xff]  ;;  %v5562_v2 = vld [vmem:[%s9866_s9 + $0x260] sm:$0xff] }
 0x46c   : > { %v2613_v40 = vpop.f32.mrb[232].mxu0  ;;  %7391 = vmatpush3.bf16.msra.mxu1 %v7390_v22  ;;  %v5524_v22 = vld [vmem:[%s9866_s9 + $0x150] sm:$0xff]  ;;  %v7492_v28 = vpack.c.bf16 %v5561_v13, %v5560_v57  ;;  %v5603_v57 = vld [vmem:[%s9866_s9 + $0x380] sm:$0xff]  ;;  %v5604_v13 = vld [vmem:[%s9866_s9 + $0x388] sm:$0xff] }
 0x46d   : > { %v2643_v6 = vadd.f32 %v2613_v40, %v2499_v21  ;;  %v6693_v60 = vpop.f32.mrb[233].mxu0  ;;  %v2663_v11 = vmax.f32 %v2656_v4, 0.0  ;;  %7392 = vmatprep.subr.bf16.mxu1 %v7911_v26  ;;  %v2673_v21 = vld [vmem:[%s9865_s8 + $0x18] sm:$0xf]  ;;  %v5504_v4 = vld [vmem:[%s9866_s9 + $0xc0] sm:$0xff] }
 0x46f   : > { %v2657_v38 = vadd.f32 %v5480_v42, %v2643_v6  ;;  %v5505_v6 = vld [vmem:[%s9866_s9 + $0xc8] sm:$0xff] }
 0x470   : > { %v2618_v10 = vpop.f32.mrb[234].mxu0  ;;  %v7417_v60 = vpack.c.bf16 %v5505_v6, %v5504_v4  ;;  %v5546_v4 = vld [vmem:[%s9866_s9 + $0x1f0] sm:$0xff]  ;;  %v5547_v6 = vld [vmem:[%s9866_s9 + $0x1f8] sm:$0xff] }
 0x471   : > { %v2664_v8 = vmax.f32 %v2657_v38, 0.0  ;;  %v2644_v12 = vadd.f32 %v2618_v10, %v2500_v34  ;;  %v6696_v0 = vpop.f32.mrb[235].mxu0  ;;  %v5506_v38 = vld [vmem:[%s9866_s9 + $0xd0] sm:$0xff]  ;;  %v5507_v10 = vld [vmem:[%s9866_s9 + $0xd8] sm:$0xff] }
 0x473   : > { %v2658_v14 = vadd.f32 %v5480_v42, %v2644_v12  ;;  %v7368_v15 = vpack.c.bf16 %v2664_v8, %v2663_v11  ;;  %v5493_v42 = vld [vmem:[%s9866_s9 + $0x78] sm:$0xff]  ;;  %v7420_v11 = vpack.c.bf16 %v5507_v10, %v5506_v38  ;;  %v5508_v8 = vld [vmem:[%s9866_s9 + $0xe0] sm:$0xff]  ;;  %v5509_v12 = vld [vmem:[%s9866_s9 + $0xe8] sm:$0xff] }
 0x474   : > { %v7402_v55 = vpack.c.bf16 %v5493_v42, %v5492_v44  ;;  %v7423_v0 = vpack.c.bf16 %v5509_v12, %v5508_v8  ;;  %v5535_v44 = vld [vmem:[%s9866_s9 + $0x1a0] sm:$0xff]  ;;  %v5536_v42 = vld [vmem:[%s9866_s9 + $0x1a8] sm:$0xff]  ;;  %v5551_v12 = vld [vmem:[%s9866_s9 + $0x210] sm:$0xff] }
 0x475   : > { %v2665_v51 = vmax.f32 %v2658_v14, 0.0  ;;  %7369 = vmatprep.subr.bf16.mxu0 %v7368_v15  ;;  %v5510_v14 = vld [vmem:[%s9866_s9 + $0xf0] sm:$0xff]  ;;  %v5549_v38 = vld [vmem:[%s9866_s9 + $0x200] sm:$0xff]  ;;  %v5550_v10 = vld [vmem:[%s9866_s9 + $0x208] sm:$0xff] }
 0x476   : > { %7371 = vmatpush3.bf16.msra.mxu0 %v7368_v15  ;;  %v5511_v15 = vld [vmem:[%s9866_s9 + $0xf8] sm:$0xff]  ;;  %v7477_v8 = vpack.c.bf16 %v5550_v10, %v5549_v38  ;;  %v5589_v10 = vld [vmem:[%s9866_s9 + $0x320] sm:$0xff] }
 0x477   : > { %v7372_v53 = vpack.c.bf16 %v2666_v16, %v2665_v51  ;;  %v7426_v16 = vpack.c.bf16 %v5511_v15, %v5510_v14  ;;  %v5513_v51 = vld [vmem:[%s9866_s9 + $0x100] sm:$0xff] }
 0x479   : > { %7373 = vmatprep.subr.bf16.mxu0 %v7372_v53 }
 0x47a   : > { %7375 = vmatpush3.bf16.msra.mxu0 %v7372_v53  ;;  %v5514_v53 = vld [vmem:[%s9866_s9 + $0x108] sm:$0xff] }
 0x47b   : > { %7377 = vmatprep.subr.bf16.mxu0 %v7376_v56  ;;  %v7429_v5 = vpack.c.bf16 %v5514_v53, %v5513_v51  ;;  %v5554_v51 = vld [vmem:[%s9866_s9 + $0x228] sm:$0xff] }
 0x47e   : > { %7379 = vmatpush3.bf16.msra.mxu0 %v7376_v56  ;;  %v5502_v56 = vld [vmem:[%s9866_s9 + $0xb8] sm:$0xff] }
 0x47f   : > { %6721 = vmatprep.subr.mxu0 %v2669_v20  ;;  %v7414_v40 = vpack.c.bf16 %v5502_v56, %v5501_v3  ;;  %v5544_v3 = vld [vmem:[%s9866_s9 + $0x1e0] sm:$0xff]  ;;  %v5545_v56 = vld [vmem:[%s9866_s9 + $0x1e8] sm:$0xff] }
 0x482   : > { %6722 = vmatpush3.msra.mxu0 %v2669_v20  ;;  %v5515_v20 = vld [vmem:[%s9866_s9 + $0x110] sm:$0xff] }
 0x483   : > { %6724 = vmatmul.mubr.msk.f32.vlgmr.msra.gmra.mrb[236].mxu0 %vm2674_vm6, %v2671_v18  ;;  %7716 = vmatprep.subr.bf16.mxu0 %v7911_v26  ;;  %v5516_v18 = vld [vmem:[%s9866_s9 + $0x118] sm:$0xff] }
 0x484   : > { %6726 = vmatprep.mubr.msk.f32.mxu0 %vm2674_vm6, %v2672_v30  ;;  %v7432_v19 = vpack.c.bf16 %v5516_v18, %v5515_v20  ;;  %v5525_v30 = vld [vmem:[%s9866_s9 + $0x158] sm:$0xff]  ;;  %v5555_v18 = vld [vmem:[%s9866_s9 + $0x230] sm:$0xff] }
 0x487   : > { %6727 = vmatmul.mubr.msk.f32.gmra.mrb[238].mxu0 %vm2674_vm6, %v2673_v21 }
 0x488   : > { %7277 = vmatprep.mubr.msk.f32.mxu0 %vm7910_vm1, %v7909_v1 }
 0x556   : > { %v6725_v27 = vpop.f32.mrb[236].mxu0 }
 0x557   : > { %7833 = vtanh.f32 %v6725_v27  ;;  %v2753_v32 = vpop.f32.mrb[237].mxu0  ;;  %v7444_v27 = vpack.c.bf16 %v5525_v30, %v5524_v22  ;;  %v5564_v30 = vld [vmem:[%s9866_s9 + $0x270] sm:$0xff] }
 0x558   : > { %7835 = vtanh.f32 %v2753_v32  ;;  %v5526_v32 = vld [vmem:[%s9866_s9 + $0x160] sm:$0xff] }
 0x561   : > { %v7834_v34 = vpop.eup %7833 }
 0x562   : > { %v7836_v25 = vpop.eup %7835  ;;  %2777 = vst.msk [vmem:[#allocation3 + $0x8] sm:$0xff] %vm1934_vm4, %v7834_v34  ;;  %v5527_v34 = vld [vmem:[%s9866_s9 + $0x168] sm:$0xff] }
 0x563   : > { %2776 = vst.msk [vmem:[#allocation3] sm:$0xff] %vm1934_vm4, %v7836_v25  ;;  %v7447_v25 = vpack.c.bf16 %v5527_v34, %v5526_v32  ;;  %v5567_v32 = vld [vmem:[%s9866_s9 + $0x280] sm:$0xff]  ;;  %v5568_v34 = vld [vmem:[%s9866_s9 + $0x288] sm:$0xff] }
 0x56a   : > { %v2781_v45 = vld [vmem:[#allocation3] sm:$0x1]  ;;  %v2864_v54 = vld [vmem:[#allocation3 + $0x1] sm:$0x1]  ;;  %v2948_v7 = vld [vmem:[#allocation3 + $0x2] sm:$0x1] }
 0x56b   : > { %6746 = vmatmul.mubr.msk.f32.vlgmr.msra.gmra.mrb[22].mxu1 %vm1934_vm4, %v2781_v45  ;;  %v3032_v23 = vld [vmem:[#allocation3 + $0x3] sm:$0x1]  ;;  %v3116_v21 = vld [vmem:[#allocation3 + $0x4] sm:$0x1]  ;;  %v7453_v45 = vpack.c.bf16 %v5532_v31, %v5531_v41  ;;  %v3200_v33 = vld [vmem:[#allocation3 + $0x5] sm:$0x1] }
 0x56c   : > { %7394 = vmatpush3.bf16.msra.mxu1 %v7393_v43  ;;  %6764 = vmatprep.mubr.msk.f32.mxu1 %vm7910_vm1, %v7909_v1  ;;  %v7450_v43 = vpack.c.bf16 %v5529_v37, %v5528_v39  ;;  %v3284_v58 = vld [vmem:[#allocation3 + $0x6] sm:$0x1]  ;;  %v3368_v14 = vld [vmem:[#allocation3 + $0x7] sm:$0x1]  ;;  %v5569_v39 = vld [vmem:[%s9866_s9 + $0x290] sm:$0xff] }
 0x56d   : > { %7395 = vmatprep.subr.bf16.mxu1 %v7911_v26  ;;  %v5570_v37 = vld [vmem:[%s9866_s9 + $0x298] sm:$0xff]  ;;  %v5571_v31 = vld [vmem:[%s9866_s9 + $0x2a0] sm:$0xff] }
 0x56e   : > { %v7504_v41 = vpack.c.bf16 %v5570_v37, %v5569_v39  ;;  %v5612_v39 = vld [vmem:[%s9866_s9 + $0x3c0] sm:$0xff]  ;;  %v5613_v37 = vld [vmem:[%s9866_s9 + $0x3c8] sm:$0xff] }
 0x570   : > { %7397 = vmatpush3.bf16.msra.mxu1 %v7396_v47  ;;  %v5533_v47 = vld [vmem:[%s9866_s9 + $0x190] sm:$0xff] }
 0x571   : > { %7398 = vmatprep.subr.bf16.mxu1 %v7911_v26 }
 0x574   : > { %7400 = vmatpush3.bf16.msra.mxu1 %v7399_v49  ;;  %v7456_v49 = vpack.c.bf16 %v5534_v35, %v5533_v47  ;;  %v5573_v35 = vld [vmem:[%s9866_s9 + $0x2b0] sm:$0xff] }
 0x575   : > { %7401 = vmatprep.subr.bf16.mxu1 %v7911_v26 }
 0x578   : > { %7403 = vmatpush3.bf16.msra.mxu1 %v7402_v55  ;;  %v7459_v55 = vpack.c.bf16 %v5536_v42, %v5535_v44  ;;  %v5576_v44 = vld [vmem:[%s9866_s9 + $0x2c0] sm:$0xff]  ;;  %v5577_v42 = vld [vmem:[%s9866_s9 + $0x2c8] sm:$0xff] }
 0x579   : > { %7404 = vmatprep.subr.bf16.mxu1 %v7911_v26 }
 0x57b   : > { %6765 = vmatmul.mubr.msk.f32.vlgmr.msra.gmra.mrb[22].mxu1 %vm1934_vm4, %v2864_v54  ;;  %v7465_v54 = vpack.c.bf16 %v5541_v61, %v5540_v50  ;;  %v5580_v61 = vld [vmem:[%s9866_s9 + $0x2e0] sm:$0xff] }
 0x57c   : > { %7406 = vmatpush3.bf16.msra.mxu1 %v7405_v52  ;;  %6783 = vmatprep.mubr.msk.f32.mxu1 %vm7910_vm1, %v7909_v1  ;;  %v7462_v52 = vpack.c.bf16 %v5538_v36, %v5537_v46  ;;  %v5578_v46 = vld [vmem:[%s9866_s9 + $0x2d0] sm:$0xff]  ;;  %v5579_v36 = vld [vmem:[%s9866_s9 + $0x2d8] sm:$0xff] }
 0x57d   : > { %7407 = vmatprep.subr.bf16.mxu1 %v7911_v26  ;;  %v7516_v50 = vpack.c.bf16 %v5579_v36, %v5578_v46  ;;  %v5621_v46 = vld [vmem:[%s9866_s9 + $0x400] sm:$0xff]  ;;  %v5622_v36 = vld [vmem:[%s9866_s9 + $0x408] sm:$0xff] }
 0x580   : > { %7409 = vmatpush3.bf16.msra.mxu1 %v7408_v63  ;;  %v5542_v63 = vld [vmem:[%s9866_s9 + $0x1d0] sm:$0xff] }
 0x581   : > { %7410 = vmatprep.subr.bf16.mxu1 %v7911_v26 }
 0x584   : > { %7412 = vmatpush3.bf16.msra.mxu1 %v7411_v62  ;;  %v7468_v62 = vpack.c.bf16 %v5543_v29, %v5542_v63  ;;  %v5582_v29 = vld [vmem:[%s9866_s9 + $0x2f0] sm:$0xff] }
 0x585   : > { %7413 = vmatprep.subr.bf16.mxu1 %v7911_v26 }
 0x588   : > { %7415 = vmatpush3.bf16.msra.mxu1 %v7414_v40  ;;  %v7471_v40 = vpack.c.bf16 %v5545_v56, %v5544_v3  ;;  %v5585_v3 = vld [vmem:[%s9866_s9 + $0x300] sm:$0xff]  ;;  %v5586_v56 = vld [vmem:[%s9866_s9 + $0x308] sm:$0xff] }
 0x589   : > { %7416 = vmatprep.subr.bf16.mxu1 %v7911_v26 }
 0x58b   : > { %6784 = vmatmul.mubr.msk.f32.vlgmr.msra.gmra.mrb[22].mxu1 %vm1934_vm4, %v2948_v7  ;;  %v6728_v7 = vpop.f32.mrb[238].mxu0 }
 0x58c   : > { %7418 = vmatpush3.bf16.msra.mxu1 %v7417_v60  ;;  %6802 = vmatprep.mubr.msk.f32.mxu1 %vm7910_vm1, %v7909_v1  ;;  %v7474_v60 = vpack.c.bf16 %v5547_v6, %v5546_v4  ;;  %7837 = vtanh.f32 %v6728_v7  ;;  %v5587_v4 = vld [vmem:[%s9866_s9 + $0x310] sm:$0xff]  ;;  %v5588_v6 = vld [vmem:[%s9866_s9 + $0x318] sm:$0xff]  ;;  %v5590_v7 = vld [vmem:[%s9866_s9 + $0x328] sm:$0xff] }
 0x58d   : > { %7419 = vmatprep.subr.bf16.mxu1 %v7911_v26  ;;  %v7528_v38 = vpack.c.bf16 %v5588_v6, %v5587_v4  ;;  %v5630_v4 = vld [vmem:[%s9866_s9 + $0x440] sm:$0xff]  ;;  %v5631_v6 = vld [vmem:[%s9866_s9 + $0x448] sm:$0xff] }
 0x590   : > { %7421 = vmatpush3.bf16.msra.mxu1 %v7420_v11  ;;  %v2763_v11 = vpop.f32.mrb[239].mxu0 }
 0x591   : > { %7422 = vmatprep.subr.bf16.mxu1 %v7911_v26  ;;  %7839 = vtanh.f32 %v2763_v11  ;;  %v7531_v11 = vpack.c.bf16 %v5590_v7, %v5589_v10  ;;  %v5632_v10 = vld [vmem:[%s9866_s9 + $0x450] sm:$0xff]  ;;  %v5633_v7 = vld [vmem:[%s9866_s9 + $0x458] sm:$0xff] }
 0x594   : > { %7424 = vmatpush3.bf16.msra.mxu1 %v7423_v0  ;;  %v5552_v0 = vld [vmem:[%s9866_s9 + $0x218] sm:$0xff] }
 0x595   : > { %7425 = vmatprep.subr.bf16.mxu1 %v7911_v26  ;;  %v7480_v15 = vpack.c.bf16 %v5552_v0, %v5551_v12  ;;  %v5592_v12 = vld [vmem:[%s9866_s9 + $0x338] sm:$0xff] }
 0x596   : > { %v7838_v53 = vpop.eup %7837 }
 0x597   : > { %2779 = vst.msk [vmem:[#allocation3 + $0x18] sm:$0xf] %vm1942_vm5, %v7838_v53  ;;  %v5597_v53 = vld [vmem:[%s9866_s9 + $0x358] sm:$0xff] }
 0x598   : > { %7427 = vmatpush3.bf16.msra.mxu1 %v7426_v16  ;;  %v5553_v16 = vld [vmem:[%s9866_s9 + $0x220] sm:$0xff] }
 0x599   : > { %7428 = vmatprep.subr.bf16.mxu1 %v7911_v26 }
 0x59b   : > { %6803 = vmatmul.mubr.msk.f32.vlgmr.msra.gmra.mrb[22].mxu1 %vm1934_vm4, %v3032_v23  ;;  %v7840_v20 = vpop.eup %7839  ;;  %v5556_v23 = vld [vmem:[%s9866_s9 + $0x238] sm:$0xff] }
 0x59c   : > { %7430 = vmatpush3.bf16.msra.mxu1 %v7429_v5  ;;  %6821 = vmatprep.mubr.msk.f32.mxu1 %vm7910_vm1, %v7909_v1  ;;  %v7483_v5 = vpack.c.bf16 %v5554_v51, %v5553_v16  ;;  %2778 = vst.msk [vmem:[#allocation3 + $0x10] sm:$0xff] %vm1934_vm4, %v7840_v20  ;;  %v5596_v51 = vld [vmem:[%s9866_s9 + $0x350] sm:$0xff] }
 0x59d   : > { %7431 = vmatprep.subr.bf16.mxu1 %v7911_v26  ;;  %v7540_v20 = vpack.c.bf16 %v5597_v53, %v5596_v51  ;;  %v5639_v51 = vld [vmem:[%s9866_s9 + $0x480] sm:$0xff]  ;;  %v5640_v53 = vld [vmem:[%s9866_s9 + $0x488] sm:$0xff] }
 0x5a0   : > { %7433 = vmatpush3.bf16.msra.mxu1 %v7432_v19  ;;  %v7486_v19 = vpack.c.bf16 %v5556_v23, %v5555_v18  ;;  %v5598_v18 = vld [vmem:[%s9866_s9 + $0x360] sm:$0xff]  ;;  %v5599_v23 = vld [vmem:[%s9866_s9 + $0x368] sm:$0xff] }
 0x5a1   : > { %7434 = vmatprep.subr.bf16.mxu1 %v7911_v26 }
 0x5a4   : > { %7436 = vmatpush3.bf16.msra.mxu1 %v7435_v24  ;;  %v7489_v24 = vpack.c.bf16 %v5559_v9, %v5558_v48  ;;  %v5600_v48 = vld [vmem:[%s9866_s9 + $0x370] sm:$0xff]  ;;  %v5601_v9 = vld [vmem:[%s9866_s9 + $0x378] sm:$0xff] }
 0x5a5   : > { %7437 = vmatprep.subr.bf16.mxu1 %v7911_v26 }
 0x5a8   : > { %7439 = vmatpush3.bf16.msra.mxu1 %v7438_v59  ;;  %v3452_v59 = vld [vmem:[#allocation3 + $0x8] sm:$0x1] }
 0x5a9   : > { %7440 = vmatprep.subr.bf16.mxu1 %v7911_v26 }
 0x5ab   : > { %6822 = vmatmul.mubr.msk.f32.vlgmr.msra.gmra.mrb[22].mxu1 %vm1934_vm4, %v3116_v21  ;;  %v5565_v21 = vld [vmem:[%s9866_s9 + $0x278] sm:$0xff] }
 0x5ac   : > { %7442 = vmatpush3.bf16.msra.mxu1 %v7441_v17  ;;  %6840 = vmatprep.mubr.msk.f32.mxu1 %vm7910_vm1, %v7909_v1  ;;  %v5563_v17 = vld [vmem:[%s9866_s9 + $0x268] sm:$0xff] }
 0x5ad   : > { %7443 = vmatprep.subr.bf16.mxu1 %v7911_v26  ;;  %v7495_v22 = vpack.c.bf16 %v5563_v17, %v5562_v2  ;;  %v5606_v2 = vld [vmem:[%s9866_s9 + $0x398] sm:$0xff]  ;;  %v3872_v17 = vld [vmem:[#allocation3 + $0xd] sm:$0x1] }
 0x5b0   : > { %7445 = vmatpush3.bf16.msra.mxu1 %v7444_v27  ;;  %v7498_v27 = vpack.c.bf16 %v5565_v21, %v5564_v30  ;;  %v5607_v30 = vld [vmem:[%s9866_s9 + $0x3a0] sm:$0xff]  ;;  %v5608_v21 = vld [vmem:[%s9866_s9 + $0x3a8] sm:$0xff] }
 0x5b1   : > { %7446 = vmatprep.subr.bf16.mxu1 %v7911_v26 }
 0x5b4   : > { %7448 = vmatpush3.bf16.msra.mxu1 %v7447_v25  ;;  %v7501_v25 = vpack.c.bf16 %v5568_v34, %v5567_v32  ;;  %v5609_v32 = vld [vmem:[%s9866_s9 + $0x3b0] sm:$0xff]  ;;  %v5610_v34 = vld [vmem:[%s9866_s9 + $0x3b8] sm:$0xff] }
 0x5b5   : > { %7449 = vmatprep.subr.bf16.mxu1 %v7911_v26 }
 0x5b8   : > { %7451 = vmatpush3.bf16.msra.mxu1 %v7450_v43  ;;  %v3536_v43 = vld [vmem:[#allocation3 + $0x9] sm:$0x1] }
 0x5b9   : > { %7452 = vmatprep.subr.bf16.mxu1 %v7911_v26 }
 0x5bb   : > { %6841 = vmatmul.mubr.msk.f32.vlgmr.msra.gmra.mrb[22].mxu1 %vm1934_vm4, %v3200_v33  ;;  %v5574_v33 = vld [vmem:[%s9866_s9 + $0x2b8] sm:$0xff] }
 0x5bc   : > { %7454 = vmatpush3.bf16.msra.mxu1 %v7453_v45  ;;  %6859 = vmatprep.mubr.msk.f32.mxu1 %vm7910_vm1, %v7909_v1  ;;  %v5572_v45 = vld [vmem:[%s9866_s9 + $0x2a8] sm:$0xff] }
 0x5bd   : > { %7455 = vmatprep.subr.bf16.mxu1 %v7911_v26  ;;  %v7507_v47 = vpack.c.bf16 %v5572_v45, %v5571_v31  ;;  %v5615_v31 = vld [vmem:[%s9866_s9 + $0x3d8] sm:$0xff]  ;;  %v3956_v45 = vld [vmem:[#allocation3 + $0xe] sm:$0x1] }
 0x5c0   : > { %7457 = vmatpush3.bf16.msra.mxu1 %v7456_v49  ;;  %v7510_v49 = vpack.c.bf16 %v5574_v33, %v5573_v35  ;;  %v5616_v35 = vld [vmem:[%s9866_s9 + $0x3e0] sm:$0xff]  ;;  %v5617_v33 = vld [vmem:[%s9866_s9 + $0x3e8] sm:$0xff] }
 0x5c1   : > { %7458 = vmatprep.subr.bf16.mxu1 %v7911_v26 }
 0x5c4   : > { %7460 = vmatpush3.bf16.msra.mxu1 %v7459_v55  ;;  %v7513_v55 = vpack.c.bf16 %v5577_v42, %v5576_v44  ;;  %v5618_v44 = vld [vmem:[%s9866_s9 + $0x3f0] sm:$0xff]  ;;  %v5619_v42 = vld [vmem:[%s9866_s9 + $0x3f8] sm:$0xff] }
 0x5c5   : > { %7461 = vmatprep.subr.bf16.mxu1 %v7911_v26 }
 0x5c8   : > { %7463 = vmatpush3.bf16.msra.mxu1 %v7462_v52  ;;  %v3620_v52 = vld [vmem:[#allocation3 + $0xa] sm:$0x1] }
 0x5c9   : > { %7464 = vmatprep.subr.bf16.mxu1 %v7911_v26 }
 0x5cb   : > { %6860 = vmatmul.mubr.msk.f32.vlgmr.msra.gmra.mrb[22].mxu1 %vm1934_vm4, %v3284_v58  ;;  %v5583_v58 = vld [vmem:[%s9866_s9 + $0x2f8] sm:$0xff] }
 0x5cc   : > { %7466 = vmatpush3.bf16.msra.mxu1 %v7465_v54  ;;  %6878 = vmatprep.mubr.msk.f32.mxu1 %vm7910_vm1, %v7909_v1  ;;  %v5581_v54 = vld [vmem:[%s9866_s9 + $0x2e8] sm:$0xff] }
 0x5cd   : > { %7467 = vmatprep.subr.bf16.mxu1 %v7911_v26  ;;  %v7519_v63 = vpack.c.bf16 %v5581_v54, %v5580_v61  ;;  %v5624_v61 = vld [vmem:[%s9866_s9 + $0x418] sm:$0xff]  ;;  %v4040_v54 = vld [vmem:[#allocation3 + $0xf] sm:$0x1] }
 0x5d0   : > { %7469 = vmatpush3.bf16.msra.mxu1 %v7468_v62  ;;  %v7522_v62 = vpack.c.bf16 %v5583_v58, %v5582_v29  ;;  %v5625_v29 = vld [vmem:[%s9866_s9 + $0x420] sm:$0xff]  ;;  %v5626_v58 = vld [vmem:[%s9866_s9 + $0x428] sm:$0xff] }
 0x5d1   : > { %7470 = vmatprep.subr.bf16.mxu1 %v7911_v26 }
 0x5d4   : > { %7472 = vmatpush3.bf16.msra.mxu1 %v7471_v40  ;;  %v7525_v40 = vpack.c.bf16 %v5586_v56, %v5585_v3  ;;  %v5627_v3 = vld [vmem:[%s9866_s9 + $0x430] sm:$0xff]  ;;  %v5628_v56 = vld [vmem:[%s9866_s9 + $0x438] sm:$0xff] }
 0x5d5   : > { %7473 = vmatprep.subr.bf16.mxu1 %v7911_v26 }
 0x5d8   : > { %7475 = vmatpush3.bf16.msra.mxu1 %v7474_v60  ;;  %v3704_v60 = vld [vmem:[#allocation3 + $0xb] sm:$0x1] }
 0x5d9   : > { %7476 = vmatprep.subr.bf16.mxu1 %v7911_v26 }
 0x5db   : > { %6879 = vmatmul.mubr.msk.f32.vlgmr.msra.gmra.mrb[22].mxu1 %vm1934_vm4, %v3368_v14  ;;  %v5594_v14 = vld [vmem:[%s9866_s9 + $0x340] sm:$0xff] }
 0x5dc   : > { %7478 = vmatpush3.bf16.msra.mxu1 %v7477_v8  ;;  %6897 = vmatprep.mubr.msk.f32.mxu1 %vm7910_vm1, %v7909_v1  ;;  %v5591_v8 = vld [vmem:[%s9866_s9 + $0x330] sm:$0xff] }
 0x5dd   : > { %7479 = vmatprep.subr.bf16.mxu1 %v7911_v26  ;;  %v7534_v0 = vpack.c.bf16 %v5592_v12, %v5591_v8  ;;  %v5634_v8 = vld [vmem:[%s9866_s9 + $0x460] sm:$0xff]  ;;  %v5635_v12 = vld [vmem:[%s9866_s9 + $0x468] sm:$0xff] }
 0x5e0   : > { %7481 = vmatpush3.bf16.msra.mxu1 %v7480_v15  ;;  %v5595_v15 = vld [vmem:[%s9866_s9 + $0x348] sm:$0xff] }
 0x5e1   : > { %7482 = vmatprep.subr.bf16.mxu1 %v7911_v26  ;;  %v7537_v16 = vpack.c.bf16 %v5595_v15, %v5594_v14  ;;  %v5636_v14 = vld [vmem:[%s9866_s9 + $0x470] sm:$0xff]  ;;  %v5637_v15 = vld [vmem:[%s9866_s9 + $0x478] sm:$0xff] }
 0x5e4   : > { %7484 = vmatpush3.bf16.msra.mxu1 %v7483_v5  ;;  %v3788_v5 = vld [vmem:[#allocation3 + $0xc] sm:$0x1] }
 0x5e5   : > { %7485 = vmatprep.subr.bf16.mxu1 %v7911_v26 }
 0x5e8   : > { %7487 = vmatpush3.bf16.msra.mxu1 %v7486_v19  ;;  %v7543_v19 = vpack.c.bf16 %v5599_v23, %v5598_v18  ;;  %v5642_v18 = vld [vmem:[%s9866_s9 + $0x498] sm:$0xff]  ;;  %v4208_v23 = vld [vmem:[#allocation3 + $0x11] sm:$0x1] }
 0x5e9   : > { %7488 = vmatprep.subr.bf16.mxu1 %v7911_v26 }
 0x5eb   : > { %6898 = vmatmul.mubr.msk.f32.vlgmr.msra.gmra.mrb[22].mxu1 %vm1934_vm4, %v3452_v59  ;;  %v7549_v59 = vpack.c.bf16 %v5604_v13, %v5603_v57  ;;  %v5645_v57 = vld [vmem:[%s9866_s9 + $0x4b0] sm:$0xff]  ;;  %v5646_v13 = vld [vmem:[%s9866_s9 + $0x4b8] sm:$0xff] }
 0x5ec   : > { %7490 = vmatpush3.bf16.msra.mxu1 %v7489_v24  ;;  %6916 = vmatprep.mubr.msk.f32.mxu1 %vm7910_vm1, %v7909_v1  ;;  %v7546_v24 = vpack.c.bf16 %v5601_v9, %v5600_v48  ;;  %v5643_v48 = vld [vmem:[%s9866_s9 + $0x4a0] sm:$0xff]  ;;  %v5644_v9 = vld [vmem:[%s9866_s9 + $0x4a8] sm:$0xff] }
 0x5ed   : > { %7491 = vmatprep.subr.bf16.mxu1 %v7911_v26 }
 0x5f0   : > { %7493 = vmatpush3.bf16.msra.mxu1 %v7492_v28  ;;  %v5605_v28 = vld [vmem:[%s9866_s9 + $0x390] sm:$0xff] }
 0x5f1   : > { %7494 = vmatprep.subr.bf16.mxu1 %v7911_v26 }
 0x5f4   : > { %7496 = vmatpush3.bf16.msra.mxu1 %v7495_v22  ;;  %v7552_v22 = vpack.c.bf16 %v5606_v2, %v5605_v28  ;;  %v5648_v28 = vld [vmem:[%s9866_s9 + $0x4c0] sm:$0xff]  ;;  %v5649_v2 = vld [vmem:[%s9866_s9 + $0x4c8] sm:$0xff] }
 0x5f5   : > { %7497 = vmatprep.subr.bf16.mxu1 %v7911_v26 }
 0x5f8   : > { %7499 = vmatpush3.bf16.msra.mxu1 %v7498_v27  ;;  %v7555_v27 = vpack.c.bf16 %v5608_v21, %v5607_v30  ;;  %v5651_v30 = vld [vmem:[%s9866_s9 + $0x4d8] sm:$0xff]  ;;  %v4292_v21 = vld [vmem:[#allocation3 + $0x12] sm:$0x1] }
 0x5f9   : > { %7500 = vmatprep.subr.bf16.mxu1 %v7911_v26 }
 0x5fb   : > { %6917 = vmatmul.mubr.msk.f32.vlgmr.msra.gmra.mrb[22].mxu1 %vm1934_vm4, %v3536_v43  ;;  %v7561_v43 = vpack.c.bf16 %v5613_v37, %v5612_v39  ;;  %v5654_v39 = vld [vmem:[%s9866_s9 + $0x4f0] sm:$0xff]  ;;  %v5655_v37 = vld [vmem:[%s9866_s9 + $0x4f8] sm:$0xff] }
 0x5fc   : > { %7502 = vmatpush3.bf16.msra.mxu1 %v7501_v25  ;;  %6935 = vmatprep.mubr.msk.f32.mxu1 %vm7910_vm1, %v7909_v1  ;;  %v7558_v25 = vpack.c.bf16 %v5610_v34, %v5609_v32  ;;  %v5652_v32 = vld [vmem:[%s9866_s9 + $0x4e0] sm:$0xff]  ;;  %v5653_v34 = vld [vmem:[%s9866_s9 + $0x4e8] sm:$0xff] }
 0x5fd   : > { %7503 = vmatprep.subr.bf16.mxu1 %v7911_v26 }
 0x600   : > { %7505 = vmatpush3.bf16.msra.mxu1 %v7504_v41  ;;  %v5614_v41 = vld [vmem:[%s9866_s9 + $0x3d0] sm:$0xff] }
 0x601   : > { %7506 = vmatprep.subr.bf16.mxu1 %v7911_v26 }
 0x604   : > { %7508 = vmatpush3.bf16.msra.mxu1 %v7507_v47  ;;  %v7564_v47 = vpack.c.bf16 %v5615_v31, %v5614_v41  ;;  %v5657_v41 = vld [vmem:[%s9866_s9 + $0x500] sm:$0xff]  ;;  %v5658_v31 = vld [vmem:[%s9866_s9 + $0x508] sm:$0xff] }
 0x605   : > { %7509 = vmatprep.subr.bf16.mxu1 %v7911_v26 }
 0x608   : > { %7511 = vmatpush3.bf16.msra.mxu1 %v7510_v49  ;;  %v7567_v49 = vpack.c.bf16 %v5617_v33, %v5616_v35  ;;  %v5660_v35 = vld [vmem:[%s9866_s9 + $0x518] sm:$0xff]  ;;  %v4376_v33 = vld [vmem:[#allocation3 + $0x13] sm:$0x1] }
 0x609   : > { %7512 = vmatprep.subr.bf16.mxu1 %v7911_v26 }
 0x60b   : > { %6936 = vmatmul.mubr.msk.f32.vlgmr.msra.gmra.mrb[22].mxu1 %vm1934_vm4, %v3620_v52  ;;  %v7573_v52 = vpack.c.bf16 %v5622_v36, %v5621_v46  ;;  %v5135_v36 = vld [vmem:[%s9868_s11 + $0x18] sm:$0xff] }
 0x60c   : > { %7514 = vmatpush3.bf16.msra.mxu1 %v7513_v55  ;;  %6954 = vmatprep.mubr.msk.f32.mxu1 %vm7910_vm1, %v7909_v1  ;;  %v7570_v55 = vpack.c.bf16 %v5619_v42, %v5618_v44  ;;  %v5133_v44 = vld [vmem:[%s9868_s11 + $0x8] sm:$0xff]  ;;  %v5134_v42 = vld [vmem:[%s9868_s11 + $0x10] sm:$0xff] }
 0x60d   : > { %7515 = vmatprep.subr.bf16.mxu1 %v7911_v26 }
 0x610   : > { %7517 = vmatpush3.bf16.msra.mxu1 %v7516_v50  ;;  %v5623_v50 = vld [vmem:[%s9866_s9 + $0x410] sm:$0xff] }
 0x611   : > { %7518 = vmatprep.subr.bf16.mxu1 %v7911_v26 }
 0x614   : > { %7520 = vmatpush3.bf16.msra.mxu1 %v7519_v63  ;;  %v7576_v63 = vpack.c.bf16 %v5624_v61, %v5623_v50  ;;  %v5662_v50 = vld [vmem:[%s9866_s9 + $0x528] sm:$0xff]  ;;  %v7720_v61 = vpack.c.bf16 %v5135_v36, %v5134_v42 }
 0x615   : > { %7521 = vmatprep.subr.bf16.mxu1 %v7911_v26 }
 0x618   : > { %7523 = vmatpush3.bf16.msra.mxu1 %v7522_v62  ;;  %v7579_v62 = vpack.c.bf16 %v5626_v58, %v5625_v29  ;;  %v5663_v58 = vld [vmem:[%s9866_s9 + $0x530] sm:$0xff] }
 0x619   : > { %7524 = vmatprep.subr.bf16.mxu1 %v7911_v26 }
 0x61b   : > { %6955 = vmatmul.mubr.msk.f32.vlgmr.msra.gmra.mrb[22].mxu1 %vm1934_vm4, %v3704_v60  ;;  %v4124_v60 = vld [vmem:[#allocation3 + $0x10] sm:$0x1] }
 0x61c   : > { %7526 = vmatpush3.bf16.msra.mxu1 %v7525_v40  ;;  %6973 = vmatprep.mubr.msk.f32.mxu1 %vm7910_vm1, %v7909_v1  ;;  %v7582_v40 = vpack.c.bf16 %v5628_v56, %v5627_v3 }
 0x61d   : > { %7527 = vmatprep.subr.bf16.mxu1 %v7911_v26 }
 0x620   : > { %7529 = vmatpush3.bf16.msra.mxu1 %v7528_v38  ;;  %v7585_v38 = vpack.c.bf16 %v5631_v6, %v5630_v4  ;;  %v5667_v4 = vld [vmem:[%s9866_s9 + $0x548] sm:$0xff] }
 0x621   : > { %7530 = vmatprep.subr.bf16.mxu1 %v7911_v26 }
 0x624   : > { %7532 = vmatpush3.bf16.msra.mxu1 %v7531_v11  ;;  %v7588_v11 = vpack.c.bf16 %v5633_v7, %v5632_v10  ;;  %v4460_v10 = vld [vmem:[#allocation3 + $0x14] sm:$0x1] }
 0x625   : > { %7533 = vmatprep.subr.bf16.mxu1 %v7911_v26 }
 0x628   : > { %7535 = vmatpush3.bf16.msra.mxu1 %v7534_v0  ;;  %v7591_v0 = vpack.c.bf16 %v5635_v12, %v5634_v8  ;;  %v5671_v8 = vld [vmem:[%s9866_s9 + $0x568] sm:$0xff] }
 0x629   : > { %7536 = vmatprep.subr.bf16.mxu1 %v7911_v26 }
 0x62b   : > { %6974 = vmatmul.mubr.msk.f32.vlgmr.msra.gmra.mrb[22].mxu1 %vm1934_vm4, %v3788_v5  ;;  %v7597_v5 = vpack.c.bf16 %v5640_v53, %v5639_v51  ;;  %v5676_v51 = vld [vmem:[%s9866_s9 + $0x588] sm:$0xff] }
 0x62c   : > { %7538 = vmatpush3.bf16.msra.mxu1 %v7537_v16  ;;  %6992 = vmatprep.mubr.msk.f32.mxu1 %vm7910_vm1, %v7909_v1  ;;  %v7594_v16 = vpack.c.bf16 %v5637_v15, %v5636_v14  ;;  %v5673_v14 = vld [vmem:[%s9866_s9 + $0x578] sm:$0xff] }
 0x62d   : > { %7539 = vmatprep.subr.bf16.mxu1 %v7911_v26 }
 0x630   : > { %7541 = vmatpush3.bf16.msra.mxu1 %v7540_v20  ;;  %v5641_v20 = vld [vmem:[%s9866_s9 + $0x490] sm:$0xff] }
 0x631   : > { %7542 = vmatprep.subr.bf16.mxu1 %v7911_v26 }
 0x634   : > { %7544 = vmatpush3.bf16.msra.mxu1 %v7543_v19  ;;  %v7600_v19 = vpack.c.bf16 %v5642_v18, %v5641_v20  ;;  %v5678_v20 = vld [vmem:[%s9866_s9 + $0x598] sm:$0xff]  ;;  %v4544_v18 = vld [vmem:[#allocation3 + $0x15] sm:$0x1] }
 0x635   : > { %7545 = vmatprep.subr.bf16.mxu1 %v7911_v26 }
 0x638   : > { %7547 = vmatpush3.bf16.msra.mxu1 %v7546_v24  ;;  %v7603_v24 = vpack.c.bf16 %v5644_v9, %v5643_v48  ;;  %v5680_v48 = vld [vmem:[%s9866_s9 + $0x5a8] sm:$0xff] }
 0x639   : > { %7548 = vmatprep.subr.bf16.mxu1 %v7911_v26 }
 0x63b   : > { %6993 = vmatmul.mubr.msk.f32.vlgmr.msra.gmra.mrb[22].mxu1 %vm1934_vm4, %v3872_v17  ;;  %v7609_v17 = vpack.c.bf16 %v5649_v2, %v5648_v28  ;;  %v5685_v28 = vld [vmem:[%s9866_s9 + $0x5c8] sm:$0xff] }
 0x63c   : > { %7550 = vmatpush3.bf16.msra.mxu1 %v7549_v59  ;;  %7011 = vmatprep.mubr.msk.f32.mxu1 %vm7910_vm1, %v7909_v1  ;;  %v7606_v59 = vpack.c.bf16 %v5646_v13, %v5645_v57  ;;  %v5682_v57 = vld [vmem:[%s9866_s9 + $0x5b8] sm:$0xff] }
 0x63d   : > { %7551 = vmatprep.subr.bf16.mxu1 %v7911_v26 }
 0x640   : > { %7553 = vmatpush3.bf16.msra.mxu1 %v7552_v22  ;;  %v5650_v22 = vld [vmem:[%s9866_s9 + $0x4d0] sm:$0xff] }
 0x641   : > { %7554 = vmatprep.subr.bf16.mxu1 %v7911_v26 }
 0x644   : > { %7556 = vmatpush3.bf16.msra.mxu1 %v7555_v27  ;;  %v7612_v27 = vpack.c.bf16 %v5651_v30, %v5650_v22  ;;  %v5687_v22 = vld [vmem:[%s9866_s9 + $0x5d8] sm:$0xff]  ;;  %v4628_v30 = vld [vmem:[#allocation3 + $0x16] sm:$0x1] }
 0x645   : > { %7557 = vmatprep.subr.bf16.mxu1 %v7911_v26 }
 0x648   : > { %7559 = vmatpush3.bf16.msra.mxu1 %v7558_v25  ;;  %v7615_v25 = vpack.c.bf16 %v5653_v34, %v5652_v32  ;;  %v5689_v32 = vld [vmem:[%s9866_s9 + $0x5e8] sm:$0xff] }
 0x649   : > { %7560 = vmatprep.subr.bf16.mxu1 %v7911_v26 }
 0x64b   : > { %7012 = vmatmul.mubr.msk.f32.vlgmr.msra.gmra.mrb[22].mxu1 %vm1934_vm4, %v3956_v45  ;;  %v7621_v45 = vpack.c.bf16 %v5658_v31, %v5657_v41  ;;  %v5694_v41 = vld [vmem:[%s9866_s9 + $0x608] sm:$0xff] }
 0x64c   : > { %7562 = vmatpush3.bf16.msra.mxu1 %v7561_v43  ;;  %7030 = vmatprep.mubr.msk.f32.mxu1 %vm7910_vm1, %v7909_v1  ;;  %v7618_v43 = vpack.c.bf16 %v5655_v37, %v5654_v39  ;;  %v5691_v39 = vld [vmem:[%s9866_s9 + $0x5f8] sm:$0xff] }
 0x64d   : > { %7563 = vmatprep.subr.bf16.mxu1 %v7911_v26 }
 0x650   : > { %7565 = vmatpush3.bf16.msra.mxu1 %v7564_v47  ;;  %v5659_v47 = vld [vmem:[%s9866_s9 + $0x510] sm:$0xff] }
 0x651   : > { %7566 = vmatprep.subr.bf16.mxu1 %v7911_v26 }
 0x654   : > { %7568 = vmatpush3.bf16.msra.mxu1 %v7567_v49  ;;  %v5132_v49 = vld [vmem:[%s9868_s11] sm:$0xff] }
 0x655   : > { %7569 = vmatprep.subr.bf16.mxu1 %v7911_v26  ;;  %v7717_v46 = vpack.c.bf16 %v5133_v44, %v5132_v49  ;;  %v5697_v49 = vld [vmem:[%s9866_s9 + $0x620] sm:$0xff]  ;;  %v5698_v44 = vld [vmem:[%s9866_s9 + $0x628] sm:$0xff] }
 0x656   : > { %v7675_v42 = vpack.c.bf16 %v5698_v44, %v5697_v49 }
 0x657   : > { %7718 = vmatpush3.bf16.msra.mxu0 %v7717_v46  ;;  %v5700_v46 = vld [vmem:[%s9866_s9 + $0x638] sm:$0xff] }
 0x658   : > { %7571 = vmatpush3.bf16.msra.mxu1 %v7570_v55  ;;  %v7624_v55 = vpack.c.bf16 %v5660_v35, %v5659_v47  ;;  %7719 = vmatprep.subr.bf16.mxu0 %v7911_v26  ;;  %v5696_v47 = vld [vmem:[%s9866_s9 + $0x618] sm:$0xff]  ;;  %v4712_v35 = vld [vmem:[#allocation3 + $0x17] sm:$0x1] }
 0x659   : > { %7572 = vmatprep.subr.bf16.mxu1 %v7911_v26 }
 0x65b   : > { %7031 = vmatmul.mubr.msk.f32.vlgmr.msra.gmra.mrb[22].mxu1 %vm1934_vm4, %v4040_v54  ;;  %v5136_v54 = vld [vmem:[%s9868_s11 + $0x20] sm:$0xff]  ;;  %7721 = vmatpush3.bf16.msra.mxu0 %v7720_v61 }
 0x65c   : > { %7574 = vmatpush3.bf16.msra.mxu1 %v7573_v52  ;;  %7049 = vmatprep.mubr.msk.f32.mxu1 %vm7910_vm1, %v7909_v1  ;;  %v5661_v52 = vld [vmem:[%s9866_s9 + $0x520] sm:$0xff] }
 0x65d   : > { %7575 = vmatprep.subr.bf16.mxu1 %v7911_v26  ;;  %v7627_v29 = vpack.c.bf16 %v5662_v50, %v5661_v52  ;;  %7722 = vmatprep.subr.bf16.mxu0 %v7911_v26  ;;  %v5702_v52 = vld [vmem:[%s9866_s9 + $0x640] sm:$0xff]  ;;  %v5703_v50 = vld [vmem:[%s9866_s9 + $0x648] sm:$0xff] }
 0x65e   : > { %v7681_v61 = vpack.c.bf16 %v5703_v50, %v5702_v52 }
 0x660   : > { %7577 = vmatpush3.bf16.msra.mxu1 %v7576_v63  ;;  %v5137_v63 = vld [vmem:[%s9868_s11 + $0x28] sm:$0xff] }
 0x661   : > { %7578 = vmatprep.subr.bf16.mxu1 %v7911_v26  ;;  %v7723_v3 = vpack.c.bf16 %v5137_v63, %v5136_v54  ;;  %v5704_v54 = vld [vmem:[%s9866_s9 + $0x650] sm:$0xff]  ;;  %v5705_v63 = vld [vmem:[%s9866_s9 + $0x658] sm:$0xff] }
 0x663   : > { %7724 = vmatpush3.bf16.msra.mxu0 %v7723_v3  ;;  %v5707_v3 = vld [vmem:[%s9866_s9 + $0x668] sm:$0xff] }
 0x664   : > { %7580 = vmatpush3.bf16.msra.mxu1 %v7579_v62  ;;  %v5664_v62 = vld [vmem:[%s9866_s9 + $0x538] sm:$0xff]  ;;  %7725 = vmatprep.subr.bf16.mxu0 %v7911_v26 }
 0x665   : > { %7581 = vmatprep.subr.bf16.mxu1 %v7911_v26  ;;  %v7630_v56 = vpack.c.bf16 %v5664_v62, %v5663_v58  ;;  %v7684_v58 = vpack.c.bf16 %v5705_v63, %v5704_v54  ;;  %v5706_v62 = vld [vmem:[%s9866_s9 + $0x660] sm:$0xff] }
 0x668   : > { %7583 = vmatpush3.bf16.msra.mxu1 %v7582_v40  ;;  %v5666_v40 = vld [vmem:[%s9866_s9 + $0x540] sm:$0xff] }
 0x669   : > { %7584 = vmatprep.subr.bf16.mxu1 %v7911_v26  ;;  %v7633_v6 = vpack.c.bf16 %v5667_v4, %v5666_v40  ;;  %v5708_v40 = vld [vmem:[%s9866_s9 + $0x670] sm:$0xff]  ;;  %v5709_v4 = vld [vmem:[%s9866_s9 + $0x678] sm:$0xff] }
 0x66b   : > { %7050 = vmatmul.mubr.msk.f32.vlgmr.msra.gmra.mrb[22].mxu1 %vm1934_vm4, %v4124_v60  ;;  %v5668_v60 = vld [vmem:[%s9866_s9 + $0x550] sm:$0xff] }
 0x66c   : > { %7586 = vmatpush3.bf16.msra.mxu1 %v7585_v38  ;;  %7068 = vmatprep.mubr.msk.f32.mxu1 %vm7910_vm1, %v7909_v1  ;;  %v5669_v38 = vld [vmem:[%s9866_s9 + $0x558] sm:$0xff] }
 0x66d   : > { %7587 = vmatprep.subr.bf16.mxu1 %v7911_v26  ;;  %v7636_v7 = vpack.c.bf16 %v5669_v38, %v5668_v60  ;;  %v5711_v60 = vld [vmem:[%s9866_s9 + $0x680] sm:$0xff]  ;;  %v5712_v38 = vld [vmem:[%s9866_s9 + $0x688] sm:$0xff] }
 0x670   : > { %7589 = vmatpush3.bf16.msra.mxu1 %v7588_v11  ;;  %v5670_v11 = vld [vmem:[%s9866_s9 + $0x560] sm:$0xff] }
 0x671   : > { %7590 = vmatprep.subr.bf16.mxu1 %v7911_v26  ;;  %v7639_v12 = vpack.c.bf16 %v5671_v8, %v5670_v11  ;;  %v5714_v11 = vld [vmem:[%s9866_s9 + $0x698] sm:$0xff] }
 0x672   : > { %v4880_v8 = vld [vmem:[#allocation3 + $0x19] sm:$0x1] }
 0x674   : > { %7592 = vmatpush3.bf16.msra.mxu1 %v7591_v0  ;;  %v5672_v0 = vld [vmem:[%s9866_s9 + $0x570] sm:$0xff] }
 0x675   : > { %7593 = vmatprep.subr.bf16.mxu1 %v7911_v26  ;;  %v7642_v15 = vpack.c.bf16 %v5673_v14, %v5672_v0  ;;  %v5715_v0 = vld [vmem:[%s9866_s9 + $0x6a0] sm:$0xff]  ;;  %v5716_v14 = vld [vmem:[%s9866_s9 + $0x6a8] sm:$0xff] }
 0x678   : > { %7595 = vmatpush3.bf16.msra.mxu1 %v7594_v16  ;;  %v5675_v16 = vld [vmem:[%s9866_s9 + $0x580] sm:$0xff] }
 0x679   : > { %7596 = vmatprep.subr.bf16.mxu1 %v7911_v26  ;;  %v7645_v53 = vpack.c.bf16 %v5676_v51, %v5675_v16  ;;  %v5717_v16 = vld [vmem:[%s9866_s9 + $0x6b0] sm:$0xff]  ;;  %v5718_v51 = vld [vmem:[%s9866_s9 + $0x6b8] sm:$0xff] }
 0x67b   : > { %7069 = vmatmul.mubr.msk.f32.vlgmr.msra.gmra.mrb[22].mxu1 %vm1934_vm4, %v4208_v23 }
 0x67c   : > { %7598 = vmatpush3.bf16.msra.mxu1 %v7597_v5  ;;  %7087 = vmatprep.mubr.msk.f32.mxu1 %vm7910_vm1, %v7909_v1  ;;  %v5677_v5 = vld [vmem:[%s9866_s9 + $0x590] sm:$0xff] }
 0x67d   : > { %7599 = vmatprep.subr.bf16.mxu1 %v7911_v26  ;;  %v7648_v23 = vpack.c.bf16 %v5678_v20, %v5677_v5  ;;  %v5720_v5 = vld [vmem:[%s9866_s9 + $0x6c0] sm:$0xff]  ;;  %v5721_v20 = vld [vmem:[%s9866_s9 + $0x6c8] sm:$0xff] }
 0x680   : > { %7601 = vmatpush3.bf16.msra.mxu1 %v7600_v19  ;;  %v5679_v19 = vld [vmem:[%s9866_s9 + $0x5a0] sm:$0xff] }
 0x681   : > { %7602 = vmatprep.subr.bf16.mxu1 %v7911_v26  ;;  %v7651_v9 = vpack.c.bf16 %v5680_v48, %v5679_v19  ;;  %v5723_v19 = vld [vmem:[%s9866_s9 + $0x6d8] sm:$0xff] }
 0x682   : > { %v4964_v48 = vld [vmem:[#allocation3 + $0x1a] sm:$0x1] }
 0x684   : > { %7604 = vmatpush3.bf16.msra.mxu1 %v7603_v24  ;;  %v5681_v24 = vld [vmem:[%s9866_s9 + $0x5b0] sm:$0xff] }
 0x685   : > { %7605 = vmatprep.subr.bf16.mxu1 %v7911_v26  ;;  %v7654_v13 = vpack.c.bf16 %v5682_v57, %v5681_v24  ;;  %v5724_v24 = vld [vmem:[%s9866_s9 + $0x6e0] sm:$0xff]  ;;  %v5725_v57 = vld [vmem:[%s9866_s9 + $0x6e8] sm:$0xff] }
 0x688   : > { %7607 = vmatpush3.bf16.msra.mxu1 %v7606_v59  ;;  %v5684_v59 = vld [vmem:[%s9866_s9 + $0x5c0] sm:$0xff] }
 0x689   : > { %7608 = vmatprep.subr.bf16.mxu1 %v7911_v26  ;;  %v7657_v2 = vpack.c.bf16 %v5685_v28, %v5684_v59  ;;  %v5726_v59 = vld [vmem:[%s9866_s9 + $0x6f0] sm:$0xff] }
 0x68b   : > { %7088 = vmatmul.mubr.msk.f32.vlgmr.msra.gmra.mrb[22].mxu1 %vm1934_vm4, %v4292_v21 }
 0x68c   : > { %7610 = vmatpush3.bf16.msra.mxu1 %v7609_v17  ;;  %7106 = vmatprep.mubr.msk.f32.mxu1 %vm7910_vm1, %v7909_v1  ;;  %v5686_v17 = vld [vmem:[%s9866_s9 + $0x5d0] sm:$0xff] }
 0x68d   : > { %7611 = vmatprep.subr.bf16.mxu1 %v7911_v26  ;;  %v7660_v21 = vpack.c.bf16 %v5687_v22, %v5686_v17  ;;  %v5138_v17 = vld [vmem:[%s9868_s11 + $0x30] sm:$0xff]  ;;  %v5139_v22 = vld [vmem:[%s9868_s11 + $0x38] sm:$0xff] }
 0x690   : > { %7613 = vmatpush3.bf16.msra.mxu1 %v7612_v27  ;;  %v5688_v27 = vld [vmem:[%s9866_s9 + $0x5e0] sm:$0xff] }
 0x691   : > { %7614 = vmatprep.subr.bf16.mxu1 %v7911_v26  ;;  %v7663_v34 = vpack.c.bf16 %v5689_v32, %v5688_v27 }
 0x694   : > { %7616 = vmatpush3.bf16.msra.mxu1 %v7615_v25  ;;  %v5690_v25 = vld [vmem:[%s9866_s9 + $0x5f0] sm:$0xff] }
 0x695   : > { %7617 = vmatprep.subr.bf16.mxu1 %v7911_v26  ;;  %v7666_v37 = vpack.c.bf16 %v5691_v39, %v5690_v25 }
 0x698   : > { %7619 = vmatpush3.bf16.msra.mxu1 %v7618_v43  ;;  %v5693_v43 = vld [vmem:[%s9866_s9 + $0x600] sm:$0xff] }
 0x699   : > { %7620 = vmatprep.subr.bf16.mxu1 %v7911_v26  ;;  %v7669_v31 = vpack.c.bf16 %v5694_v41, %v5693_v43 }
 0x69b   : > { %7107 = vmatmul.mubr.msk.f32.vlgmr.msra.gmra.mrb[22].mxu1 %vm1934_vm4, %v4376_v33 }
 0x69c   : > { %7622 = vmatpush3.bf16.msra.mxu1 %v7621_v45  ;;  %7125 = vmatprep.mubr.msk.f32.mxu1 %vm7910_vm1, %v7909_v1  ;;  %v5695_v45 = vld [vmem:[%s9866_s9 + $0x610] sm:$0xff] }
 0x69d   : > { %7623 = vmatprep.subr.bf16.mxu1 %v7911_v26  ;;  %v7672_v33 = vpack.c.bf16 %v5696_v47, %v5695_v45 }
 0x6a0   : > { %7625 = vmatpush3.bf16.msra.mxu1 %v7624_v55  ;;  %v5699_v55 = vld [vmem:[%s9866_s9 + $0x630] sm:$0xff] }
 0x6a1   : > { %7626 = vmatprep.subr.bf16.mxu1 %v7911_v26  ;;  %v7678_v36 = vpack.c.bf16 %v5700_v46, %v5699_v55 }
 0x6a4   : > { %7628 = vmatpush3.bf16.msra.mxu1 %v7627_v29  ;;  %v4796_v29 = vld [vmem:[#allocation3 + $0x18] sm:$0x1] }
 0x6a5   : > { %7629 = vmatprep.subr.bf16.mxu1 %v7911_v26 }
 0x6a8   : > { %7631 = vmatpush3.bf16.msra.mxu1 %v7630_v56  ;;  %v7687_v56 = vpack.c.bf16 %v5707_v3, %v5706_v62 }
 0x6a9   : > { %7632 = vmatprep.subr.bf16.mxu1 %v7911_v26 }
 0x6ab   : > { %7126 = vmatmul.mubr.msk.f32.vlgmr.msra.gmra.mrb[22].mxu1 %vm1934_vm4, %v4460_v10  ;;  %v7693_v10 = vpack.c.bf16 %v5712_v38, %v5711_v60 }
 0x6ac   : > { %7634 = vmatpush3.bf16.msra.mxu1 %v7633_v6  ;;  %7144 = vmatprep.mubr.msk.f32.mxu1 %vm7910_vm1, %v7909_v1  ;;  %v7690_v6 = vpack.c.bf16 %v5709_v4, %v5708_v40 }
 0x6ad   : > { %7635 = vmatprep.subr.bf16.mxu1 %v7911_v26 }
 0x6b0   : > { %7637 = vmatpush3.bf16.msra.mxu1 %v7636_v7  ;;  %v5713_v7 = vld [vmem:[%s9866_s9 + $0x690] sm:$0xff] }
 0x6b1   : > { %7638 = vmatprep.subr.bf16.mxu1 %v7911_v26 }
 0x6b4   : > { %7640 = vmatpush3.bf16.msra.mxu1 %v7639_v12  ;;  %v7696_v12 = vpack.c.bf16 %v5714_v11, %v5713_v7 }
 0x6b5   : > { %7641 = vmatprep.subr.bf16.mxu1 %v7911_v26 }
 0x6b8   : > { %7643 = vmatpush3.bf16.msra.mxu1 %v7642_v15  ;;  %v7699_v15 = vpack.c.bf16 %v5716_v14, %v5715_v0 }
 0x6b9   : > { %7644 = vmatprep.subr.bf16.mxu1 %v7911_v26 }
 0x6bb   : > { %7145 = vmatmul.mubr.msk.f32.vlgmr.msra.gmra.mrb[22].mxu1 %vm1934_vm4, %v4544_v18  ;;  %v7705_v18 = vpack.c.bf16 %v5721_v20, %v5720_v5 }
 0x6bc   : > { %7646 = vmatpush3.bf16.msra.mxu1 %v7645_v53  ;;  %7163 = vmatprep.mubr.msk.f32.mxu1 %vm7910_vm1, %v7909_v1  ;;  %v7702_v53 = vpack.c.bf16 %v5718_v51, %v5717_v16 }
 0x6bd   : > { %7647 = vmatprep.subr.bf16.mxu1 %v7911_v26 }
 0x6c0   : > { %7649 = vmatpush3.bf16.msra.mxu1 %v7648_v23  ;;  %v5722_v23 = vld [vmem:[%s9866_s9 + $0x6d0] sm:$0xff] }
 0x6c1   : > { %7650 = vmatprep.subr.bf16.mxu1 %v7911_v26 }
 0x6c4   : > { %7652 = vmatpush3.bf16.msra.mxu1 %v7651_v9  ;;  %v7708_v9 = vpack.c.bf16 %v5723_v19, %v5722_v23 }
 0x6c5   : > { %7653 = vmatprep.subr.bf16.mxu1 %v7911_v26 }
 0x6c8   : > { %7655 = vmatpush3.bf16.msra.mxu1 %v7654_v13  ;;  %v7711_v13 = vpack.c.bf16 %v5725_v57, %v5724_v24 }
 0x6c9   : > { %7656 = vmatprep.subr.bf16.mxu1 %v7911_v26 }
 0x6cb   : > { %7164 = vmatmul.mubr.msk.f32.vlgmr.msra.gmra.mrb[22].mxu1 %vm1934_vm4, %v4628_v30  ;;  %v7726_v30 = vpack.c.bf16 %v5139_v22, %v5138_v17 }
 0x6cc   : > { %7658 = vmatpush3.bf16.msra.mxu1 %v7657_v2  ;;  %7182 = vmatprep.mubr.msk.f32.mxu1 %vm7910_vm1, %v7909_v1  ;;  %v5048_v2 = vld [vmem:[#allocation3 + $0x1b] sm:$0x1] }
 0x6cd   : > { %7659 = vmatprep.subr.bf16.mxu1 %v7911_v26  ;;  %7727 = vmatpush3.bf16.msra.mxu0 %v7726_v30 }
 0x6d0   : > { %7661 = vmatpush3.bf16.msra.mxu1 %v7660_v21  ;;  %v2780_v21 = vld [vmem:[%s9867_s10] sm:$0x1] }
 0x6d1   : > { %7662 = vmatprep.subr.bf16.mxu1 %v7911_v26 }
 0x6d4   : > { %7664 = vmatpush3.bf16.msra.mxu1 %v7663_v34  ;;  %v5140_v34 = vld [vmem:[%s9869_s12] sm:$0x1] }
 0x6d5   : > { %7665 = vmatprep.subr.bf16.mxu1 %v7911_v26 }
 0x6d8   : > { %7667 = vmatpush3.bf16.msra.mxu1 %v7666_v37 }
 0x6d9   : > { %7668 = vmatprep.subr.bf16.mxu1 %v7911_v26 }
 0x6db   : > { %7183 = vmatmul.mubr.msk.f32.vlgmr.msra.gmra.mrb[22].mxu1 %vm1934_vm4, %v4712_v35 }
 0x6dc   : > { %7670 = vmatpush3.bf16.msra.mxu1 %v7669_v31  ;;  %7201 = vmatprep.mubr.msk.f32.mxu1 %vm7910_vm1, %v7909_v1 }
 0x6dd   : > { %7671 = vmatprep.subr.bf16.mxu1 %v7911_v26 }
 0x6e0   : > { %7673 = vmatpush3.bf16.msra.mxu1 %v7672_v33 }
 0x6e1   : > { %7674 = vmatprep.subr.bf16.mxu1 %v7911_v26 }
 0x6e4   : > { %7676 = vmatpush3.bf16.msra.mxu1 %v7675_v42 }
 0x6e5   : > { %7677 = vmatprep.subr.bf16.mxu1 %v7911_v26 }
 0x6e8   : > { %7679 = vmatpush3.bf16.msra.mxu1 %v7678_v36 }
 0x6e9   : > { %7680 = vmatprep.subr.bf16.mxu1 %v7911_v26 }
 0x6eb   : > { %7202 = vmatmul.mubr.msk.f32.vlgmr.msra.gmra.mrb[22].mxu1 %vm1934_vm4, %v4796_v29 }
 0x6ec   : > { %7682 = vmatpush3.bf16.msra.mxu1 %v7681_v61  ;;  %7220 = vmatprep.mubr.msk.f32.mxu1 %vm7910_vm1, %v7909_v1 }
 0x6ed   : > { %7683 = vmatprep.subr.bf16.mxu1 %v7911_v26 }
 0x6f0   : > { %7685 = vmatpush3.bf16.msra.mxu1 %v7684_v58 }
 0x6f1   : > { %7686 = vmatprep.subr.bf16.mxu1 %v7911_v26 }
 0x6f4   : > { %7688 = vmatpush3.bf16.msra.mxu1 %v7687_v56 }
 0x6f5   : > { %7689 = vmatprep.subr.bf16.mxu1 %v7911_v26 }
 0x6f8   : > { %7691 = vmatpush3.bf16.msra.mxu1 %v7690_v6 }
 0x6f9   : > { %7692 = vmatprep.subr.bf16.mxu1 %v7911_v26 }
 0x6fb   : > { %7221 = vmatmul.mubr.msk.f32.vlgmr.msra.gmra.mrb[22].mxu1 %vm1934_vm4, %v4880_v8 }
 0x6fc   : > { %7694 = vmatpush3.bf16.msra.mxu1 %v7693_v10  ;;  %7239 = vmatprep.mubr.msk.f32.mxu1 %vm7910_vm1, %v7909_v1 }
 0x6fd   : > { %7695 = vmatprep.subr.bf16.mxu1 %v7911_v26 }
 0x700   : > { %7697 = vmatpush3.bf16.msra.mxu1 %v7696_v12 }
 0x701   : > { %7698 = vmatprep.subr.bf16.mxu1 %v7911_v26 }
 0x704   : > { %7700 = vmatpush3.bf16.msra.mxu1 %v7699_v15 }
 0x705   : > { %7701 = vmatprep.subr.bf16.mxu1 %v7911_v26 }
 0x708   : > { %7703 = vmatpush3.bf16.msra.mxu1 %v7702_v53 }
 0x709   : > { %7704 = vmatprep.subr.bf16.mxu1 %v7911_v26 }
 0x70b   : > { %7240 = vmatmul.mubr.msk.f32.vlgmr.msra.gmra.mrb[22].mxu1 %vm1934_vm4, %v4964_v48 }
 0x70c   : > { %7706 = vmatpush3.bf16.msra.mxu1 %v7705_v18  ;;  %7258 = vmatprep.mubr.msk.f32.mxu1 %vm7910_vm1, %v7909_v1  ;;  %v5727_v1 = vld [vmem:[%s9866_s9 + $0x6f8] sm:$0xff] }
 0x70d   : > { %7707 = vmatprep.subr.bf16.mxu1 %v7911_v26  ;;  %v7714_v28 = vpack.c.bf16 %v5727_v1, %v5726_v59 }
 0x710   : > { %7709 = vmatpush3.bf16.msra.mxu1 %v7708_v9 }
 0x711   : > { %7710 = vmatprep.subr.bf16.mxu1 %v7911_v26 }
 0x714   : > { %7712 = vmatpush3.bf16.msra.mxu1 %v7711_v13 }
 0x715   : > { %7713 = vmatprep.subr.bf16.mxu1 %v7911_v26 }
 0x718   : > { %7715 = vmatpush3.bf16.msra.mxu1 %v7714_v28 }
 0x71b   : > { %7259 = vmatmul.mubr.msk.f32.vlgmr.msra.gmra.mrb[22].mxu1 %vm1934_vm4, %v5048_v2 }
 0x7ee   : > { %v5127_v27 = vpop.f32.mrb[22].mxu1 }
 0x7ef   : > { %v7736_v26 = vadd.f32 %v5127_v27, %v2780_v21  ;;  %v7260_v32 = vpop.f32.mrb[23].mxu1 }
 0x7f1   : > { %7278 = vmatmul.mubr.msk.f32.vlgmr.msra.gmra.mrb[240].mxu0 %vm1934_vm4, %v7736_v26 }
 0x8c4   : > { %v5210_v25 = vpop.f32.mrb[240].mxu0 }
 0x8c5   : > { %v5211_v39 = vadd.f32 %v5210_v25, %v5140_v34  ;;  %v7279_v37 = vpop.f32.mrb[241].mxu0 }
 0x8c7   : > { %v5215_v43 = vsel %vm5214_vm7, %v5211_v39, -inf }
 0x8c8   : > { %5216 = vmax.xlane.f32.xlu0 %v5215_v43 }
 0x955   : > { %v5217_v41 = vpop.xlane.xlu0 %5216 }
 0x956   : > { %v5218_v31 = vsub.f32 %v5211_v39, %v5217_v41 }
 0x958   : > { %v5219_v45 = vmul.f32 1.442695, %v5218_v31 }
 0x95a   : > { %7841 = vpow2.f32 %v5219_v45 }
 0x964   : > { %v7842_v47 = vpop.eup %7841 }
 0x965   : > { %v5221_v35 = vsel %vm5214_vm7, %v7842_v47, 0.0 }
 0x966   : > { %5222 = vadd.xlane.f32.xlu0 %v5221_v35 }
 0x9f3   : > { %v5223_v33 = vpop.xlane.xlu0 %5222 }
 0x9f4   : > { %7843 = vrcp.f32 %v5223_v33 }
 0x9fe   : > { %v7844_v49 = vpop.eup %7843 }
 0x9ff   : > { %v5225_v44 = vmul.f32 %v7844_v49, %v7842_v47 }
 0xa01   : > { %5226 = vst.msk [vmem:[%s432_s1] sm:$0x1] %vm5214_vm7, %v5225_v44 }
 0xa02   : > { %7858 = shalt.err (!%p7855_p3)
}
 0xa03   : > { %s7859_s24 = scalar_lea.hbm %s9814_s21, 16  ;;  %s7863_s16 = scalar_lea.hbm %s9870_s13, 32 }
 0xa04   : > { %p7860_p4 = scmp.ne.s32.totalorder %s9814_s21, %s7859_s24  ;;  %p7864_p9 = scmp.lt.u32.totalorder %s9814_s21, %s9870_s13 }
 0xa05   : > { %p7865_p10 = scmp.lt.u32.totalorder %s7863_s16, %s7859_s24  ;;  %p7867_p12 = scmp.lt.u32.totalorder %s7859_s24, %s9814_s21 }
 0xa06   : > { %p7861_p7 = pnand %p7860_p4, %p8021_p5 }
 0xa07   : > { %p7866_p11 = por %p7865_p10, %p7864_p9 }
 0xa08   : > { %p7862_p8 = pneg %p7861_p7 }
 0xa09   : > { %p7868_p13 = por %p7867_p12, %p7866_p11 }
 0xa0b   : > { %p7869_p0 = pnand %p7868_p13, %p7862_p8 }
 0xa0d   : > { %7872 = shalt.err (!%p7869_p0)
}
 0xa0e   : > { %7791 = dma.vmem_to_hbm [thread:$0]  (%p8021_p5), %s9816_s0, 16, %s9814_s21, %s5228_s15  }
 0xa0f PF: > { %p7797_p1 = scmp.ge.s32.totalorder %s7907_s28, 2  ;;  %s5252_s2 = sand.u32 1, %s7895_s25  }
 0xa10   : > { %s5253_s22 = scalar_lea.sflag [#allocation5], %s5252_s2 }
 0xa11   : > { %p7794_p2 = pnand %p7797_p1, %p8025_p6 }
 0xa13   : > { %7890 = dma.done.wait (!%p7794_p2), %s5253_s22, 16  }
 0xa14   : > { %7892 = vsyncadd (!%p7794_p2), %s5253_s22, 4294967280  ;;  %p23_p3 = scmp.ge.s32.totalorder %s8008_s14, 4   ;;  %s9879_s25 = smov %s7899_s26 }
 0xa15   : > { %s9880_s26 = smov %s7903_s27  ;;  %s9881_s27 = smov %s8019_s17 }
 0xa16   : > { %s9882_s28 = smov %s8008_s14  ;;  %25 = sbr.rel (!%p23_p3) target bundleno = 7 (0x7), region = 143 }
 0xa1d   :  { %5257 = vsyncpa [#allocation5], 1 }
 0xa1e   :  { %5259 = vsyncpa [#allocation5 + $0x1], 1 }

</bundles_post_ra>
